<compile_context>
chip_gen: v7x
topology: tpu7x:2x2x1
jax: 0.10.0
libtpu: 0.0.40
codegen_flags: <defaults>
</compile_context>

<pallas_src>
from functools import partial

import jax
import jax.numpy as jnp
import numpy as np
from jax.experimental import pallas as pl
from jax.experimental.pallas import tpu as pltpu

DATA_LENGTH = 256
NUM_CONDITIONS = 6
_L0 = 8          # time length after Unflatten(1, (256, 8))
_C0 = 256        # channels after Unflatten (also = lanes per packed row at every layer)
_BN_EPS = 1e-5
_R_PAD = 128     # lane-padded width of the reconstruction-head output


# --------------------------------- kernel ----------------------------------- #

def _decoder_kernel(x_ref, c_ref, wx_ref, wc_ref, bin_ref,
                    g1_ref, g2_ref, g3_ref, g4_ref, g5_ref,
                    tb14_ref, tb5_ref,
                    wr1_ref, br1_ref, wr2_ref, br2_ref, wr3_ref, br3_ref,
                    out_x_ref, out_r_ref, a_scr):
    f32 = jnp.float32
    bf16 = jnp.bfloat16
    rows = a_scr.shape[0]
    bb = rows // _L0                                   # batch rows per grid block

    x = x_ref[...]                                     # (bb, 256) f32
    c = c_ref[...]                                     # (bb, 6)   f32

    # ---- input Linear + BatchNorm (folded) + LeakyReLU ----
    h = (jnp.dot(x.astype(bf16), wx_ref[...], preferred_element_type=f32)
         + jnp.dot(c.astype(bf16), wc_ref[...], preferred_element_type=f32)
         + bin_ref[...])                               # (bb, 2048) f32
    h = jnp.where(h >= 0, h, 0.2 * h)

    # Pack to u-major rows (row = u*bb + b) with 8 static slice stores (no MXU scatter).
    for u in range(_L0):
        a_scr[u * bb:(u + 1) * bb, :] = h[:, u * _C0:(u + 1) * _C0]
    a = a_scr[...]                                     # (8*bb, 256) f32, post-activation
    a_bf = a.astype(bf16)

    # Boundary masks: u == 0 has no previous time-step row, u == 7 has no next one.
    row = jax.lax.broadcasted_iota(jnp.int32, (rows, 1), 0)
    mask_dn = row >= bb
    mask_up = row < (rows - bb)

    def shift_dn(v):                                   # v[r-bb] into row r, zero at u == 0
        return jnp.where(mask_dn, pltpu.roll(v, bb, 0),
                         jnp.zeros_like(v)).astype(bf16)

    def shift_up(v):                                   # v[r+bb] into row r, zero at u == 7
        return jnp.where(mask_up, pltpu.roll(v, rows - bb, 0),
                         jnp.zeros_like(v)).astype(bf16)

    # ---- layer 1 (cin=256): prev/next taps need the full 256-lane neighbour row ----
    cat = jnp.concatenate([a_bf, shift_dn(a), shift_up(a)], axis=1)     # (rows, 768)
    y = jnp.dot(cat, g1_ref[...], preferred_element_type=f32) + tb14_ref[0]
    a = jnp.where(y >= 0, y, 0.2 * y)
    a_bf = a.astype(bf16)
    # TODO(synk): nn.Dropout is identity in inference mode; no stochastic masking.

    # ---- layers 2..4: prev tap lives in the last 128 lanes, next tap in the first 128 ----
    for l, g_ref in ((1, g2_ref), (2, g3_ref), (3, g4_ref)):
        cat = jnp.concatenate(
            [a_bf, shift_dn(a[:, _C0 - 128:]), shift_up(a[:, :128])], axis=1)  # (rows, 512)
        y = jnp.dot(cat, g_ref[...], preferred_element_type=f32) + tb14_ref[l]
        a = jnp.where(y >= 0, y, 0.2 * y)
        a_bf = a.astype(bf16)

    # ---- layer 5 (kernel_size=3, output_padding=1): no prev-row tap; Sigmoid ----
    cat = jnp.concatenate([a_bf, shift_up(a[:, :128])], axis=1)         # (rows, 384)
    y5 = jnp.dot(cat, g5_ref[...], preferred_element_type=f32) + tb5_ref[...]  # (rows, 32)
    out_x_ref[...] = jax.nn.sigmoid(y5).astype(out_x_ref.dtype)

    # ---- reconstruction head (f32, lane-padded 128-wide output) ----
    r = jnp.maximum(jnp.dot(x, wr1_ref[...], preferred_element_type=f32) + br1_ref[...], 0.0)
    r = jnp.maximum(jnp.dot(r, wr2_ref[...], preferred_element_type=f32) + br2_ref[...], 0.0)
    out_r_ref[...] = (jnp.dot(r, wr3_ref[...], preferred_element_type=f32)
                      + br3_ref[...]).astype(out_r_ref.dtype)


# --------------------------------- wrapper ----------------------------------- #

_WEIGHT_KEYS = ("wx", "wc", "b_in", "g1", "g2", "g3", "g4", "g5",
                "tb14", "tb5", "wr1", "br1", "wr2", "br2", "wr3", "br3")


@partial(jax.jit, static_argnames=("block_batch",))
def decoder_forward(prep, x, c, block_batch=None):
    batch = x.shape[0]
    # block_batch (if given) must divide batch and be a multiple of 8 or equal to batch.
    bb = batch if block_batch is None else block_batch
    assert batch % bb == 0
    g = batch // bb
    rows_blk = _L0 * bb
    d_last = DATA_LENGTH // _L0                        # 32 output samples per packed row

    weights = [prep[k] for k in _WEIGHT_KEYS]
    in_specs = (
        [pl.BlockSpec((bb, DATA_LENGTH), lambda i: (i, 0)),
         pl.BlockSpec((bb, NUM_CONDITIONS), lambda i: (i, 0))]
        + [pl.BlockSpec(w.shape, lambda i, nd=w.ndim: (0,) * nd) for w in weights]
    )

    out_x_packed, out_r_pad = pl.pallas_call(
        _decoder_kernel,
        grid=(g,),
        out_shape=(jax.ShapeDtypeStruct((g * rows_blk, d_last), jnp.float32),
                   jax.ShapeDtypeStruct((batch, _R_PAD), jnp.float32)),
        in_specs=in_specs,
        out_specs=(pl.BlockSpec((rows_blk, d_last), lambda i: (i, 0)),
                   pl.BlockSpec((bb, _R_PAD), lambda i: (i, 0))),
        scratch_shapes=[pltpu.VMEM((rows_blk, _C0), jnp.float32)],
        compiler_params=pltpu.CompilerParams(dimension_semantics=("parallel",)),
    )(x, c, *weights)

    # block-local row r = u*bb + b_local holds output samples [u*32, (u+1)*32)
    x_out = jnp.transpose(out_x_packed.reshape(g, _L0, bb, d_last), (0, 2, 1, 3))
    x_out = x_out.reshape(batch, 1, DATA_LENGTH)
    return x_out, out_r_pad[:, :NUM_CONDITIONS]


# ------------------------------ parameter prep ------------------------------- #

def _bn_fold(bn, n):
    if bn is None:
        return np.ones(n, np.float32), np.zeros(n, np.float32)
    gamma, beta, mean, var = [np.asarray(a, np.float32) for a in bn]
    s = gamma / np.sqrt(var + _BN_EPS)
    return s, beta - mean * s


def _pack_convt(w_taps, b_conv, bn, s):
    """Build (Gc, Gp, Gn, t_row) for one ConvTranspose1d(k<=4, stride=2, padding=1) layer
    on the packed-row layout (s input time steps per row, channel-minor).
      even out y[2m]   = x[m] @ W1 + x[m-1] @ W3
      odd  out y[2m+1] = x[m] @ W2 + x[m+1] @ W0
    BN scale folded into the weights, BN shift + conv bias into t_row."""
    cin, cout = w_taps.shape[0], w_taps.shape[1]
    sf, tf = _bn_fold(bn, cout)
    w = np.asarray(w_taps, np.float32) * sf[None, :, None]
    tb = np.asarray(b_conv, np.float32) * sf + tf
    w0, w1, w2, w3 = (w[:, :, k] for k in range(4))
    din, dout = s * cin, 2 * s * cout
    gc = np.zeros((din, dout), np.float32)
    gp = np.zeros((din, dout), np.float32)
    gn = np.zeros((din, dout), np.float32)
    for p in range(s):
        gc[p * cin:(p + 1) * cin, (2 * p) * cout:(2 * p + 1) * cout] = w1
        gc[p * cin:(p + 1) * cin, (2 * p + 1) * cout:(2 * p + 2) * cout] = w2
        if p >= 1:
            gc[(p - 1) * cin:p * cin, (2 * p) * cout:(2 * p + 1) * cout] = w3
        if p <= s - 2:
            gc[(p + 1) * cin:(p + 2) * cin, (2 * p + 1) * cout:(2 * p + 2) * cout] = w0
    gp[(s - 1) * cin:s * cin, 0:cout] = w3             # x[m-1] coming from previous row
    gn[0:cin, (2 * s - 1) * cout:2 * s * cout] = w0    # x[m+1] coming from next row
    t_row = np.tile(tb, 2 * s)[None, :]                # (1, dout)
    return gc, gp, gn, t_row


def prepare_params(params):
    """Batch-size independent parameter preprocessing."""
    f32 = np.float32
    bf16 = jnp.bfloat16

    # ---- input Linear + BN fold; permute columns to (time-major, channel-minor) ----
    w_in = np.asarray(params["w_in"], f32)             # (262, 2048)
    b_in = np.asarray(params["b_in"], f32)
    sf, tf = _bn_fold(params["bn_in"], w_in.shape[1])
    wf = w_in * sf[None, :]
    bfold = b_in * sf + tf
    perm = np.arange(_C0 * _L0).reshape(_C0, _L0).T.reshape(-1)   # new u*256+c -> old c*8+u
    wperm = wf[:, perm]
    bperm = bfold[perm]

    # ---- conv-transpose layers -> one stacked-K matrix per layer ----
    gs = []
    s = 1
    for (w, b, bn, _act) in params["convs"]:
        gs.append(_pack_convt(w, b, bn, s))
        s *= 2

    def stack_layer(idx, dn_width, up_width):
        gc, gp, gn, trow = gs[idx]
        pieces = [gc]
        if dn_width:
            pieces.append(gp[gp.shape[0] - dn_width:, :])
        if up_width:
            pieces.append(gn[:up_width, :])
        return np.concatenate(pieces, axis=0), trow

    g1, tb1 = stack_layer(0, 256, 256)                 # (768, 256)
    g2, tb2 = stack_layer(1, 128, 128)                 # (512, 256)
    g3, tb3 = stack_layer(2, 128, 128)                 # (512, 256)
    g4, tb4 = stack_layer(3, 128, 128)                 # (512, 256)
    g5, tb5 = stack_layer(4, 0, 128)                   # (384, 32): k=3 -> no prev-row tap
    tb14 = np.stack([tb1, tb2, tb3, tb4], axis=0)      # (4, 1, 256)

    # ---- recon head: pad the last layer to 128 output lanes (unmasked store) ----
    wr3 = np.asarray(params["w_r3"], f32)
    br3 = np.asarray(params["b_r3"], f32)
    wr3p = np.zeros((wr3.shape[0], _R_PAD), f32)
    wr3p[:, :wr3.shape[1]] = wr3
    br3p = np.zeros((1, _R_PAD), f32)
    br3p[0, :br3.shape[0]] = br3

    return dict(
        wx=jnp.asarray(wperm[:DATA_LENGTH], dtype=bf16),
        wc=jnp.asarray(wperm[DATA_LENGTH:], dtype=bf16),
        b_in=jnp.asarray(bperm.reshape(1, -1)),
        g1=jnp.asarray(g1, dtype=bf16), g2=jnp.asarray(g2, dtype=bf16),
        g3=jnp.asarray(g3, dtype=bf16), g4=jnp.asarray(g4, dtype=bf16),
        g5=jnp.asarray(g5, dtype=bf16),
        tb14=jnp.asarray(tb14), tb5=jnp.asarray(tb5),
        wr1=jnp.asarray(np.asarray(params["w_r1"], f32)),
        br1=jnp.asarray(np.asarray(params["b_r1"], f32).reshape(1, -1)),
        wr2=jnp.asarray(np.asarray(params["w_r2"], f32)),
        br2=jnp.asarray(np.asarray(params["b_r2"], f32).reshape(1, -1)),
        wr3=jnp.asarray(wr3p), br3=jnp.asarray(br3p),
    )


# ------------------------------ random parameters ---------------------------- #

def init_params(key):
    keys = iter(jax.random.split(key, 64))

    def lin(din, dout):
        lim = 1.0 / np.sqrt(din)
        w = jax.random.uniform(next(keys), (din, dout), jnp.float32, -lim, lim)
        b = jax.random.uniform(next(keys), (dout,), jnp.float32, -lim, lim)
        return w, b

    def bn(cch):
        gamma = 1.0 + 0.1 * jax.random.normal(next(keys), (cch,), jnp.float32)
        beta = 0.1 * jax.random.normal(next(keys), (cch,), jnp.float32)
        mean = 0.1 * jax.random.normal(next(keys), (cch,), jnp.float32)
        var = jax.random.uniform(next(keys), (cch,), jnp.float32, 0.5, 1.5)
        return (gamma, beta, mean, var)

    def convt(cin, cout, k):
        lim = 1.0 / np.sqrt(cin * k)
        w = jax.random.uniform(next(keys), (cin, cout, k), jnp.float32, -lim, lim)
        b = jax.random.uniform(next(keys), (cout,), jnp.float32, -lim, lim)
        w = jnp.pad(w, ((0, 0), (0, 0), (0, 4 - k)))       # zero-pad missing taps
        return w, b

    p = {}
    p["w_in"], p["b_in"] = lin(DATA_LENGTH + NUM_CONDITIONS, 256 * 8)
    p["bn_in"] = bn(256 * 8)
    convs = []
    for cin, cout, k, has_bn, act in [
        (256, 128, 4, True, "leaky_relu"),
        (128, 64, 4, True, "leaky_relu"),
        (64, 32, 4, True, "leaky_relu"),
        (32, 16, 4, True, "leaky_relu"),
        (16, 1, 3, False, "sigmoid"),
    ]:
        w, b = convt(cin, cout, k)
        convs.append((w, b, bn(cout) if has_bn else None, act))
    p["convs"] = convs
    p["w_r1"], p["b_r1"] = lin(DATA_LENGTH, 128)
    p["w_r2"], p["b_r2"] = lin(128, 64)
    p["w_r3"], p["b_r3"] = lin(64, NUM_CONDITIONS)
    return p


# ------------------------- pure-numpy reference ------------------------------ #

def _ref_convt1d(x_ncl, w, b, k, stride=2, pad=1, out_pad=0):
    x = np.asarray(x_ncl, np.float32)
    w = np.asarray(w, np.float32)[:, :, :k]
    b = np.asarray(b, np.float32)
    B, Cin, L = x.shape
    Cout = w.shape[1]
    Lout = (L - 1) * stride - 2 * pad + k + out_pad
    y = np.zeros((B, Cout, Lout), np.float32)
    for i in range(L):
        for kk in range(k):
            t = i * stride - pad + kk
            if 0 <= t < Lout:
                y[:, :, t] += x[:, :, i] @ w[:, :, kk]
    return y + b[None, :, None]


def _ref_bn_ncl(x, bnp, eps=_BN_EPS):
    g, be, m, v = [np.asarray(a, np.float32) for a in bnp]
    return g[None, :, None] * (x - m[None, :, None]) / np.sqrt(v[None, :, None] + eps) \
        + be[None, :, None]


def ref_forward(params, x, c):
    x = np.asarray(x, np.float32)
    c = np.asarray(c, np.float32)
    concat = np.concatenate([x, c], axis=1)
    h = concat @ np.asarray(params["w_in"]) + np.asarray(params["b_in"])
    g, be, m, v = [np.asarray(a, np.float32) for a in params["bn_in"]]
    h = g * (h - m) / np.sqrt(v + _BN_EPS) + be
    h = np.where(h >= 0, h, 0.2 * h)
    h = h.reshape(-1, 256, 8)
    specs = [(4, 0), (4, 0), (4, 0), (4, 0), (3, 1)]
    for (w, b, bnp, act), (k, op) in zip(params["convs"], specs):
        h = _ref_convt1d(h, w, b, k, out_pad=op)
        if bnp is not None:
            h = _ref_bn_ncl(h, bnp)
        if act == "leaky_relu":
            h = np.where(h >= 0, h, 0.2 * h)
        elif act == "sigmoid":
            h = 1.0 / (1.0 + np.exp(-h))
    r = np.maximum(x @ np.asarray(params["w_r1"]) + np.asarray(params["b_r1"]), 0.0)
    r = np.maximum(r @ np.asarray(params["w_r2"]) + np.asarray(params["b_r2"]), 0.0)
    r = r @ np.asarray(params["w_r3"]) + np.asarray(params["b_r3"])
    return h, r


# ---------------------------------- main ------------------------------------- #

if __name__ == "__main__":
    key = jax.random.PRNGKey(0)
    pkey, xkey, ckey = jax.random.split(key, 3)
    params = init_params(pkey)

    B = 4
    x = jax.random.normal(xkey, (B, DATA_LENGTH), jnp.float32)
    c = jax.random.normal(ckey, (B, NUM_CONDITIONS), jnp.float32)

    prep = prepare_params(params)                      # batch-size independent
    out_x, out_c = decoder_forward(prep, x, c)
    jax.block_until_ready((out_x, out_c))

    assert out_x.shape == (B, 1, DATA_LENGTH)
    assert out_c.shape == (B, NUM_CONDITIONS)

    ref_x, ref_c = ref_forward(params, x, c)
    # conv path uses bf16 matmul weights (f32 accumulation) -> slightly looser tolerance
    np.testing.assert_allclose(np.asarray(out_x), ref_x, rtol=3e-2, atol=3e-2)
    np.testing.assert_allclose(np.asarray(out_c), ref_c, rtol=1e-2, atol=1e-2)

    print("KERNEL_OK")
</pallas_src>

<mosaic_0001>
module attributes {stable_mosaic.version = 11 : i64} {
  func.func @_decoder_kernel(%arg0: i32, %arg1: memref<4x256xf32, #tpu.memory_space<vmem>>, %arg2: memref<4x6xf32, #tpu.memory_space<vmem>>, %arg3: memref<256x2048xbf16, #tpu.memory_space<vmem>>, %arg4: memref<6x2048xbf16, #tpu.memory_space<vmem>>, %arg5: memref<1x2048xf32, #tpu.memory_space<vmem>>, %arg6: memref<768x256xbf16, #tpu.memory_space<vmem>>, %arg7: memref<512x256xbf16, #tpu.memory_space<vmem>>, %arg8: memref<512x256xbf16, #tpu.memory_space<vmem>>, %arg9: memref<512x256xbf16, #tpu.memory_space<vmem>>, %arg10: memref<384x32xbf16, #tpu.memory_space<vmem>>, %arg11: memref<4x1x256xf32, #tpu.memory_space<vmem>>, %arg12: memref<1x32xf32, #tpu.memory_space<vmem>>, %arg13: memref<256x128xf32, #tpu.memory_space<vmem>>, %arg14: memref<1x128xf32, #tpu.memory_space<vmem>>, %arg15: memref<128x64xf32, #tpu.memory_space<vmem>>, %arg16: memref<1x64xf32, #tpu.memory_space<vmem>>, %arg17: memref<64x128xf32, #tpu.memory_space<vmem>>, %arg18: memref<1x128xf32, #tpu.memory_space<vmem>>, %arg19: memref<32x32xf32, #tpu.memory_space<vmem>>, %arg20: memref<4x128xf32, #tpu.memory_space<vmem>>, %arg21: memref<32x256xf32, #tpu.memory_space<vmem>>) attributes {dimension_semantics = [#tpu.dimension_semantics<parallel>], iteration_bounds = array<i64: 1>, scalar_prefetch = 0 : i64, scratch_operands = 1 : i64, tpu.core_type = #tpu.core_type<tc>, window_params = [{transform_indices = @transform_0, window_bounds = array<i64: 4, 256>}, {transform_indices = @transform_1, window_bounds = array<i64: 4, 6>}, {pipeline_mode = #tpu.pipeline_mode<synchronous>, transform_indices = @transform_2, window_bounds = array<i64: 256, 2048>}, {pipeline_mode = #tpu.pipeline_mode<synchronous>, transform_indices = @transform_3, window_bounds = array<i64: 6, 2048>}, {pipeline_mode = #tpu.pipeline_mode<synchronous>, transform_indices = @transform_4, window_bounds = array<i64: 1, 2048>}, {pipeline_mode = #tpu.pipeline_mode<synchronous>, transform_indices = @transform_5, window_bounds = array<i64: 768, 256>}, {pipeline_mode = #tpu.pipeline_mode<synchronous>, transform_indices = @transform_6, window_bounds = array<i64: 512, 256>}, {pipeline_mode = #tpu.pipeline_mode<synchronous>, transform_indices = @transform_7, window_bounds = array<i64: 512, 256>}, {pipeline_mode = #tpu.pipeline_mode<synchronous>, transform_indices = @transform_8, window_bounds = array<i64: 512, 256>}, {pipeline_mode = #tpu.pipeline_mode<synchronous>, transform_indices = @transform_9, window_bounds = array<i64: 384, 32>}, {pipeline_mode = #tpu.pipeline_mode<synchronous>, transform_indices = @transform_10, window_bounds = array<i64: 4, 1, 256>}, {pipeline_mode = #tpu.pipeline_mode<synchronous>, transform_indices = @transform_11, window_bounds = array<i64: 1, 32>}, {pipeline_mode = #tpu.pipeline_mode<synchronous>, transform_indices = @transform_12, window_bounds = array<i64: 256, 128>}, {pipeline_mode = #tpu.pipeline_mode<synchronous>, transform_indices = @transform_13, window_bounds = array<i64: 1, 128>}, {pipeline_mode = #tpu.pipeline_mode<synchronous>, transform_indices = @transform_14, window_bounds = array<i64: 128, 64>}, {pipeline_mode = #tpu.pipeline_mode<synchronous>, transform_indices = @transform_15, window_bounds = array<i64: 1, 64>}, {pipeline_mode = #tpu.pipeline_mode<synchronous>, transform_indices = @transform_16, window_bounds = array<i64: 64, 128>}, {pipeline_mode = #tpu.pipeline_mode<synchronous>, transform_indices = @transform_17, window_bounds = array<i64: 1, 128>}, {transform_indices = @transform_18, window_bounds = array<i64: 32, 32>}, {transform_indices = @transform_19, window_bounds = array<i64: 4, 128>}]} {
    %c0 = arith.constant 0 : index
    %c0_0 = arith.constant 0 : index
    %0 = vector.load %arg1[%c0, %c0_0] : memref<4x256xf32, #tpu.memory_space<vmem>>, vector<4x256xf32>
    %c0_1 = arith.constant 0 : index
    %c0_2 = arith.constant 0 : index
    %1 = vector.load %arg2[%c0_1, %c0_2] : memref<4x6xf32, #tpu.memory_space<vmem>>, vector<4x6xf32>
    %2 = arith.truncf %0 : vector<4x256xf32> to vector<4x256xbf16>
    %c0_3 = arith.constant 0 : index
    %c0_4 = arith.constant 0 : index
    %3 = vector.load %arg3[%c0_3, %c0_4] : memref<256x2048xbf16, #tpu.memory_space<vmem>>, vector<256x2048xbf16>
    %cst = arith.constant dense<0.000000e+00> : vector<4x2048xf32>
    %4 = tpu.matmul %2, %3, %cst {dimension_numbers = #tpu.dot_dimension_numbers<[1], [0], [0], [1], [0, 0, 1, 1], [], []>} : vector<4x256xbf16>, vector<256x2048xbf16>, vector<4x2048xf32> -> vector<4x2048xf32>
    %5 = arith.truncf %1 : vector<4x6xf32> to vector<4x6xbf16>
    %c0_5 = arith.constant 0 : index
    %c0_6 = arith.constant 0 : index
    %6 = vector.load %arg4[%c0_5, %c0_6] : memref<6x2048xbf16, #tpu.memory_space<vmem>>, vector<6x2048xbf16>
    %cst_7 = arith.constant dense<0.000000e+00> : vector<4x2048xf32>
    %7 = tpu.matmul %5, %6, %cst_7 {dimension_numbers = #tpu.dot_dimension_numbers<[1], [0], [0], [1], [0, 0, 1, 1], [], []>} : vector<4x6xbf16>, vector<6x2048xbf16>, vector<4x2048xf32> -> vector<4x2048xf32>
    %8 = arith.addf %4, %7 : vector<4x2048xf32>
    %c0_8 = arith.constant 0 : index
    %c0_9 = arith.constant 0 : index
    %9 = vector.load %arg5[%c0_8, %c0_9] : memref<1x2048xf32, #tpu.memory_space<vmem>>, vector<1x2048xf32>
    %10 = vector.broadcast %9 : vector<1x2048xf32> to vector<4x2048xf32>
    %11 = arith.addf %8, %10 : vector<4x2048xf32>
    %cst_10 = arith.constant 0.000000e+00 : f32
    %12 = vector.broadcast %cst_10 : f32 to vector<4x2048xf32>
    %13 = arith.cmpf oge, %11, %12 : vector<4x2048xf32>
    %cst_11 = arith.constant 2.000000e-01 : f32
    %14 = vector.broadcast %cst_11 : f32 to vector<4x2048xf32>
    %15 = arith.mulf %14, %11 : vector<4x2048xf32>
    %16 = arith.select %13, %11, %15 : vector<4x2048xi1>, vector<4x2048xf32>
    %17 = vector.extract_strided_slice %16 {offsets = [0, 0], sizes = [4, 256], strides = [1, 1]} : vector<4x2048xf32> to vector<4x256xf32>
    %c0_12 = arith.constant 0 : index
    %c0_13 = arith.constant 0 : index
    %18 = vector.load %arg21[%c0_12, %c0_13] : memref<32x256xf32, #tpu.memory_space<vmem>>, vector<4x256xf32>
    tpu.vector_store %arg21[%c0_12, %c0_13], %17 {strides = array<i32>} : memref<32x256xf32, #tpu.memory_space<vmem>>, vector<4x256xf32>,
    %19 = vector.extract_strided_slice %16 {offsets = [0, 256], sizes = [4, 256], strides = [1, 1]} : vector<4x2048xf32> to vector<4x256xf32>
    %c4 = arith.constant 4 : index
    %c0_14 = arith.constant 0 : index
    %20 = vector.load %arg21[%c4, %c0_14] : memref<32x256xf32, #tpu.memory_space<vmem>>, vector<4x256xf32>
    tpu.vector_store %arg21[%c4, %c0_14], %19 {strides = array<i32>} : memref<32x256xf32, #tpu.memory_space<vmem>>, vector<4x256xf32>,
    %21 = vector.extract_strided_slice %16 {offsets = [0, 512], sizes = [4, 256], strides = [1, 1]} : vector<4x2048xf32> to vector<4x256xf32>
    %c8 = arith.constant 8 : index
    %c0_15 = arith.constant 0 : index
    %22 = vector.load %arg21[%c8, %c0_15] : memref<32x256xf32, #tpu.memory_space<vmem>>, vector<4x256xf32>
    tpu.vector_store %arg21[%c8, %c0_15], %21 {strides = array<i32>} : memref<32x256xf32, #tpu.memory_space<vmem>>, vector<4x256xf32>,
    %23 = vector.extract_strided_slice %16 {offsets = [0, 768], sizes = [4, 256], strides = [1, 1]} : vector<4x2048xf32> to vector<4x256xf32>
    %c12 = arith.constant 12 : index
    %c0_16 = arith.constant 0 : index
    %24 = vector.load %arg21[%c12, %c0_16] : memref<32x256xf32, #tpu.memory_space<vmem>>, vector<4x256xf32>
    tpu.vector_store %arg21[%c12, %c0_16], %23 {strides = array<i32>} : memref<32x256xf32, #tpu.memory_space<vmem>>, vector<4x256xf32>,
    %25 = vector.extract_strided_slice %16 {offsets = [0, 1024], sizes = [4, 256], strides = [1, 1]} : vector<4x2048xf32> to vector<4x256xf32>
    %c16 = arith.constant 16 : index
    %c0_17 = arith.constant 0 : index
    %26 = vector.load %arg21[%c16, %c0_17] : memref<32x256xf32, #tpu.memory_space<vmem>>, vector<4x256xf32>
    tpu.vector_store %arg21[%c16, %c0_17], %25 {strides = array<i32>} : memref<32x256xf32, #tpu.memory_space<vmem>>, vector<4x256xf32>,
    %27 = vector.extract_strided_slice %16 {offsets = [0, 1280], sizes = [4, 256], strides = [1, 1]} : vector<4x2048xf32> to vector<4x256xf32>
    %c20 = arith.constant 20 : index
    %c0_18 = arith.constant 0 : index
    %28 = vector.load %arg21[%c20, %c0_18] : memref<32x256xf32, #tpu.memory_space<vmem>>, vector<4x256xf32>
    tpu.vector_store %arg21[%c20, %c0_18], %27 {strides = array<i32>} : memref<32x256xf32, #tpu.memory_space<vmem>>, vector<4x256xf32>,
    %29 = vector.extract_strided_slice %16 {offsets = [0, 1536], sizes = [4, 256], strides = [1, 1]} : vector<4x2048xf32> to vector<4x256xf32>
    %c24 = arith.constant 24 : index
    %c0_19 = arith.constant 0 : index
    %30 = vector.load %arg21[%c24, %c0_19] : memref<32x256xf32, #tpu.memory_space<vmem>>, vector<4x256xf32>
    tpu.vector_store %arg21[%c24, %c0_19], %29 {strides = array<i32>} : memref<32x256xf32, #tpu.memory_space<vmem>>, vector<4x256xf32>,
    %31 = vector.extract_strided_slice %16 {offsets = [0, 1792], sizes = [4, 256], strides = [1, 1]} : vector<4x2048xf32> to vector<4x256xf32>
    %c28 = arith.constant 28 : index
    %c0_20 = arith.constant 0 : index
    %32 = vector.load %arg21[%c28, %c0_20] : memref<32x256xf32, #tpu.memory_space<vmem>>, vector<4x256xf32>
    tpu.vector_store %arg21[%c28, %c0_20], %31 {strides = array<i32>} : memref<32x256xf32, #tpu.memory_space<vmem>>, vector<4x256xf32>,
    %c0_21 = arith.constant 0 : index
    %c0_22 = arith.constant 0 : index
    %33 = vector.load %arg21[%c0_21, %c0_22] : memref<32x256xf32, #tpu.memory_space<vmem>>, vector<32x256xf32>
    %34 = arith.truncf %33 : vector<32x256xf32> to vector<32x256xbf16>
    %35 = tpu.iota {dimensions = array<i32: 0>} : vector<32x1xi32>
    %c4_i32 = arith.constant 4 : i32
    %36 = vector.broadcast %c4_i32 : i32 to vector<32x1xi32>
    %37 = arith.cmpi sge, %35, %36 : vector<32x1xi32>
    %c28_i32 = arith.constant 28 : i32
    %38 = vector.broadcast %c28_i32 : i32 to vector<32x1xi32>
    %39 = arith.cmpi slt, %35, %38 : vector<32x1xi32>
    %c4_i32_23 = arith.constant 4 : i32
    %40 = tpu.dynamic_rotate %33 by %c4_i32_23 dim 0 : vector<32x256xf32>, i32 -> vector<32x256xf32>
    %cst_24 = arith.constant 0.000000e+00 : f32
    %41 = vector.broadcast %cst_24 : f32 to vector<32x256xf32>
    %42 = vector.shape_cast %37 : vector<32x1xi1> to vector<32x1xi1>
    %43 = vector.broadcast %42 : vector<32x1xi1> to vector<32x256xi1>
    %44 = arith.select %43, %40, %41 : vector<32x256xi1>, vector<32x256xf32>
    %45 = arith.truncf %44 : vector<32x256xf32> to vector<32x256xbf16>
    %c28_i32_25 = arith.constant 28 : i32
    %46 = tpu.dynamic_rotate %33 by %c28_i32_25 dim 0 : vector<32x256xf32>, i32 -> vector<32x256xf32>
    %cst_26 = arith.constant 0.000000e+00 : f32
    %47 = vector.broadcast %cst_26 : f32 to vector<32x256xf32>
    %48 = vector.shape_cast %39 : vector<32x1xi1> to vector<32x1xi1>
    %49 = vector.broadcast %48 : vector<32x1xi1> to vector<32x256xi1>
    %50 = arith.select %49, %46, %47 : vector<32x256xi1>, vector<32x256xf32>
    %51 = arith.truncf %50 : vector<32x256xf32> to vector<32x256xbf16>
    %52 = tpu.concatenate %34, %45, %51 in 1 : vector<32x256xbf16>, vector<32x256xbf16>, vector<32x256xbf16> -> vector<32x768xbf16>
    %c0_27 = arith.constant 0 : index
    %c0_28 = arith.constant 0 : index
    %53 = vector.load %arg6[%c0_27, %c0_28] : memref<768x256xbf16, #tpu.memory_space<vmem>>, vector<768x256xbf16>
    %cst_29 = arith.constant dense<0.000000e+00> : vector<32x256xf32>
    %54 = tpu.matmul %52, %53, %cst_29 {dimension_numbers = #tpu.dot_dimension_numbers<[1], [0], [0], [1], [0, 0, 1, 1], [], []>} : vector<32x768xbf16>, vector<768x256xbf16>, vector<32x256xf32> -> vector<32x256xf32>
    %c0_30 = arith.constant 0 : index
    %c0_31 = arith.constant 0 : index
    %c0_32 = arith.constant 0 : index
    %55 = vector.load %arg11[%c0_30, %c0_31, %c0_32] : memref<4x1x256xf32, #tpu.memory_space<vmem>>, vector<1x1x256xf32>
    %56 = vector.shape_cast %55 : vector<1x1x256xf32> to vector<1x256xf32>
    %57 = vector.broadcast %56 : vector<1x256xf32> to vector<32x256xf32>
    %58 = arith.addf %54, %57 : vector<32x256xf32>
    %cst_33 = arith.constant 0.000000e+00 : f32
    %59 = vector.broadcast %cst_33 : f32 to vector<32x256xf32>
    %60 = arith.cmpf oge, %58, %59 : vector<32x256xf32>
    %cst_34 = arith.constant 2.000000e-01 : f32
    %61 = vector.broadcast %cst_34 : f32 to vector<32x256xf32>
    %62 = arith.mulf %61, %58 : vector<32x256xf32>
    %63 = arith.select %60, %58, %62 : vector<32x256xi1>, vector<32x256xf32>
    %64 = arith.truncf %63 : vector<32x256xf32> to vector<32x256xbf16>
    %65 = vector.extract_strided_slice %63 {offsets = [0, 128], sizes = [32, 128], strides = [1, 1]} : vector<32x256xf32> to vector<32x128xf32>
    %c4_i32_35 = arith.constant 4 : i32
    %66 = tpu.dynamic_rotate %65 by %c4_i32_35 dim 0 : vector<32x128xf32>, i32 -> vector<32x128xf32>
    %cst_36 = arith.constant 0.000000e+00 : f32
    %67 = vector.broadcast %cst_36 : f32 to vector<32x128xf32>
    %68 = vector.shape_cast %37 : vector<32x1xi1> to vector<32x1xi1>
    %69 = vector.broadcast %68 : vector<32x1xi1> to vector<32x128xi1>
    %70 = arith.select %69, %66, %67 : vector<32x128xi1>, vector<32x128xf32>
    %71 = arith.truncf %70 : vector<32x128xf32> to vector<32x128xbf16>
    %72 = vector.extract_strided_slice %63 {offsets = [0, 0], sizes = [32, 128], strides = [1, 1]} : vector<32x256xf32> to vector<32x128xf32>
    %c28_i32_37 = arith.constant 28 : i32
    %73 = tpu.dynamic_rotate %72 by %c28_i32_37 dim 0 : vector<32x128xf32>, i32 -> vector<32x128xf32>
    %cst_38 = arith.constant 0.000000e+00 : f32
    %74 = vector.broadcast %cst_38 : f32 to vector<32x128xf32>
    %75 = vector.shape_cast %39 : vector<32x1xi1> to vector<32x1xi1>
    %76 = vector.broadcast %75 : vector<32x1xi1> to vector<32x128xi1>
    %77 = arith.select %76, %73, %74 : vector<32x128xi1>, vector<32x128xf32>
    %78 = arith.truncf %77 : vector<32x128xf32> to vector<32x128xbf16>
    %79 = tpu.concatenate %64, %71, %78 in 1 : vector<32x256xbf16>, vector<32x128xbf16>, vector<32x128xbf16> -> vector<32x512xbf16>
    %c0_39 = arith.constant 0 : index
    %c0_40 = arith.constant 0 : index
    %80 = vector.load %arg7[%c0_39, %c0_40] : memref<512x256xbf16, #tpu.memory_space<vmem>>, vector<512x256xbf16>
    %cst_41 = arith.constant dense<0.000000e+00> : vector<32x256xf32>
    %81 = tpu.matmul %79, %80, %cst_41 {dimension_numbers = #tpu.dot_dimension_numbers<[1], [0], [0], [1], [0, 0, 1, 1], [], []>} : vector<32x512xbf16>, vector<512x256xbf16>, vector<32x256xf32> -> vector<32x256xf32>
    %c1 = arith.constant 1 : index
    %c0_42 = arith.constant 0 : index
    %c0_43 = arith.constant 0 : index
    %82 = vector.load %arg11[%c1, %c0_42, %c0_43] : memref<4x1x256xf32, #tpu.memory_space<vmem>>, vector<1x1x256xf32>
    %83 = vector.shape_cast %82 : vector<1x1x256xf32> to vector<1x256xf32>
    %84 = vector.broadcast %83 : vector<1x256xf32> to vector<32x256xf32>
    %85 = arith.addf %81, %84 : vector<32x256xf32>
    %cst_44 = arith.constant 0.000000e+00 : f32
    %86 = vector.broadcast %cst_44 : f32 to vector<32x256xf32>
    %87 = arith.cmpf oge, %85, %86 : vector<32x256xf32>
    %cst_45 = arith.constant 2.000000e-01 : f32
    %88 = vector.broadcast %cst_45 : f32 to vector<32x256xf32>
    %89 = arith.mulf %88, %85 : vector<32x256xf32>
    %90 = arith.select %87, %85, %89 : vector<32x256xi1>, vector<32x256xf32>
    %91 = arith.truncf %90 : vector<32x256xf32> to vector<32x256xbf16>
    %92 = vector.extract_strided_slice %90 {offsets = [0, 128], sizes = [32, 128], strides = [1, 1]} : vector<32x256xf32> to vector<32x128xf32>
    %c4_i32_46 = arith.constant 4 : i32
    %93 = tpu.dynamic_rotate %92 by %c4_i32_46 dim 0 : vector<32x128xf32>, i32 -> vector<32x128xf32>
    %cst_47 = arith.constant 0.000000e+00 : f32
    %94 = vector.broadcast %cst_47 : f32 to vector<32x128xf32>
    %95 = vector.shape_cast %37 : vector<32x1xi1> to vector<32x1xi1>
    %96 = vector.broadcast %95 : vector<32x1xi1> to vector<32x128xi1>
    %97 = arith.select %96, %93, %94 : vector<32x128xi1>, vector<32x128xf32>
    %98 = arith.truncf %97 : vector<32x128xf32> to vector<32x128xbf16>
    %99 = vector.extract_strided_slice %90 {offsets = [0, 0], sizes = [32, 128], strides = [1, 1]} : vector<32x256xf32> to vector<32x128xf32>
    %c28_i32_48 = arith.constant 28 : i32
    %100 = tpu.dynamic_rotate %99 by %c28_i32_48 dim 0 : vector<32x128xf32>, i32 -> vector<32x128xf32>
    %cst_49 = arith.constant 0.000000e+00 : f32
    %101 = vector.broadcast %cst_49 : f32 to vector<32x128xf32>
    %102 = vector.shape_cast %39 : vector<32x1xi1> to vector<32x1xi1>
    %103 = vector.broadcast %102 : vector<32x1xi1> to vector<32x128xi1>
    %104 = arith.select %103, %100, %101 : vector<32x128xi1>, vector<32x128xf32>
    %105 = arith.truncf %104 : vector<32x128xf32> to vector<32x128xbf16>
    %106 = tpu.concatenate %91, %98, %105 in 1 : vector<32x256xbf16>, vector<32x128xbf16>, vector<32x128xbf16> -> vector<32x512xbf16>
    %c0_50 = arith.constant 0 : index
    %c0_51 = arith.constant 0 : index
    %107 = vector.load %arg8[%c0_50, %c0_51] : memref<512x256xbf16, #tpu.memory_space<vmem>>, vector<512x256xbf16>
    %cst_52 = arith.constant dense<0.000000e+00> : vector<32x256xf32>
    %108 = tpu.matmul %106, %107, %cst_52 {dimension_numbers = #tpu.dot_dimension_numbers<[1], [0], [0], [1], [0, 0, 1, 1], [], []>} : vector<32x512xbf16>, vector<512x256xbf16>, vector<32x256xf32> -> vector<32x256xf32>
    %c2 = arith.constant 2 : index
    %c0_53 = arith.constant 0 : index
    %c0_54 = arith.constant 0 : index
    %109 = vector.load %arg11[%c2, %c0_53, %c0_54] : memref<4x1x256xf32, #tpu.memory_space<vmem>>, vector<1x1x256xf32>
    %110 = vector.shape_cast %109 : vector<1x1x256xf32> to vector<1x256xf32>
    %111 = vector.broadcast %110 : vector<1x256xf32> to vector<32x256xf32>
    %112 = arith.addf %108, %111 : vector<32x256xf32>
    %cst_55 = arith.constant 0.000000e+00 : f32
    %113 = vector.broadcast %cst_55 : f32 to vector<32x256xf32>
    %114 = arith.cmpf oge, %112, %113 : vector<32x256xf32>
    %cst_56 = arith.constant 2.000000e-01 : f32
    %115 = vector.broadcast %cst_56 : f32 to vector<32x256xf32>
    %116 = arith.mulf %115, %112 : vector<32x256xf32>
    %117 = arith.select %114, %112, %116 : vector<32x256xi1>, vector<32x256xf32>
    %118 = arith.truncf %117 : vector<32x256xf32> to vector<32x256xbf16>
    %119 = vector.extract_strided_slice %117 {offsets = [0, 128], sizes = [32, 128], strides = [1, 1]} : vector<32x256xf32> to vector<32x128xf32>
    %c4_i32_57 = arith.constant 4 : i32
    %120 = tpu.dynamic_rotate %119 by %c4_i32_57 dim 0 : vector<32x128xf32>, i32 -> vector<32x128xf32>
    %cst_58 = arith.constant 0.000000e+00 : f32
    %121 = vector.broadcast %cst_58 : f32 to vector<32x128xf32>
    %122 = vector.shape_cast %37 : vector<32x1xi1> to vector<32x1xi1>
    %123 = vector.broadcast %122 : vector<32x1xi1> to vector<32x128xi1>
    %124 = arith.select %123, %120, %121 : vector<32x128xi1>, vector<32x128xf32>
    %125 = arith.truncf %124 : vector<32x128xf32> to vector<32x128xbf16>
    %126 = vector.extract_strided_slice %117 {offsets = [0, 0], sizes = [32, 128], strides = [1, 1]} : vector<32x256xf32> to vector<32x128xf32>
    %c28_i32_59 = arith.constant 28 : i32
    %127 = tpu.dynamic_rotate %126 by %c28_i32_59 dim 0 : vector<32x128xf32>, i32 -> vector<32x128xf32>
    %cst_60 = arith.constant 0.000000e+00 : f32
    %128 = vector.broadcast %cst_60 : f32 to vector<32x128xf32>
    %129 = vector.shape_cast %39 : vector<32x1xi1> to vector<32x1xi1>
    %130 = vector.broadcast %129 : vector<32x1xi1> to vector<32x128xi1>
    %131 = arith.select %130, %127, %128 : vector<32x128xi1>, vector<32x128xf32>
    %132 = arith.truncf %131 : vector<32x128xf32> to vector<32x128xbf16>
    %133 = tpu.concatenate %118, %125, %132 in 1 : vector<32x256xbf16>, vector<32x128xbf16>, vector<32x128xbf16> -> vector<32x512xbf16>
    %c0_61 = arith.constant 0 : index
    %c0_62 = arith.constant 0 : index
    %134 = vector.load %arg9[%c0_61, %c0_62] : memref<512x256xbf16, #tpu.memory_space<vmem>>, vector<512x256xbf16>
    %cst_63 = arith.constant dense<0.000000e+00> : vector<32x256xf32>
    %135 = tpu.matmul %133, %134, %cst_63 {dimension_numbers = #tpu.dot_dimension_numbers<[1], [0], [0], [1], [0, 0, 1, 1], [], []>} : vector<32x512xbf16>, vector<512x256xbf16>, vector<32x256xf32> -> vector<32x256xf32>
    %c3 = arith.constant 3 : index
    %c0_64 = arith.constant 0 : index
    %c0_65 = arith.constant 0 : index
    %136 = vector.load %arg11[%c3, %c0_64, %c0_65] : memref<4x1x256xf32, #tpu.memory_space<vmem>>, vector<1x1x256xf32>
    %137 = vector.shape_cast %136 : vector<1x1x256xf32> to vector<1x256xf32>
    %138 = vector.broadcast %137 : vector<1x256xf32> to vector<32x256xf32>
    %139 = arith.addf %135, %138 : vector<32x256xf32>
    %cst_66 = arith.constant 0.000000e+00 : f32
    %140 = vector.broadcast %cst_66 : f32 to vector<32x256xf32>
    %141 = arith.cmpf oge, %139, %140 : vector<32x256xf32>
    %cst_67 = arith.constant 2.000000e-01 : f32
    %142 = vector.broadcast %cst_67 : f32 to vector<32x256xf32>
    %143 = arith.mulf %142, %139 : vector<32x256xf32>
    %144 = arith.select %141, %139, %143 : vector<32x256xi1>, vector<32x256xf32>
    %145 = arith.truncf %144 : vector<32x256xf32> to vector<32x256xbf16>
    %146 = vector.extract_strided_slice %144 {offsets = [0, 0], sizes = [32, 128], strides = [1, 1]} : vector<32x256xf32> to vector<32x128xf32>
    %c28_i32_68 = arith.constant 28 : i32
    %147 = tpu.dynamic_rotate %146 by %c28_i32_68 dim 0 : vector<32x128xf32>, i32 -> vector<32x128xf32>
    %cst_69 = arith.constant 0.000000e+00 : f32
    %148 = vector.broadcast %cst_69 : f32 to vector<32x128xf32>
    %149 = vector.shape_cast %39 : vector<32x1xi1> to vector<32x1xi1>
    %150 = vector.broadcast %149 : vector<32x1xi1> to vector<32x128xi1>
    %151 = arith.select %150, %147, %148 : vector<32x128xi1>, vector<32x128xf32>
    %152 = arith.truncf %151 : vector<32x128xf32> to vector<32x128xbf16>
    %153 = tpu.concatenate %145, %152 in 1 : vector<32x256xbf16>, vector<32x128xbf16> -> vector<32x384xbf16>
    %c0_70 = arith.constant 0 : index
    %c0_71 = arith.constant 0 : index
    %154 = vector.load %arg10[%c0_70, %c0_71] : memref<384x32xbf16, #tpu.memory_space<vmem>>, vector<384x32xbf16>
    %cst_72 = arith.constant dense<0.000000e+00> : vector<32x32xf32>
    %155 = tpu.matmul %153, %154, %cst_72 {dimension_numbers = #tpu.dot_dimension_numbers<[1], [0], [0], [1], [0, 0, 1, 1], [], []>} : vector<32x384xbf16>, vector<384x32xbf16>, vector<32x32xf32> -> vector<32x32xf32>
    %c0_73 = arith.constant 0 : index
    %c0_74 = arith.constant 0 : index
    %156 = vector.load %arg12[%c0_73, %c0_74] : memref<1x32xf32, #tpu.memory_space<vmem>>, vector<1x32xf32>
    %157 = vector.broadcast %156 : vector<1x32xf32> to vector<32x32xf32>
    %158 = arith.addf %155, %157 : vector<32x32xf32>
    %159 = arith.negf %158 : vector<32x32xf32>
    %160 = math.exp %159 : vector<32x32xf32>
    %cst_75 = arith.constant 1.000000e+00 : f32
    %161 = vector.broadcast %cst_75 : f32 to vector<32x32xf32>
    %162 = arith.addf %161, %160 : vector<32x32xf32>
    %163 = arith.divf %161, %162 : vector<32x32xf32>
    %c0_76 = arith.constant 0 : index
    %c0_77 = arith.constant 0 : index
    %164 = vector.load %arg19[%c0_76, %c0_77] : memref<32x32xf32, #tpu.memory_space<vmem>>, vector<32x32xf32>
    tpu.vector_store %arg19[%c0_76, %c0_77], %163 {strides = array<i32>} : memref<32x32xf32, #tpu.memory_space<vmem>>, vector<32x32xf32>,
    %c0_78 = arith.constant 0 : index
    %c0_79 = arith.constant 0 : index
    %165 = vector.load %arg13[%c0_78, %c0_79] : memref<256x128xf32, #tpu.memory_space<vmem>>, vector<256x128xf32>
    %cst_80 = arith.constant dense<0.000000e+00> : vector<4x128xf32>
    %166 = tpu.matmul %0, %165, %cst_80 {dimension_numbers = #tpu.dot_dimension_numbers<[1], [0], [0], [1], [0, 0, 1, 1], [], []>} : vector<4x256xf32>, vector<256x128xf32>, vector<4x128xf32> -> vector<4x128xf32>
    %c0_81 = arith.constant 0 : index
    %c0_82 = arith.constant 0 : index
    %167 = vector.load %arg14[%c0_81, %c0_82] : memref<1x128xf32, #tpu.memory_space<vmem>>, vector<1x128xf32>
    %168 = vector.broadcast %167 : vector<1x128xf32> to vector<4x128xf32>
    %169 = arith.addf %166, %168 : vector<4x128xf32>
    %cst_83 = arith.constant 0.000000e+00 : f32
    %170 = vector.broadcast %cst_83 : f32 to vector<4x128xf32>
    %171 = arith.maximumf %169, %170 : vector<4x128xf32>
    %c0_84 = arith.constant 0 : index
    %c0_85 = arith.constant 0 : index
    %172 = vector.load %arg15[%c0_84, %c0_85] : memref<128x64xf32, #tpu.memory_space<vmem>>, vector<128x64xf32>
    %cst_86 = arith.constant dense<0.000000e+00> : vector<4x64xf32>
    %173 = tpu.matmul %171, %172, %cst_86 {dimension_numbers = #tpu.dot_dimension_numbers<[1], [0], [0], [1], [0, 0, 1, 1], [], []>} : vector<4x128xf32>, vector<128x64xf32>, vector<4x64xf32> -> vector<4x64xf32>
    %c0_87 = arith.constant 0 : index
    %c0_88 = arith.constant 0 : index
    %174 = vector.load %arg16[%c0_87, %c0_88] : memref<1x64xf32, #tpu.memory_space<vmem>>, vector<1x64xf32>
    %175 = vector.broadcast %174 : vector<1x64xf32> to vector<4x64xf32>
    %176 = arith.addf %173, %175 : vector<4x64xf32>
    %cst_89 = arith.constant 0.000000e+00 : f32
    %177 = vector.broadcast %cst_89 : f32 to vector<4x64xf32>
    %178 = arith.maximumf %176, %177 : vector<4x64xf32>
    %c0_90 = arith.constant 0 : index
    %c0_91 = arith.constant 0 : index
    %179 = vector.load %arg17[%c0_90, %c0_91] : memref<64x128xf32, #tpu.memory_space<vmem>>, vector<64x128xf32>
    %cst_92 = arith.constant dense<0.000000e+00> : vector<4x128xf32>
    %180 = tpu.matmul %178, %179, %cst_92 {dimension_numbers = #tpu.dot_dimension_numbers<[1], [0], [0], [1], [0, 0, 1, 1], [], []>} : vector<4x64xf32>, vector<64x128xf32>, vector<4x128xf32> -> vector<4x128xf32>
    %c0_93 = arith.constant 0 : index
    %c0_94 = arith.constant 0 : index
    %181 = vector.load %arg18[%c0_93, %c0_94] : memref<1x128xf32, #tpu.memory_space<vmem>>, vector<1x128xf32>
    %182 = vector.broadcast %181 : vector<1x128xf32> to vector<4x128xf32>
    %183 = arith.addf %180, %182 : vector<4x128xf32>
    %c0_95 = arith.constant 0 : index
    %c0_96 = arith.constant 0 : index
    %184 = vector.load %arg20[%c0_95, %c0_96] : memref<4x128xf32, #tpu.memory_space<vmem>>, vector<4x128xf32>
    tpu.vector_store %arg20[%c0_95, %c0_96], %183 {strides = array<i32>} : memref<4x128xf32, #tpu.memory_space<vmem>>, vector<4x128xf32>,
    return
  }
  func.func @transform_0(%arg0: i32) -> (i32, i32) {
    %c0_i32 = arith.constant 0 : i32
    %c0_i32_0 = arith.constant 0 : i32
    return %arg0, %c0_i32 : i32, i32
  }
  func.func @transform_1(%arg0: i32) -> (i32, i32) {
    %c0_i32 = arith.constant 0 : i32
    %c0_i32_0 = arith.constant 0 : i32
    return %arg0, %c0_i32 : i32, i32
  }
  func.func @transform_2(%arg0: i32) -> (i32, i32) {
    %c0_i32 = arith.constant 0 : i32
    %c0_i32_0 = arith.constant 0 : i32
    %c0_i32_1 = arith.constant 0 : i32
    return %c0_i32, %c0_i32_0 : i32, i32
  }
  func.func @transform_3(%arg0: i32) -> (i32, i32) {
    %c0_i32 = arith.constant 0 : i32
    %c0_i32_0 = arith.constant 0 : i32
    %c0_i32_1 = arith.constant 0 : i32
    return %c0_i32, %c0_i32_0 : i32, i32
  }
  func.func @transform_4(%arg0: i32) -> (i32, i32) {
    %c0_i32 = arith.constant 0 : i32
    %c0_i32_0 = arith.constant 0 : i32
    %c0_i32_1 = arith.constant 0 : i32
    return %c0_i32, %c0_i32_0 : i32, i32
  }
  func.func @transform_5(%arg0: i32) -> (i32, i32) {
    %c0_i32 = arith.constant 0 : i32
    %c0_i32_0 = arith.constant 0 : i32
    %c0_i32_1 = arith.constant 0 : i32
    return %c0_i32, %c0_i32_0 : i32, i32
  }
  func.func @transform_6(%arg0: i32) -> (i32, i32) {
    %c0_i32 = arith.constant 0 : i32
    %c0_i32_0 = arith.constant 0 : i32
    %c0_i32_1 = arith.constant 0 : i32
    return %c0_i32, %c0_i32_0 : i32, i32
  }
  func.func @transform_7(%arg0: i32) -> (i32, i32) {
    %c0_i32 = arith.constant 0 : i32
    %c0_i32_0 = arith.constant 0 : i32
    %c0_i32_1 = arith.constant 0 : i32
    return %c0_i32, %c0_i32_0 : i32, i32
  }
  func.func @transform_8(%arg0: i32) -> (i32, i32) {
    %c0_i32 = arith.constant 0 : i32
    %c0_i32_0 = arith.constant 0 : i32
    %c0_i32_1 = arith.constant 0 : i32
    return %c0_i32, %c0_i32_0 : i32, i32
  }
  func.func @transform_9(%arg0: i32) -> (i32, i32) {
    %c0_i32 = arith.constant 0 : i32
    %c0_i32_0 = arith.constant 0 : i32
    %c0_i32_1 = arith.constant 0 : i32
    return %c0_i32, %c0_i32_0 : i32, i32
  }
  func.func @transform_10(%arg0: i32) -> (i32, i32, i32) {
    %c0_i32 = arith.constant 0 : i32
    %c0_i32_0 = arith.constant 0 : i32
    %c0_i32_1 = arith.constant 0 : i32
    %c0_i32_2 = arith.constant 0 : i32
    return %c0_i32, %c0_i32_0, %c0_i32_1 : i32, i32, i32
  }
  func.func @transform_11(%arg0: i32) -> (i32, i32) {
    %c0_i32 = arith.constant 0 : i32
    %c0_i32_0 = arith.constant 0 : i32
    %c0_i32_1 = arith.constant 0 : i32
    return %c0_i32, %c0_i32_0 : i32, i32
  }
  func.func @transform_12(%arg0: i32) -> (i32, i32) {
    %c0_i32 = arith.constant 0 : i32
    %c0_i32_0 = arith.constant 0 : i32
    %c0_i32_1 = arith.constant 0 : i32
    return %c0_i32, %c0_i32_0 : i32, i32
  }
  func.func @transform_13(%arg0: i32) -> (i32, i32) {
    %c0_i32 = arith.constant 0 : i32
    %c0_i32_0 = arith.constant 0 : i32
    %c0_i32_1 = arith.constant 0 : i32
    return %c0_i32, %c0_i32_0 : i32, i32
  }
  func.func @transform_14(%arg0: i32) -> (i32, i32) {
    %c0_i32 = arith.constant 0 : i32
    %c0_i32_0 = arith.constant 0 : i32
    %c0_i32_1 = arith.constant 0 : i32
    return %c0_i32, %c0_i32_0 : i32, i32
  }
  func.func @transform_15(%arg0: i32) -> (i32, i32) {
    %c0_i32 = arith.constant 0 : i32
    %c0_i32_0 = arith.constant 0 : i32
    %c0_i32_1 = arith.constant 0 : i32
    return %c0_i32, %c0_i32_0 : i32, i32
  }
  func.func @transform_16(%arg0: i32) -> (i32, i32) {
    %c0_i32 = arith.constant 0 : i32
    %c0_i32_0 = arith.constant 0 : i32
    %c0_i32_1 = arith.constant 0 : i32
    return %c0_i32, %c0_i32_0 : i32, i32
  }
  func.func @transform_17(%arg0: i32) -> (i32, i32) {
    %c0_i32 = arith.constant 0 : i32
    %c0_i32_0 = arith.constant 0 : i32
    %c0_i32_1 = arith.constant 0 : i32
    return %c0_i32, %c0_i32_0 : i32, i32
  }
  func.func @transform_18(%arg0: i32) -> (i32, i32) {
    %c0_i32 = arith.constant 0 : i32
    %c0_i32_0 = arith.constant 0 : i32
    return %arg0, %c0_i32 : i32, i32
  }
  func.func @transform_19(%arg0: i32) -> (i32, i32) {
    %c0_i32 = arith.constant 0 : i32
    %c0_i32_0 = arith.constant 0 : i32
    return %arg0, %c0_i32 : i32, i32
  }
}

</mosaic_0001>

<bundles_post_ra>
// kernel: decoder_forward.1
= control target key start
LH: loop header
LB: loop body
LE: loop exit
PB: predicated region body
PF: predicated region fallthrough
CT: control target
= control target key end

     0   :  { %s8399_s0 = inlined_call_operand.vmem [shape: f32[4,256], index: 0, kind: input, shape index: {}]   ;;  %s8400_s1 = inlined_call_operand.vmem [shape: f32[4,6], index: 1, kind: input, shape index: {}]   ;;  %s8401_s2 = inlined_call_operand.hbm [shape: bf16[256,2048], index: 2, kind: input, shape index: {}]   ;;  %s8402_s3 = inlined_call_operand.vmem [shape: bf16[6,2048], index: 3, kind: input, shape index: {}]   ;;  %s8403_s4 = inlined_call_operand.vmem [shape: f32[1,2048], index: 4, kind: input, shape index: {}]   ;;  %s8404_s5 = inlined_call_operand.hbm [shape: bf16[768,256], index: 5, kind: input, shape index: {}]   ;;  %s8405_s6 = inlined_call_operand.hbm [shape: bf16[512,256], index: 6, kind: input, shape index: {}]   ;;  %s8406_s7 = inlined_call_operand.hbm [shape: bf16[512,256], index: 7, kind: input, shape index: {}]   ;;  %s8407_s8 = inlined_call_operand.hbm [shape: bf16[512,256], index: 8, kind: input, shape index: {}]   ;;  %s8408_s9 = inlined_call_operand.vmem [shape: bf16[384,32], index: 9, kind: input, shape index: {}]   ;;  %s8409_s10 = inlined_call_operand.vmem [shape: f32[4,1,256], index: 10, kind: input, shape index: {}]   ;;  %s8410_s11 = inlined_call_operand.vmem [shape: f32[1,32], index: 11, kind: input, shape index: {}]   ;;  %s8411_s12 = inlined_call_operand.vmem [shape: f32[256,128], index: 12, kind: input, shape index: {}]   ;;  %s8412_s13 = inlined_call_operand.vmem [shape: f32[1,128], index: 13, kind: input, shape index: {}]   ;;  %s8413_s14 = inlined_call_operand.vmem [shape: f32[128,64], index: 14, kind: input, shape index: {}]   ;;  %s8414_s15 = inlined_call_operand.vmem [shape: f32[1,64], index: 15, kind: input, shape index: {}]   ;;  %s8415_s16 = inlined_call_operand.vmem [shape: f32[64,128], index: 16, kind: input, shape index: {}]   ;;  %s8416_s17 = inlined_call_operand.vmem [shape: f32[1,128], index: 17, kind: input, shape index: {}]   ;;  %s8417_s18 = inlined_call_operand.vmem [shape: f32[32,32], index: 18, kind: output, shape index: {0}]   ;;  %s8418_s19 = inlined_call_operand.hbm [shape: f32[4,128], index: 19, kind: output, shape index: {1}]  }
   0x1   :  { %8425 = sst [smem:[#allocation17_spill]] %s8399_s0 }
   0x2   :  { %8426 = sst [smem:[#allocation18_spill]] %s8400_s1 }
   0x3   :  { %8427 = sst [smem:[#allocation19_spill]] %s8401_s2 }
   0x4   :  { %8428 = sst [smem:[#allocation20_spill]] %s8402_s3 }
   0x5   :  { %8429 = sst [smem:[#allocation21_spill]] %s8418_s19 }
   0x6   :  { %25 = vsyncpa [#allocation4], 0 }
   0x7   :  { %26 = vsyncpa [#allocation7], 0 }
   0x8   :  { %27 = vsyncpa [#allocation10], 0 }
   0x9   :  { %28 = vsyncpa [#allocation5], 0  ;;  %s7412_s0 = smov [#allocation6]   ;;  %s7272_s1 = scalar_lea.hbm %s8404_s5, 12288 }
   0xa   :  { %s54_s30 = sshll.u32 %s7412_s0, 4  ;;  %p7273_p0 = scmp.ne.s32.totalorder %s8404_s5, %s7272_s1  ;;  %s55_s30 = int_to_ptr.vmem [resolvable:$true] %s54_s30 }
   0xb   :  { %p7276_p1 = scmp.lt.u32.totalorder %s7272_s1, %s8404_s5 }
   0xd   :  { %p7278_p2 = pnand %p7276_p1, %p7273_p0 }
   0xf   :  { %7281 = shalt.err (!%p7278_p2)
}
  0x10   :  { %s7282_s25 = scalar_lea.vmem %s55_s30, 12288  ;;  %p7287_p4 = scmp.lt.s32.totalorder %s55_s30, %s55_s30 }
  0x11   :  { %p7283_p3 = scmp.ne.s32.totalorder %s55_s30, %s7282_s25  ;;  %p7288_p5 = scmp.lt.s32.totalorder %s7282_s25, %s7282_s25 }
  0x13   :  { %p7289_p6 = por %p7288_p5, %p7287_p4 }
  0x15   :  { %p7290_p7 = pnand %p7289_p6, %p7283_p3 }
  0x17   :  { %7293 = shalt.err (!%p7290_p7)
}
  0x18   :  { %s8423_s3 = smov 128   ;;  %s7414_s26 = smov 8  }
  0x19   :  { %60 = dma.hbm_to_vmem [thread:$0]  %s8404_s5, 12288, %s55_s30, [#allocation7], %s8423_s3, %s8423_s3, %s7414_s26  }
  0x1a   :  { %s7415_s29 = smov [#allocation9]   ;;  %s7416_s20 = smov [#allocation3]  }
  0x1b   :  { %s78_s0 = sshll.u32 %s7415_s29, 4  ;;  %s38_s21 = sshll.u32 %s7416_s20, 4  ;;  %s79_s0 = int_to_ptr.vmem [resolvable:$true] %s78_s0  ;;  %s39_s21 = int_to_ptr.vmem [resolvable:$true] %s38_s21 }
  0x1c   :  { %s7294_s2 = scalar_lea.hbm %s8406_s7, 8192 }
  0x1d   :  { %p7295_p8 = scmp.ne.s32.totalorder %s8406_s7, %s7294_s2  ;;  %p7298_p9 = scmp.lt.u32.totalorder %s7294_s2, %s8406_s7 }
  0x1f   :  { %p7300_p10 = pnand %p7298_p9, %p7295_p8 }
  0x21   :  { %7303 = shalt.err (!%p7300_p10)
}
  0x22   :  { %s7304_s5 = scalar_lea.vmem %s79_s0, 8192  ;;  %p7309_p12 = scmp.lt.s32.totalorder %s79_s0, %s79_s0 }
  0x23   :  { %p7305_p11 = scmp.ne.s32.totalorder %s79_s0, %s7304_s5  ;;  %p7310_p13 = scmp.lt.s32.totalorder %s7304_s5, %s7304_s5 }
  0x25   :  { %p7311_p0 = por %p7310_p13, %p7309_p12 }
  0x27   :  { %p7312_p1 = pnand %p7311_p0, %p7305_p11 }
  0x29   :  { %7315 = shalt.err (!%p7312_p1)
}
  0x2a   :  { %84 = dma.hbm_to_vmem [thread:$0]  %s8406_s7, 8192, %s79_s0, [#allocation10], %s8423_s3, %s8423_s3, %s7414_s26  }
  0x2b   :  { %s8430_s29 = sld [smem:[#allocation19_spill]] }
  0x31   :  { %s7316_s20 = scalar_lea.hbm %s8430_s29, 32768 }
  0x32   :  { %p7317_p2 = scmp.ne.s32.totalorder %s8430_s29, %s7316_s20  ;;  %p7320_p3 = scmp.lt.u32.totalorder %s7316_s20, %s8430_s29 }
  0x34   :  { %p7322_p4 = pnand %p7320_p3, %p7317_p2 }
  0x36   :  { %7325 = shalt.err (!%p7322_p4)
}
  0x37   :  { %s7326_s24 = scalar_lea.vmem %s39_s21, 32768  ;;  %p7331_p6 = scmp.lt.s32.totalorder %s39_s21, %s39_s21 }
  0x38   :  { %p7327_p5 = scmp.ne.s32.totalorder %s39_s21, %s7326_s24  ;;  %p7332_p7 = scmp.lt.s32.totalorder %s7326_s24, %s7326_s24 }
  0x3a   :  { %p7333_p8 = por %p7332_p7, %p7331_p6 }
  0x3c   :  { %p7334_p9 = pnand %p7333_p8, %p7327_p5 }
  0x3e   :  { %7337 = shalt.err (!%p7334_p9)
}
  0x3f   :  { %s7417_s7 = smov 1024   ;;  %s7418_s0 = smov 64  }
  0x40   :  { %44 = dma.hbm_to_vmem [thread:$0]  %s8430_s29, 32768, %s39_s21, [#allocation4], %s7417_s7, %s7417_s7, %s7418_s0  }
  0x41   :  { %s7419_s30 = smov [#allocation8]   ;;  %s7420_s28 = smov [#allocation11]  }
  0x42   :  { %s66_s27 = sshll.u32 %s7419_s30, 4  ;;  %s90_s19 = sshll.u32 %s7420_s28, 4  ;;  %s67_s27 = int_to_ptr.vmem [resolvable:$true] %s66_s27  ;;  %s91_s19 = int_to_ptr.vmem [resolvable:$true] %s90_s19 }
  0x43   :  { %s7338_s22 = scalar_lea.hbm %s8405_s6, 8192 }
  0x44   :  { %p7339_p10 = scmp.ne.s32.totalorder %s8405_s6, %s7338_s22  ;;  %p7342_p11 = scmp.lt.u32.totalorder %s7338_s22, %s8405_s6 }
  0x46   :  { %p7344_p12 = pnand %p7342_p11, %p7339_p10 }
  0x48   :  { %7347 = shalt.err (!%p7344_p12)
}
  0x49   :  { %s7348_s21 = scalar_lea.vmem %s67_s27, 8192  ;;  %p7353_p0 = scmp.lt.s32.totalorder %s67_s27, %s67_s27 }
  0x4a   :  { %p7349_p13 = scmp.ne.s32.totalorder %s67_s27, %s7348_s21  ;;  %p7354_p1 = scmp.lt.s32.totalorder %s7348_s21, %s7348_s21 }
  0x4c   :  { %p7355_p2 = por %p7354_p1, %p7353_p0 }
  0x4e   :  { %p7356_p3 = pnand %p7355_p2, %p7349_p13 }
  0x50   :  { %7359 = shalt.err (!%p7356_p3)
}
  0x51   :  { %s8431_s29 = smov 128   ;;  %s7360_s5 = scalar_lea.hbm %s8407_s8, 8192 }
  0x52   :  { %72 = dma.hbm_to_vmem [thread:$0]  %s8405_s6, 8192, %s67_s27, [#allocation7], %s8431_s29, %s8431_s29, %s7414_s26  }
  0x53   :  { %p7361_p4 = scmp.ne.s32.totalorder %s8407_s8, %s7360_s5  ;;  %p7364_p5 = scmp.lt.u32.totalorder %s7360_s5, %s8407_s8 }
  0x55   :  { %p7366_p6 = pnand %p7364_p5, %p7361_p4 }
  0x57   :  { %7369 = shalt.err (!%p7366_p6)
}
  0x58   :  { %s7370_s22 = scalar_lea.vmem %s91_s19, 8192  ;;  %p7375_p8 = scmp.lt.s32.totalorder %s91_s19, %s91_s19 }
  0x59   :  { %p7371_p7 = scmp.ne.s32.totalorder %s91_s19, %s7370_s22  ;;  %p7376_p9 = scmp.lt.s32.totalorder %s7370_s22, %s7370_s22 }
  0x5b   :  { %p7377_p10 = por %p7376_p9, %p7375_p8 }
  0x5d   :  { %p7378_p11 = pnand %p7377_p10, %p7371_p7 }
  0x5f   :  { %7381 = shalt.err (!%p7378_p11)
}
  0x60   :  { %96 = dma.hbm_to_vmem [thread:$0]  %s8407_s8, 8192, %s91_s19, [#allocation10], %s8431_s29, %s8431_s29, %s7414_s26  }
  0x61   :  { %7404 = dma.done.wait [#allocation4], 32768  }
  0x62   :  { %7405 = vsyncadd [#allocation4], 4294934528 }
  0x63   :  { %7406 = dma.done.wait [#allocation7], 20480  }
  0x64   :  { %7407 = vsyncadd [#allocation7], 4294946816 }
  0x65   :  { %7408 = dma.done.wait [#allocation10], 16384  }
  0x66   :  { %7409 = vsyncadd [#allocation10], 4294950912  ;;  %v7421_v0 = vmov 0   ;;  %vm447_vm0 = vcmask 1042432   ;;  %s8432_s24 = sld [smem:[#allocation20_spill]]  ;;  %s8433_s19 = sld [smem:[#allocation18_spill]] }
  0x67   :  { %528 = vmatprep.mubr.bf16.mxu1 %v7421_v0  ;;  %610 = vmatprep.mubr.bf16.mxu0 %v7421_v0  ;;  %vm443_vm1 = vcmask 48128   ;;  %v138_v25 = vld [vmem:[#allocation3] sm:$0xff]  ;;  %s8434_s21 = sld [smem:[#allocation17_spill]]  ;;  %v139_v50 = vld [vmem:[#allocation3 + $0x8] sm:$0xff] }
  0x68   :  { %v146_v26 = vld [vmem:[#allocation3 + $0x40] sm:$0xff]  ;;  %v147_v51 = vld [vmem:[#allocation3 + $0x48] sm:$0xff] }
  0x69   :  { %v5842_v30 = vcombine.high %v138_v25, %v146_v26  ;;  %v154_v33 = vld [vmem:[#allocation3 + $0x80] sm:$0xff]  ;;  %v5841_v36 = vcombine.low %v138_v25, %v146_v26  ;;  %v5844_v57 = vcombine.high %v139_v50, %v147_v51  ;;  %v155_v62 = vld [vmem:[#allocation3 + $0x88] sm:$0xff] }
  0x6a   :  { %v162_v34 = vld [vmem:[#allocation3 + $0xc0] sm:$0xff]  ;;  %v163_v63 = vld [vmem:[#allocation3 + $0xc8] sm:$0xff] }
  0x6b   :  { %v5858_v38 = vcombine.high %v154_v33, %v162_v34  ;;  %v170_v40 = vld [vmem:[#allocation3 + $0x100] sm:$0xff]  ;;  %v5857_v44 = vcombine.low %v154_v33, %v162_v34 }
  0x6c   :  { %v395_v1 = vld [vmem:[%s8432_s24] sm:$0x77]  ;;  %v397_v2 = vld [vmem:[%s8432_s24 + $0x10] sm:$0x77]  ;;  %v396_v8 = vld [vmem:[%s8432_s24 + $0x8] sm:$0x77] }
  0x6d   :  { %v132_v3 = vld [vmem:[%s8433_s19] sm:$0xf]  ;;  %v5810_v4 = vcombine.high %v395_v1, %v395_v1  ;;  %v5814_v5 = vcombine.high %v397_v2, %v397_v2  ;;  %v5809_v6 = vcombine.low %v395_v1, %v395_v1  ;;  %v5813_v7 = vcombine.low %v397_v2, %v397_v2  ;;  %v398_v17 = vld [vmem:[%s8432_s24 + $0x18] sm:$0x77]  ;;  %v401_v18 = vld [vmem:[%s8432_s24 + $0x30] sm:$0x77] }
  0x6e   :  { %v399_v9 = vld [vmem:[%s8432_s24 + $0x20] sm:$0x77]  ;;  %v5812_v10 = vcombine.high %v396_v8, %v396_v8  ;;  %v5811_v11 = vcombine.low %v396_v8, %v396_v8  ;;  %v7620_v15 = vpack.c.bf16 %v132_v3, %v132_v3  ;;  %v5816_v21 = vcombine.high %v398_v17, %v398_v17  ;;  %v400_v27 = vld [vmem:[%s8432_s24 + $0x28] sm:$0x77]  ;;  %v402_v35 = vld [vmem:[%s8432_s24 + $0x38] sm:$0x77] }
  0x6f   :  { %v5818_v12 = vcombine.high %v399_v9, %v399_v9  ;;  %5825 = vmatprep.subr.msk.bf16.mxu1 %vm447_vm0, %v5810_v4  ;;  %5829 = vmatprep.subr.msk.bf16.mxu0 %vm447_vm0, %v5814_v5  ;;  %v449_v13 = vsel %vm447_vm0, %v5809_v6, 0  ;;  %v461_v14 = vsel %vm447_vm0, %v5813_v7, 0  ;;  %v5817_v16 = vcombine.low %v399_v9, %v399_v9  ;;  %v7659_v39 = vld [vmem:[%s8434_s21] sm:$0xff]  ;;  %v171_v7 = vld [vmem:[#allocation3 + $0x108] sm:$0xff] }
  0x70   :  { %497 = vmatpush1.bf16.msra.mxu1 %v449_v13  ;;  %579 = vmatpush1.bf16.msra.mxu0 %v461_v14  ;;  %v455_v19 = vsel %vm447_vm0, %v5811_v11, 0  ;;  %v5822_v22 = vcombine.high %v401_v18, %v401_v18  ;;  %v5815_v23 = vcombine.low %v398_v17, %v398_v17  ;;  %v5821_v24 = vcombine.low %v401_v18, %v401_v18  ;;  %v178_v41 = vld [vmem:[#allocation3 + $0x140] sm:$0xff]  ;;  %v179_v8 = vld [vmem:[#allocation3 + $0x148] sm:$0xff] }
  0x71   :  { %5827 = vmatprep.subr.msk.bf16.mxu1 %vm447_vm0, %v5812_v10  ;;  %5833 = vmatprep.subr.msk.bf16.mxu0 %vm447_vm0, %v5818_v12  ;;  %v473_v20 = vsel %vm447_vm0, %v5817_v16, 0  ;;  %v5820_v31 = vcombine.high %v400_v27, %v400_v27  ;;  %v5819_v32 = vcombine.low %v400_v27, %v400_v27  ;;  %v5824_v42 = vcombine.high %v402_v35, %v402_v35  ;;  %v186_v48 = vld [vmem:[#allocation3 + $0x180] sm:$0xff]  ;;  %v187_v14 = vld [vmem:[#allocation3 + $0x188] sm:$0xff] }
  0x72   :  { %v467_v28 = vsel %vm447_vm0, %v5815_v23, 0  ;;  %v485_v29 = vsel %vm447_vm0, %v5821_v24, 0  ;;  %v7663_v43 = vcombine.high %v7659_v39, %v7659_v39  ;;  %v5874_v46 = vcombine.high %v170_v40, %v178_v41  ;;  %v194_v49 = vld [vmem:[#allocation3 + $0x1c0] sm:$0xff]  ;;  %v195_v16 = vld [vmem:[#allocation3 + $0x1c8] sm:$0xff] }
  0x73   :  { %5826 = vmatmul.mubr.msk.bf16.vlgmr.msra.gmra.mrb[0].mxu1 %vm443_vm1, %v7620_v15  ;;  %5830 = vmatmul.mubr.msk.bf16.vlgmr.msra.gmra.mrb[0].mxu0 %vm443_vm1, %v7620_v15  ;;  %v479_v37 = vsel %vm447_vm0, %v5819_v32, 0  ;;  %v5823_v47 = vcombine.low %v402_v35, %v402_v35  ;;  %v5873_v52 = vcombine.low %v170_v40, %v178_v41  ;;  %v5890_v54 = vcombine.high %v186_v48, %v194_v49  ;;  %v202_v55 = vld [vmem:[#allocation3 + $0x200] sm:$0xff]  ;;  %v211_v23 = vld [vmem:[#allocation3 + $0x248] sm:$0xff] }
  0x74   :  { %538 = vmatpush1.bf16.msra.mxu1 %v455_v19  ;;  %661 = vmatpush1.bf16.msra.mxu0 %v473_v20  ;;  %v7671_v45 = vpack.c.bf16 %v7663_v43, %v7663_v43  ;;  %v210_v56 = vld [vmem:[#allocation3 + $0x240] sm:$0xff]  ;;  %v5889_v58 = vcombine.low %v186_v48, %v194_v49  ;;  %v5843_v2 = vcombine.low %v139_v50, %v147_v51  ;;  %v243_v40 = vld [vmem:[#allocation3 + $0x348] sm:$0xff] }
  0x75   :  { %569 = vmatprep.mubr.bf16.mxu1 %v7421_v0  ;;  %692 = vmatprep.mubr.bf16.mxu0 %v7421_v0  ;;  %v491_v53 = vsel %vm447_vm0, %v5823_v47, 0  ;;  %v5906_v59 = vcombine.high %v202_v55, %v210_v56  ;;  %v218_v60 = vld [vmem:[#allocation3 + $0x280] sm:$0xff]  ;;  %v5905_v1 = vcombine.low %v202_v55, %v210_v56  ;;  %v5860_v4 = vcombine.high %v155_v62, %v163_v63  ;;  %v251_v47 = vld [vmem:[#allocation3 + $0x388] sm:$0xff] }
  0x76   :  { %5831 = vmatprep.subr.msk.bf16.mxu1 %vm447_vm0, %v5816_v21  ;;  %5837 = vmatprep.subr.msk.bf16.mxu0 %vm447_vm0, %v5822_v22  ;;  %v226_v61 = vld [vmem:[#allocation3 + $0x2c0] sm:$0xff]  ;;  %v5859_v9 = vcombine.low %v155_v62, %v163_v63  ;;  %v5876_v11 = vcombine.high %v171_v7, %v179_v8  ;;  %v5875_v18 = vcombine.low %v171_v7, %v179_v8  ;;  %v203_v22 = vld [vmem:[#allocation3 + $0x208] sm:$0xff] }
  0x77   :  { %v5922_v3 = vcombine.high %v218_v60, %v226_v61  ;;  %v234_v5 = vld [vmem:[#allocation3 + $0x300] sm:$0xff]  ;;  %v5892_v19 = vcombine.high %v187_v14, %v195_v16  ;;  %v5891_v25 = vcombine.low %v187_v14, %v195_v16  ;;  %v5908_v27 = vcombine.high %v203_v22, %v211_v23  ;;  %v259_v50 = vld [vmem:[#allocation3 + $0x3c8] sm:$0xff] }
  0x78   :  { %v242_v6 = vld [vmem:[#allocation3 + $0x340] sm:$0xff]  ;;  %v5907_v33 = vcombine.low %v203_v22, %v211_v23  ;;  %v267_v55 = vld [vmem:[#allocation3 + $0x408] sm:$0xff]  ;;  %v140_v23 = vld [vmem:[#allocation3 + $0x10] sm:$0xff] }
  0x79   :  { %v5938_v10 = vcombine.high %v234_v5, %v242_v6  ;;  %v250_v12 = vld [vmem:[#allocation3 + $0x380] sm:$0xff]  ;;  %v5937_v17 = vcombine.low %v234_v5, %v242_v6  ;;  %v283_v63 = vld [vmem:[#allocation3 + $0x488] sm:$0xff] }
  0x7a   :  { %v258_v13 = vld [vmem:[#allocation3 + $0x3c0] sm:$0xff]  ;;  %v299_v8 = vld [vmem:[#allocation3 + $0x508] sm:$0xff] }
  0x7b   :  { %5828 = vmatmul.mubr.msk.bf16.vlgmr.msra.gmra.mrb[4].mxu1 %vm443_vm1, %v7620_v15  ;;  %5834 = vmatmul.mubr.msk.bf16.vlgmr.msra.gmra.mrb[4].mxu0 %vm443_vm1, %v7620_v15  ;;  %v266_v20 = vld [vmem:[#allocation3 + $0x400] sm:$0xff]  ;;  %v5953_v24 = vcombine.low %v250_v12, %v258_v13  ;;  %v315_v16 = vld [vmem:[#allocation3 + $0x588] sm:$0xff] }
  0x7c   :  { %620 = vmatpush1.bf16.msra.mxu1 %v467_v28  ;;  %743 = vmatpush1.bf16.msra.mxu0 %v485_v29  ;;  %v274_v21 = vld [vmem:[#allocation3 + $0x440] sm:$0xff]  ;;  %v339_v22 = vld [vmem:[#allocation3 + $0x648] sm:$0xff] }
  0x7d   :  { %651 = vmatprep.mubr.bf16.mxu1 %v7421_v0  ;;  %774 = vmatprep.mubr.bf16.mxu0 %v7421_v0  ;;  %v5970_v26 = vcombine.high %v266_v20, %v274_v21  ;;  %v282_v28 = vld [vmem:[#allocation3 + $0x480] sm:$0xff]  ;;  %v5969_v32 = vcombine.low %v266_v20, %v274_v21  ;;  %v331_v21 = vld [vmem:[#allocation3 + $0x608] sm:$0xff] }
  0x7e   :  { %2104 = vmatprep.subr.bf16.mxu0 %v5842_v30  ;;  %5835 = vmatprep.subr.msk.bf16.mxu1 %vm447_vm0, %v5820_v31  ;;  %v290_v29 = vld [vmem:[#allocation3 + $0x4c0] sm:$0xff]  ;;  %v219_v30 = vld [vmem:[#allocation3 + $0x288] sm:$0xff] }
  0x7f   :  { %v227_v31 = vld [vmem:[#allocation3 + $0x2c8] sm:$0xff]  ;;  %v5986_v34 = vcombine.high %v282_v28, %v290_v29  ;;  %v5985_v41 = vcombine.low %v282_v28, %v290_v29  ;;  %v354_v62 = vld [vmem:[#allocation3 + $0x6c0] sm:$0xff] }
  0x80   :  { %v5924_v35 = vcombine.high %v219_v30, %v227_v31  ;;  %v362_v6 = vld [vmem:[#allocation3 + $0x700] sm:$0xff]  ;;  %v347_v29 = vld [vmem:[#allocation3 + $0x688] sm:$0xff] }
  0x81   :  { %v370_v7 = vld [vmem:[#allocation3 + $0x740] sm:$0xff] }
  0x82   :  { %v386_v14 = vld [vmem:[#allocation3 + $0x7c0] sm:$0xff] }
  0x83   :  { %5832 = vmatmul.mubr.msk.bf16.vlgmr.msra.gmra.mrb[8].mxu1 %vm443_vm1, %v7620_v15  ;;  %5838 = vmatmul.mubr.msk.bf16.vlgmr.msra.gmra.mrb[8].mxu0 %vm443_vm1, %v7620_v15 }
  0x84   :  { %2105 = vmatpush1.bf16.msra.mxu0 %v5841_v36  ;;  %702 = vmatpush1.bf16.msra.mxu1 %v479_v37  ;;  %v298_v36 = vld [vmem:[#allocation3 + $0x500] sm:$0xff] }
  0x85   :  { %2106 = vmatprep.subr.bf16.mxu0 %v5858_v38  ;;  %733 = vmatprep.mubr.bf16.mxu1 %v7421_v0  ;;  %v306_v37 = vld [vmem:[#allocation3 + $0x540] sm:$0xff]  ;;  %v235_v38 = vld [vmem:[#allocation3 + $0x308] sm:$0xff] }
  0x86   :  { %5839 = vmatprep.subr.msk.bf16.mxu1 %vm447_vm0, %v5824_v42  ;;  %2136 = vmatprep.mubr.bf16.mxu0 %v7671_v45  ;;  %v5923_v42 = vcombine.low %v219_v30, %v227_v31  ;;  %v6002_v48 = vcombine.high %v298_v36, %v306_v37  ;;  %v5940_v49 = vcombine.high %v235_v38, %v243_v40  ;;  %v355_v30 = vld [vmem:[#allocation3 + $0x6c8] sm:$0xff]  ;;  %v156_v31 = vld [vmem:[#allocation3 + $0x90] sm:$0xff] }
  0x87   :  { %v6001_v51 = vcombine.low %v298_v36, %v306_v37  ;;  %v6035_v36 = vcombine.low %v331_v21, %v339_v22 }
  0x88   :  { %2107 = vmatpush1.bf16.msra.mxu0 %v5857_v44  ;;  %v314_v44 = vld [vmem:[#allocation3 + $0x580] sm:$0xff] }
  0x89   :  { %2108 = vmatprep.subr.bf16.mxu0 %v5874_v46  ;;  %v322_v46 = vld [vmem:[#allocation3 + $0x5c0] sm:$0xff] }
  0x8a   :  { %v6018_v56 = vcombine.high %v314_v44, %v322_v46 }
  0x8b   :  { %5836 = vmatmul.mubr.msk.bf16.vlgmr.msra.gmra.mrb[12].mxu1 %vm443_vm1, %v7620_v15 }
  0x8c   :  { %2109 = vmatpush1.bf16.msra.mxu0 %v5873_v52  ;;  %784 = vmatpush1.bf16.msra.mxu1 %v491_v53  ;;  %v5939_v52 = vcombine.low %v235_v38, %v243_v40  ;;  %v330_v53 = vld [vmem:[#allocation3 + $0x600] sm:$0xff]  ;;  %v363_v38 = vld [vmem:[#allocation3 + $0x708] sm:$0xff] }
  0x8d   :  { %2110 = vmatprep.subr.bf16.mxu0 %v5890_v54  ;;  %815 = vmatprep.mubr.bf16.mxu1 %v7421_v0  ;;  %v5921_v0 = vcombine.low %v218_v60, %v226_v61  ;;  %v338_v54 = vld [vmem:[#allocation3 + $0x640] sm:$0xff]  ;;  %v5955_v60 = vcombine.low %v251_v47, %v259_v50  ;;  %v371_v40 = vld [vmem:[#allocation3 + $0x748] sm:$0xff] }
  0x8e   :  { %2145 = vmatprep.subr.bf16.mxu1 %v5844_v57  ;;  %v5956_v57 = vcombine.high %v251_v47, %v259_v50  ;;  %v346_v61 = vld [vmem:[#allocation3 + $0x680] sm:$0xff]  ;;  %v6051_v47 = vcombine.low %v347_v29, %v355_v30  ;;  %v188_v50 = vld [vmem:[#allocation3 + $0x190] sm:$0xff] }
  0x90   :  { %2111 = vmatpush1.bf16.msra.mxu0 %v5889_v58  ;;  %v275_v58 = vld [vmem:[#allocation3 + $0x448] sm:$0xff] }
  0x91   :  { %2112 = vmatprep.subr.bf16.mxu0 %v5906_v59  ;;  %v6017_v59 = vcombine.low %v314_v44, %v322_v46  ;;  %v5971_v5 = vcombine.low %v267_v55, %v275_v58  ;;  %v180_v46 = vld [vmem:[#allocation3 + $0x150] sm:$0xff] }
  0x93   :  { %5840 = vmatmul.mubr.msk.bf16.vlgmr.msra.gmra.mrb[16].mxu1 %vm443_vm1, %v7620_v15  ;;  %v5954_v15 = vcombine.high %v250_v12, %v258_v13  ;;  %v378_v13 = vld [vmem:[#allocation3 + $0x780] sm:$0xff] }
  0x94   :  { %2113 = vmatpush1.bf16.msra.mxu0 %v5905_v1  ;;  %2146 = vmatpush1.bf16.msra.mxu1 %v5843_v2  ;;  %v6034_v1 = vcombine.high %v330_v53, %v338_v54  ;;  %v5972_v2 = vcombine.high %v267_v55, %v275_v58  ;;  %v141_v58 = vld [vmem:[#allocation3 + $0x18] sm:$0xff] }
  0x95   :  { %2114 = vmatprep.subr.bf16.mxu0 %v5922_v3  ;;  %2147 = vmatprep.subr.bf16.mxu1 %v5860_v4  ;;  %v291_v3 = vld [vmem:[#allocation3 + $0x4c8] sm:$0xff]  ;;  %v6033_v4 = vcombine.low %v330_v53, %v338_v54  ;;  %v196_v53 = vld [vmem:[#allocation3 + $0x1d0] sm:$0xff]  ;;  %v6067_v54 = vcombine.low %v363_v38, %v371_v40 }
  0x96   :  { %2177 = vmatprep.mubr.bf16.mxu1 %v7671_v45  ;;  %v5987_v12 = vcombine.low %v283_v63, %v291_v3 }
  0x98   :  { %2115 = vmatpush1.bf16.msra.mxu0 %v5921_v0  ;;  %2148 = vmatpush1.bf16.msra.mxu1 %v5859_v9  ;;  %v6050_v0 = vcombine.high %v346_v61, %v354_v62  ;;  %v5988_v9 = vcombine.high %v283_v63, %v291_v3  ;;  %v5893_v63 = vcombine.low %v188_v50, %v196_v53  ;;  %v157_v3 = vld [vmem:[#allocation3 + $0x98] sm:$0xff] }
  0x99   :  { %2116 = vmatprep.subr.bf16.mxu0 %v5938_v10  ;;  %2149 = vmatprep.subr.bf16.mxu1 %v5876_v11  ;;  %v307_v10 = vld [vmem:[#allocation3 + $0x548] sm:$0xff]  ;;  %v6049_v11 = vcombine.low %v346_v61, %v354_v62  ;;  %v149_v61 = vld [vmem:[#allocation3 + $0x58] sm:$0xff] }
  0x9a   :  { %v6003_v20 = vcombine.low %v299_v8, %v307_v10 }
  0x9c   :  { %2117 = vmatpush1.bf16.msra.mxu0 %v5937_v17  ;;  %2150 = vmatpush1.bf16.msra.mxu1 %v5875_v18  ;;  %v6066_v17 = vcombine.high %v362_v6, %v370_v7  ;;  %v6004_v18 = vcombine.high %v299_v8, %v307_v10  ;;  %v5847_v8 = vcombine.low %v141_v58, %v149_v61  ;;  %v173_v10 = vld [vmem:[#allocation3 + $0x118] sm:$0xff] }
  0x9d   :  { %2118 = vmatprep.subr.bf16.mxu0 %v5954_v15  ;;  %2151 = vmatprep.subr.bf16.mxu1 %v5892_v19  ;;  %v323_v15 = vld [vmem:[#allocation3 + $0x5c8] sm:$0xff]  ;;  %v6065_v19 = vcombine.low %v362_v6, %v370_v7  ;;  %v165_v6 = vld [vmem:[#allocation3 + $0xd8] sm:$0xff] }
  0x9e   :  { %v6019_v28 = vcombine.low %v315_v16, %v323_v15 }
  0xa0   :  { %2119 = vmatpush1.bf16.msra.mxu0 %v5953_v24  ;;  %2152 = vmatpush1.bf16.msra.mxu1 %v5891_v25  ;;  %v6082_v24 = vcombine.high %v378_v13, %v386_v14  ;;  %v6020_v25 = vcombine.high %v315_v16, %v323_v15  ;;  %v5863_v16 = vcombine.low %v157_v3, %v165_v6  ;;  %v189_v15 = vld [vmem:[#allocation3 + $0x198] sm:$0xff] }
  0xa1   :  { %2120 = vmatprep.subr.bf16.mxu0 %v5970_v26  ;;  %2153 = vmatprep.subr.bf16.mxu1 %v5908_v27  ;;  %v148_v26 = vld [vmem:[#allocation3 + $0x50] sm:$0xff]  ;;  %v6081_v27 = vcombine.low %v378_v13, %v386_v14  ;;  %v181_v13 = vld [vmem:[#allocation3 + $0x158] sm:$0xff] }
  0xa2   :  { %v5845_v37 = vcombine.low %v140_v23, %v148_v26 }
  0xa4   :  { %2121 = vmatpush1.bf16.msra.mxu0 %v5969_v32  ;;  %2154 = vmatpush1.bf16.msra.mxu1 %v5907_v33  ;;  %v6036_v32 = vcombine.high %v331_v21, %v339_v22  ;;  %v5846_v33 = vcombine.high %v140_v23, %v148_v26  ;;  %v197_v21 = vld [vmem:[#allocation3 + $0x1d8] sm:$0xff]  ;;  %v5879_v23 = vcombine.low %v173_v10, %v181_v13 }
  0xa5   :  { %2122 = vmatprep.subr.bf16.mxu0 %v5986_v34  ;;  %2155 = vmatprep.subr.bf16.mxu1 %v5924_v35  ;;  %v164_v34 = vld [vmem:[#allocation3 + $0xd0] sm:$0xff]  ;;  %v7685_v35 = vpack.c.bf16 %v7659_v39, %v7659_v39  ;;  %v379_v39 = vld [vmem:[#allocation3 + $0x788] sm:$0xff]  ;;  %v205_v26 = vld [vmem:[#allocation3 + $0x218] sm:$0xff] }
  0xa6   :  { %v5862_v44 = vcombine.high %v156_v31, %v164_v34 }
  0xa8   :  { %2123 = vmatpush1.bf16.msra.mxu0 %v5985_v41  ;;  %2156 = vmatpush1.bf16.msra.mxu1 %v5923_v42  ;;  %v172_v41 = vld [vmem:[#allocation3 + $0x110] sm:$0xff]  ;;  %v6052_v42 = vcombine.high %v347_v29, %v355_v30  ;;  %v213_v29 = vld [vmem:[#allocation3 + $0x258] sm:$0xff] }
  0xa9   :  { %2124 = vmatprep.subr.bf16.mxu0 %v6002_v48  ;;  %2157 = vmatprep.subr.bf16.mxu1 %v5940_v49  ;;  %v5861_v48 = vcombine.low %v156_v31, %v164_v34  ;;  %v387_v49 = vld [vmem:[#allocation3 + $0x7c8] sm:$0xff]  ;;  %v5877_v55 = vcombine.low %v172_v41, %v180_v46  ;;  %v5895_v31 = vcombine.low %v189_v15, %v197_v21  ;;  %v221_v34 = vld [vmem:[#allocation3 + $0x298] sm:$0xff] }
  0xaa   :  { %v6083_v62 = vcombine.low %v379_v39, %v387_v49 }
  0xac   :  { %2125 = vmatpush1.bf16.msra.mxu0 %v6001_v51  ;;  %2158 = vmatpush1.bf16.msra.mxu1 %v5939_v52  ;;  %v6068_v51 = vcombine.high %v363_v38, %v371_v40  ;;  %v5878_v52 = vcombine.high %v172_v41, %v180_v46  ;;  %v229_v38 = vld [vmem:[#allocation3 + $0x2d8] sm:$0xff]  ;;  %v5911_v41 = vcombine.low %v205_v26, %v213_v29 }
  0xad   :  { %2126 = vmatprep.subr.bf16.mxu0 %v6018_v56  ;;  %2159 = vmatprep.subr.bf16.mxu1 %v5956_v57  ;;  %v204_v56 = vld [vmem:[#allocation3 + $0x210] sm:$0xff]  ;;  %v237_v46 = vld [vmem:[#allocation3 + $0x318] sm:$0xff] }
  0xae   :  { %v212_v57 = vld [vmem:[#allocation3 + $0x250] sm:$0xff] }
  0xaf   :  { %v5909_v7 = vcombine.low %v204_v56, %v212_v57 }
  0xb0   :  { %2127 = vmatpush1.bf16.msra.mxu0 %v6017_v59  ;;  %2160 = vmatpush1.bf16.msra.mxu1 %v5955_v60  ;;  %v6084_v59 = vcombine.high %v379_v39, %v387_v49  ;;  %v5894_v60 = vcombine.high %v188_v50, %v196_v53  ;;  %v245_v39 = vld [vmem:[#allocation3 + $0x358] sm:$0xff]  ;;  %v5927_v50 = vcombine.low %v221_v34, %v229_v38 }
  0xb1   :  { %2128 = vmatprep.subr.bf16.mxu0 %v6034_v1  ;;  %2161 = vmatprep.subr.bf16.mxu1 %v5972_v2  ;;  %v220_v1 = vld [vmem:[#allocation3 + $0x290] sm:$0xff]  ;;  %v253_v53 = vld [vmem:[#allocation3 + $0x398] sm:$0xff] }
  0xb2   :  { %v228_v2 = vld [vmem:[#allocation3 + $0x2d0] sm:$0xff] }
  0xb3   :  { %v5925_v14 = vcombine.low %v220_v1, %v228_v2 }
  0xb4   :  { %2129 = vmatpush1.bf16.msra.mxu0 %v6033_v4  ;;  %2162 = vmatpush1.bf16.msra.mxu1 %v5971_v5  ;;  %v5910_v4 = vcombine.high %v204_v56, %v212_v57  ;;  %v5848_v5 = vcombine.high %v141_v58, %v149_v61  ;;  %v261_v56 = vld [vmem:[#allocation3 + $0x3d8] sm:$0xff]  ;;  %v5943_v58 = vcombine.low %v237_v46, %v245_v39 }
  0xb5   :  { %2130 = vmatprep.subr.bf16.mxu0 %v6050_v0  ;;  %2163 = vmatprep.subr.bf16.mxu1 %v5988_v9  ;;  %v236_v0 = vld [vmem:[#allocation3 + $0x310] sm:$0xff]  ;;  %v269_v61 = vld [vmem:[#allocation3 + $0x418] sm:$0xff] }
  0xb6   :  { %v244_v9 = vld [vmem:[#allocation3 + $0x350] sm:$0xff] }
  0xb7   :  { %v5941_v22 = vcombine.low %v236_v0, %v244_v9 }
  0xb8   :  { %2131 = vmatpush1.bf16.msra.mxu0 %v6049_v11  ;;  %2164 = vmatpush1.bf16.msra.mxu1 %v5987_v12  ;;  %v5926_v11 = vcombine.high %v220_v1, %v228_v2  ;;  %v5864_v12 = vcombine.high %v157_v3, %v165_v6  ;;  %v277_v1 = vld [vmem:[#allocation3 + $0x458] sm:$0xff]  ;;  %v5959_v3 = vcombine.low %v253_v53, %v261_v56 }
  0xb9   :  { %2132 = vmatprep.subr.bf16.mxu0 %v6066_v17  ;;  %2165 = vmatprep.subr.bf16.mxu1 %v6004_v18  ;;  %v252_v17 = vld [vmem:[#allocation3 + $0x390] sm:$0xff]  ;;  %v285_v6 = vld [vmem:[#allocation3 + $0x498] sm:$0xff] }
  0xba   :  { %v260_v18 = vld [vmem:[#allocation3 + $0x3d0] sm:$0xff] }
  0xbb   :  { %v5957_v30 = vcombine.low %v252_v17, %v260_v18 }
  0xbc   :  { %2133 = vmatpush1.bf16.msra.mxu0 %v6065_v19  ;;  %2166 = vmatpush1.bf16.msra.mxu1 %v6003_v20  ;;  %v5942_v19 = vcombine.high %v236_v0, %v244_v9  ;;  %v5880_v20 = vcombine.high %v173_v10, %v181_v13  ;;  %v293_v0 = vld [vmem:[#allocation3 + $0x4d8] sm:$0xff]  ;;  %v5975_v10 = vcombine.low %v269_v61, %v277_v1 }
  0xbd   :  { %2134 = vmatprep.subr.bf16.mxu0 %v6082_v24  ;;  %2167 = vmatprep.subr.bf16.mxu1 %v6020_v25  ;;  %v268_v24 = vld [vmem:[#allocation3 + $0x410] sm:$0xff]  ;;  %v301_v13 = vld [vmem:[#allocation3 + $0x518] sm:$0xff] }
  0xbe   :  { %v276_v25 = vld [vmem:[#allocation3 + $0x450] sm:$0xff] }
  0xbf   :  { %v5973_v40 = vcombine.low %v268_v24, %v276_v25 }
  0xc0   :  { %2135 = vmatpush1.bf16.msra.mxu0 %v6081_v27  ;;  %2168 = vmatpush1.bf16.msra.mxu1 %v6019_v28  ;;  %v5958_v27 = vcombine.high %v252_v17, %v260_v18  ;;  %v5896_v28 = vcombine.high %v189_v15, %v197_v21  ;;  %v309_v17 = vld [vmem:[#allocation3 + $0x558] sm:$0xff]  ;;  %v5991_v15 = vcombine.low %v285_v6, %v293_v0 }
  0xc1   :  { %2169 = vmatprep.subr.bf16.mxu1 %v6036_v32  ;;  %2186 = vmatprep.subr.bf16.mxu0 %v5846_v33  ;;  %v284_v32 = vld [vmem:[#allocation3 + $0x490] sm:$0xff]  ;;  %v317_v21 = vld [vmem:[#allocation3 + $0x598] sm:$0xff] }
  0xc2   :  { %v292_v33 = vld [vmem:[#allocation3 + $0x4d0] sm:$0xff] }
  0xc3   :  { %2137 = vmatmul.mubr.bf16.vlgmr.msra.gmra.mrb[12].mxu0 %v7685_v35  ;;  %v5989_v49 = vcombine.low %v284_v32, %v292_v33 }
  0xc4   :  { %2170 = vmatpush1.bf16.msra.mxu1 %v6035_v36  ;;  %2187 = vmatpush1.bf16.msra.mxu0 %v5845_v37  ;;  %v5974_v36 = vcombine.high %v268_v24, %v276_v25  ;;  %v5912_v37 = vcombine.high %v205_v26, %v213_v29  ;;  %v325_v24 = vld [vmem:[#allocation3 + $0x5d8] sm:$0xff]  ;;  %v6007_v26 = vcombine.low %v301_v13, %v309_v17  ;;  %v142_v29 = vld [vmem:[#allocation3 + $0x20] sm:$0xff] }
  0xc5   :  { %2171 = vmatprep.subr.bf16.mxu1 %v6052_v42  ;;  %2188 = vmatprep.subr.bf16.mxu0 %v5862_v44  ;;  %v300_v42 = vld [vmem:[#allocation3 + $0x510] sm:$0xff] }
  0xc6   :  { %2218 = vmatprep.mubr.bf16.mxu0 %v7671_v45  ;;  %v308_v44 = vld [vmem:[#allocation3 + $0x550] sm:$0xff] }
  0xc7   :  { %v6005_v57 = vcombine.low %v300_v42, %v308_v44 }
  0xc8   :  { %2172 = vmatpush1.bf16.msra.mxu1 %v6051_v47  ;;  %2189 = vmatpush1.bf16.msra.mxu0 %v5861_v48  ;;  %v5990_v47 = vcombine.high %v284_v32, %v292_v33  ;;  %v5928_v48 = vcombine.high %v221_v34, %v229_v38  ;;  %v150_v32 = vld [vmem:[#allocation3 + $0x60] sm:$0xff]  ;;  %v6023_v34 = vcombine.low %v317_v21, %v325_v24 }
  0xc9   :  { %2173 = vmatprep.subr.bf16.mxu1 %v6068_v51  ;;  %2190 = vmatprep.subr.bf16.mxu0 %v5878_v52  ;;  %v316_v51 = vld [vmem:[#allocation3 + $0x590] sm:$0xff]  ;;  %v158_v38 = vld [vmem:[#allocation3 + $0xa0] sm:$0xff] }
  0xca   :  { %v324_v52 = vld [vmem:[#allocation3 + $0x5d0] sm:$0xff] }
  0xcb   :  { %v6021_v2 = vcombine.low %v316_v51, %v324_v52 }
  0xcc   :  { %2174 = vmatpush1.bf16.msra.mxu1 %v6067_v54  ;;  %2191 = vmatpush1.bf16.msra.mxu0 %v5877_v55  ;;  %v6006_v54 = vcombine.high %v300_v42, %v308_v44  ;;  %v5944_v55 = vcombine.high %v237_v46, %v245_v39  ;;  %v166_v42 = vld [vmem:[#allocation3 + $0xe0] sm:$0xff]  ;;  %v5849_v46 = vcombine.low %v142_v29, %v150_v32 }
  0xcd   :  { %2175 = vmatprep.subr.bf16.mxu1 %v6084_v59  ;;  %2192 = vmatprep.subr.bf16.mxu0 %v5894_v60  ;;  %v332_v59 = vld [vmem:[#allocation3 + $0x610] sm:$0xff]  ;;  %v174_v39 = vld [vmem:[#allocation3 + $0x120] sm:$0xff] }
  0xce   :  { %v340_v60 = vld [vmem:[#allocation3 + $0x650] sm:$0xff] }
  0xcf   :  { %v6037_v9 = vcombine.low %v332_v59, %v340_v60 }
  0xd0   :  { %2176 = vmatpush1.bf16.msra.mxu1 %v6083_v62  ;;  %2193 = vmatpush1.bf16.msra.mxu0 %v5893_v63  ;;  %v6022_v62 = vcombine.high %v316_v51, %v324_v52  ;;  %v5960_v63 = vcombine.high %v253_v53, %v261_v56  ;;  %v5866_v51 = vcombine.high %v158_v38, %v166_v42  ;;  %v190_v56 = vld [vmem:[#allocation3 + $0x1a0] sm:$0xff] }
  0xd1   :  { %2194 = vmatprep.subr.bf16.mxu0 %v5910_v4  ;;  %2227 = vmatprep.subr.bf16.mxu1 %v5848_v5  ;;  %v348_v4 = vld [vmem:[#allocation3 + $0x690] sm:$0xff]  ;;  %v5865_v53 = vcombine.low %v158_v38, %v166_v42  ;;  %v223_v42 = vld [vmem:[#allocation3 + $0x2a8] sm:$0xff] }
  0xd2   :  { %v356_v5 = vld [vmem:[#allocation3 + $0x6d0] sm:$0xff] }
  0xd3   :  { %2178 = vmatmul.mubr.bf16.vlgmr.msra.gmra.mrb[20].mxu1 %v7685_v35  ;;  %v6053_v18 = vcombine.low %v348_v4, %v356_v5 }
  0xd4   :  { %2195 = vmatpush1.bf16.msra.mxu0 %v5909_v7  ;;  %2228 = vmatpush1.bf16.msra.mxu1 %v5847_v8  ;;  %v6038_v7 = vcombine.high %v332_v59, %v340_v60  ;;  %v5976_v8 = vcombine.high %v269_v61, %v277_v1  ;;  %v143_v1 = vld [vmem:[#allocation3 + $0x28] sm:$0xff] }
  0xd5   :  { %2196 = vmatprep.subr.bf16.mxu0 %v5926_v11  ;;  %2229 = vmatprep.subr.bf16.mxu1 %v5864_v12  ;;  %v364_v11 = vld [vmem:[#allocation3 + $0x710] sm:$0xff] }
  0xd6   :  { %2259 = vmatprep.mubr.bf16.mxu1 %v7671_v45  ;;  %v372_v12 = vld [vmem:[#allocation3 + $0x750] sm:$0xff] }
  0xd7   :  { %v6069_v25 = vcombine.low %v364_v11, %v372_v12 }
  0xd8   :  { %2197 = vmatpush1.bf16.msra.mxu0 %v5925_v14  ;;  %2230 = vmatpush1.bf16.msra.mxu1 %v5863_v16  ;;  %v6054_v14 = vcombine.high %v348_v4, %v356_v5  ;;  %v5992_v16 = vcombine.high %v285_v6, %v293_v0  ;;  %v159_v0 = vld [vmem:[#allocation3 + $0xa8] sm:$0xff] }
  0xd9   :  { %2198 = vmatprep.subr.bf16.mxu0 %v5942_v19  ;;  %2231 = vmatprep.subr.bf16.mxu1 %v5880_v20  ;;  %v380_v19 = vld [vmem:[#allocation3 + $0x790] sm:$0xff] }
  0xda   :  { %v388_v20 = vld [vmem:[#allocation3 + $0x7d0] sm:$0xff] }
  0xdb   :  { %v6085_v33 = vcombine.low %v380_v19, %v388_v20 }
  0xdc   :  { %2199 = vmatpush1.bf16.msra.mxu0 %v5941_v22  ;;  %2232 = vmatpush1.bf16.msra.mxu1 %v5879_v23  ;;  %v6070_v22 = vcombine.high %v364_v11, %v372_v12  ;;  %v6008_v23 = vcombine.high %v301_v13, %v309_v17  ;;  %v175_v17 = vld [vmem:[#allocation3 + $0x128] sm:$0xff] }
  0xdd   :  { %2200 = vmatprep.subr.bf16.mxu0 %v5958_v27  ;;  %2233 = vmatprep.subr.bf16.mxu1 %v5896_v28  ;;  %v333_v27 = vld [vmem:[#allocation3 + $0x618] sm:$0xff] }
  0xde   :  { %v341_v28 = vld [vmem:[#allocation3 + $0x658] sm:$0xff] }
  0xdf   :  { %v6039_v44 = vcombine.low %v333_v27, %v341_v28 }
  0xe0   :  { %2201 = vmatpush1.bf16.msra.mxu0 %v5957_v30  ;;  %2234 = vmatpush1.bf16.msra.mxu1 %v5895_v31  ;;  %v6086_v30 = vcombine.high %v380_v19, %v388_v20  ;;  %v6024_v31 = vcombine.high %v317_v21, %v325_v24  ;;  %v191_v24 = vld [vmem:[#allocation3 + $0x1a8] sm:$0xff] }
  0xe1   :  { %2202 = vmatprep.subr.bf16.mxu0 %v5974_v36  ;;  %2235 = vmatprep.subr.bf16.mxu1 %v5912_v37  ;;  %v349_v36 = vld [vmem:[#allocation3 + $0x698] sm:$0xff] }
  0xe2   :  { %v357_v37 = vld [vmem:[#allocation3 + $0x6d8] sm:$0xff] }
  0xe3   :  { %v6055_v52 = vcombine.low %v349_v36, %v357_v37 }
  0xe4   :  { %2203 = vmatpush1.bf16.msra.mxu0 %v5973_v40  ;;  %2236 = vmatpush1.bf16.msra.mxu1 %v5911_v41  ;;  %v6040_v40 = vcombine.high %v333_v27, %v341_v28  ;;  %v5850_v41 = vcombine.high %v142_v29, %v150_v32  ;;  %v199_v27 = vld [vmem:[#allocation3 + $0x1e8] sm:$0xff] }
  0xe5   :  { %2204 = vmatprep.subr.bf16.mxu0 %v5990_v47  ;;  %2237 = vmatprep.subr.bf16.mxu1 %v5928_v48  ;;  %v365_v47 = vld [vmem:[#allocation3 + $0x718] sm:$0xff]  ;;  %v207_v32 = vld [vmem:[#allocation3 + $0x228] sm:$0xff]  ;;  %v5899_v38 = vcombine.low %v191_v24, %v199_v27 }
  0xe6   :  { %v373_v48 = vld [vmem:[#allocation3 + $0x758] sm:$0xff] }
  0xe7   :  { %v6071_v60 = vcombine.low %v365_v47, %v373_v48 }
  0xe8   :  { %2205 = vmatpush1.bf16.msra.mxu0 %v5989_v49  ;;  %2238 = vmatpush1.bf16.msra.mxu1 %v5927_v50  ;;  %v182_v49 = vld [vmem:[#allocation3 + $0x160] sm:$0xff]  ;;  %v6056_v50 = vcombine.high %v349_v36, %v357_v37  ;;  %v5900_v36 = vcombine.high %v191_v24, %v199_v27 }
  0xe9   :  { %2206 = vmatprep.subr.bf16.mxu0 %v6006_v54  ;;  %2239 = vmatprep.subr.bf16.mxu1 %v5944_v55  ;;  %v381_v54 = vld [vmem:[#allocation3 + $0x798] sm:$0xff]  ;;  %v5882_v59 = vcombine.high %v174_v39, %v182_v49  ;;  %v5881_v61 = vcombine.low %v174_v39, %v182_v49  ;;  %v302_v49 = vld [vmem:[#allocation3 + $0x520] sm:$0xff] }
  0xea   :  { %v389_v55 = vld [vmem:[#allocation3 + $0x7d8] sm:$0xff] }
  0xeb   :  { %v6087_v5 = vcombine.low %v381_v54, %v389_v55 }
  0xec   :  { %2207 = vmatpush1.bf16.msra.mxu0 %v6005_v57  ;;  %2240 = vmatpush1.bf16.msra.mxu1 %v5943_v58  ;;  %v198_v57 = vld [vmem:[#allocation3 + $0x1e0] sm:$0xff]  ;;  %v6072_v58 = vcombine.high %v365_v47, %v373_v48 }
  0xed   :  { %2208 = vmatprep.subr.bf16.mxu0 %v6022_v62  ;;  %2241 = vmatprep.subr.bf16.mxu1 %v5960_v63  ;;  %v206_v62 = vld [vmem:[#allocation3 + $0x220] sm:$0xff]  ;;  %v5898_v4 = vcombine.high %v190_v56, %v198_v57  ;;  %v5897_v6 = vcombine.low %v190_v56, %v198_v57 }
  0xee   :  { %v214_v63 = vld [vmem:[#allocation3 + $0x260] sm:$0xff] }
  0xef   :  { %v5913_v12 = vcombine.low %v206_v62, %v214_v63  ;;  %v318_v57 = vld [vmem:[#allocation3 + $0x5a0] sm:$0xff] }
  0xf0   :  { %2209 = vmatpush1.bf16.msra.mxu0 %v6021_v2  ;;  %2242 = vmatpush1.bf16.msra.mxu1 %v5959_v3  ;;  %v151_v2 = vld [vmem:[#allocation3 + $0x68] sm:$0xff]  ;;  %v6088_v3 = vcombine.high %v381_v54, %v389_v55 }
  0xf1   :  { %2210 = vmatprep.subr.bf16.mxu0 %v6038_v7  ;;  %2243 = vmatprep.subr.bf16.mxu1 %v5976_v8  ;;  %v222_v7 = vld [vmem:[#allocation3 + $0x2a0] sm:$0xff]  ;;  %v5852_v11 = vcombine.high %v143_v1, %v151_v2  ;;  %v5851_v13 = vcombine.low %v143_v1, %v151_v2 }
  0xf2   :  { %v230_v8 = vld [vmem:[#allocation3 + $0x2e0] sm:$0xff] }
  0xf3   :  { %v5929_v20 = vcombine.low %v222_v7, %v230_v8  ;;  %v334_v2 = vld [vmem:[#allocation3 + $0x620] sm:$0xff] }
  0xf4   :  { %2211 = vmatpush1.bf16.msra.mxu0 %v6037_v9  ;;  %2244 = vmatpush1.bf16.msra.mxu1 %v5975_v10  ;;  %v167_v9 = vld [vmem:[#allocation3 + $0xe8] sm:$0xff]  ;;  %v5914_v10 = vcombine.high %v206_v62, %v214_v63 }
  0xf5   :  { %2212 = vmatprep.subr.bf16.mxu0 %v6054_v14  ;;  %2245 = vmatprep.subr.bf16.mxu1 %v5992_v16  ;;  %v238_v14 = vld [vmem:[#allocation3 + $0x320] sm:$0xff]  ;;  %v5868_v19 = vcombine.high %v159_v0, %v167_v9  ;;  %v5867_v21 = vcombine.low %v159_v0, %v167_v9  ;;  %v263_v62 = vld [vmem:[#allocation3 + $0x3e8] sm:$0xff] }
  0xf6   :  { %v246_v16 = vld [vmem:[#allocation3 + $0x360] sm:$0xff] }
  0xf7   :  { %v5945_v28 = vcombine.low %v238_v14, %v246_v16  ;;  %v350_v9 = vld [vmem:[#allocation3 + $0x6a0] sm:$0xff] }
  0xf8   :  { %2213 = vmatpush1.bf16.msra.mxu0 %v6053_v18  ;;  %2246 = vmatpush1.bf16.msra.mxu1 %v5991_v15  ;;  %v183_v18 = vld [vmem:[#allocation3 + $0x168] sm:$0xff]  ;;  %v5930_v15 = vcombine.high %v222_v7, %v230_v8 }
  0xf9   :  { %2214 = vmatprep.subr.bf16.mxu0 %v6070_v22  ;;  %2247 = vmatprep.subr.bf16.mxu1 %v6008_v23  ;;  %v254_v22 = vld [vmem:[#allocation3 + $0x3a0] sm:$0xff]  ;;  %v5883_v29 = vcombine.low %v175_v17, %v183_v18 }
  0xfa   :  { %v262_v23 = vld [vmem:[#allocation3 + $0x3e0] sm:$0xff] }
  0xfb   :  { %v5961_v37 = vcombine.low %v254_v22, %v262_v23 }
  0xfc   :  { %2215 = vmatpush1.bf16.msra.mxu0 %v6069_v25  ;;  %2248 = vmatpush1.bf16.msra.mxu1 %v6007_v26  ;;  %v5946_v25 = vcombine.high %v238_v14, %v246_v16  ;;  %v5884_v26 = vcombine.high %v175_v17, %v183_v18 }
  0xfd   :  { %2216 = vmatprep.subr.bf16.mxu0 %v6086_v30  ;;  %2249 = vmatprep.subr.bf16.mxu1 %v6024_v31  ;;  %v270_v30 = vld [vmem:[#allocation3 + $0x420] sm:$0xff] }
  0xfe   :  { %v278_v31 = vld [vmem:[#allocation3 + $0x460] sm:$0xff] }
  0xff   :  { %v5977_v48 = vcombine.low %v270_v30, %v278_v31 }
 0x100   :  { %2217 = vmatpush1.bf16.msra.mxu0 %v6085_v33  ;;  %2250 = vmatpush1.bf16.msra.mxu1 %v6023_v34  ;;  %v215_v33 = vld [vmem:[#allocation3 + $0x268] sm:$0xff]  ;;  %v5962_v34 = vcombine.high %v254_v22, %v262_v23 }
 0x101   :  { %2251 = vmatprep.subr.bf16.mxu1 %v6040_v40  ;;  %2268 = vmatprep.subr.bf16.mxu0 %v5850_v41  ;;  %v286_v40 = vld [vmem:[#allocation3 + $0x4a0] sm:$0xff]  ;;  %v5916_v47 = vcombine.high %v207_v32, %v215_v33  ;;  %v5915_v39 = vcombine.low %v207_v32, %v215_v33  ;;  %v311_v22 = vld [vmem:[#allocation3 + $0x568] sm:$0xff] }
 0x102   :  { %v294_v41 = vld [vmem:[#allocation3 + $0x4e0] sm:$0xff]  ;;  %v335_v33 = vld [vmem:[#allocation3 + $0x628] sm:$0xff] }
 0x103   :  { %2219 = vmatmul.mubr.bf16.vlgmr.msra.gmra.mrb[16].mxu0 %v7685_v35  ;;  %v5993_v55 = vcombine.low %v286_v40, %v294_v41 }
 0x104   :  { %2252 = vmatpush1.bf16.msra.mxu1 %v6039_v44  ;;  %2269 = vmatpush1.bf16.msra.mxu0 %v5849_v46  ;;  %v231_v44 = vld [vmem:[#allocation3 + $0x2e8] sm:$0xff]  ;;  %v5978_v46 = vcombine.high %v270_v30, %v278_v31 }
 0x105   :  { %2253 = vmatprep.subr.bf16.mxu1 %v6056_v50  ;;  %2270 = vmatprep.subr.bf16.mxu0 %v5866_v51  ;;  %v310_v50 = vld [vmem:[#allocation3 + $0x560] sm:$0xff]  ;;  %v239_v51 = vld [vmem:[#allocation3 + $0x328] sm:$0xff]  ;;  %v5932_v54 = vcombine.high %v223_v42, %v231_v44  ;;  %v5931_v56 = vcombine.low %v223_v42, %v231_v44 }
 0x106   :  { %2300 = vmatprep.mubr.bf16.mxu0 %v7671_v45  ;;  %v6009_v63 = vcombine.low %v302_v49, %v310_v50  ;;  %v327_v30 = vld [vmem:[#allocation3 + $0x5e8] sm:$0xff] }
 0x108   :  { %2254 = vmatpush1.bf16.msra.mxu1 %v6055_v52  ;;  %2271 = vmatpush1.bf16.msra.mxu0 %v5865_v53  ;;  %v247_v52 = vld [vmem:[#allocation3 + $0x368] sm:$0xff]  ;;  %v5994_v53 = vcombine.high %v286_v40, %v294_v41  ;;  %v152_v40 = vld [vmem:[#allocation3 + $0x70] sm:$0xff] }
 0x109   :  { %2255 = vmatprep.subr.bf16.mxu1 %v6072_v58  ;;  %2272 = vmatprep.subr.bf16.mxu0 %v5882_v59  ;;  %v326_v58 = vld [vmem:[#allocation3 + $0x5e0] sm:$0xff]  ;;  %v6010_v59 = vcombine.high %v302_v49, %v310_v50  ;;  %v5947_v1 = vcombine.low %v239_v51, %v247_v52  ;;  %v168_v49 = vld [vmem:[#allocation3 + $0xf0] sm:$0xff] }
 0x10a   :  { %v6025_v8 = vcombine.low %v318_v57, %v326_v58 }
 0x10c   :  { %2256 = vmatpush1.bf16.msra.mxu1 %v6071_v60  ;;  %2273 = vmatpush1.bf16.msra.mxu0 %v5881_v61  ;;  %v5948_v60 = vcombine.high %v239_v51, %v247_v52  ;;  %v255_v61 = vld [vmem:[#allocation3 + $0x3a8] sm:$0xff] }
 0x10d   :  { %2257 = vmatprep.subr.bf16.mxu1 %v6088_v3  ;;  %2274 = vmatprep.subr.bf16.mxu0 %v5898_v4  ;;  %v342_v3 = vld [vmem:[#allocation3 + $0x660] sm:$0xff]  ;;  %v271_v4 = vld [vmem:[#allocation3 + $0x428] sm:$0xff]  ;;  %v5964_v7 = vcombine.high %v255_v61, %v263_v62  ;;  %v5963_v0 = vcombine.low %v255_v61, %v263_v62 }
 0x10e   :  { %v6041_v16 = vcombine.low %v334_v2, %v342_v3  ;;  %v383_v62 = vld [vmem:[#allocation3 + $0x7a8] sm:$0xff] }
 0x110   :  { %2258 = vmatpush1.bf16.msra.mxu1 %v6087_v5  ;;  %2275 = vmatpush1.bf16.msra.mxu0 %v5897_v6  ;;  %v279_v5 = vld [vmem:[#allocation3 + $0x468] sm:$0xff]  ;;  %v6026_v6 = vcombine.high %v318_v57, %v326_v58  ;;  %v184_v57 = vld [vmem:[#allocation3 + $0x170] sm:$0xff] }
 0x111   :  { %2276 = vmatprep.subr.bf16.mxu0 %v5914_v10  ;;  %2309 = vmatprep.subr.bf16.mxu1 %v5852_v11  ;;  %v358_v10 = vld [vmem:[#allocation3 + $0x6e0] sm:$0xff]  ;;  %v287_v11 = vld [vmem:[#allocation3 + $0x4a8] sm:$0xff]  ;;  %v5980_v14 = vcombine.high %v271_v4, %v279_v5  ;;  %v5979_v17 = vcombine.low %v271_v4, %v279_v5 }
 0x112   :  { %v6058_v18 = vcombine.high %v350_v9, %v358_v10  ;;  %v6057_v23 = vcombine.low %v350_v9, %v358_v10 }
 0x113   :  { %2260 = vmatmul.mubr.bf16.vlgmr.msra.gmra.mrb[24].mxu1 %v7685_v35 }
 0x114   :  { %2277 = vmatpush1.bf16.msra.mxu0 %v5913_v12  ;;  %2310 = vmatpush1.bf16.msra.mxu1 %v5851_v13  ;;  %v295_v12 = vld [vmem:[#allocation3 + $0x4e8] sm:$0xff]  ;;  %v6042_v13 = vcombine.high %v334_v2, %v342_v3  ;;  %v192_v2 = vld [vmem:[#allocation3 + $0x1b0] sm:$0xff] }
 0x115   :  { %2278 = vmatprep.subr.bf16.mxu0 %v5930_v15  ;;  %2311 = vmatprep.subr.bf16.mxu1 %v5868_v19  ;;  %v5996_v15 = vcombine.high %v287_v11, %v295_v12  ;;  %v366_v19 = vld [vmem:[#allocation3 + $0x720] sm:$0xff]  ;;  %v5995_v24 = vcombine.low %v287_v11, %v295_v12  ;;  %v200_v3 = vld [vmem:[#allocation3 + $0x1f0] sm:$0xff] }
 0x116   :  { %2341 = vmatprep.mubr.bf16.mxu1 %v7671_v45  ;;  %v5902_v12 = vcombine.high %v192_v2, %v200_v3 }
 0x118   :  { %2279 = vmatpush1.bf16.msra.mxu0 %v5929_v20  ;;  %2312 = vmatpush1.bf16.msra.mxu1 %v5867_v21  ;;  %v374_v20 = vld [vmem:[#allocation3 + $0x760] sm:$0xff]  ;;  %v303_v21 = vld [vmem:[#allocation3 + $0x528] sm:$0xff] }
 0x119   :  { %2280 = vmatprep.subr.bf16.mxu0 %v5946_v25  ;;  %2313 = vmatprep.subr.bf16.mxu1 %v5884_v26  ;;  %v382_v25 = vld [vmem:[#allocation3 + $0x7a0] sm:$0xff]  ;;  %v6074_v27 = vcombine.high %v366_v19, %v374_v20  ;;  %v6073_v31 = vcombine.low %v366_v19, %v374_v20  ;;  %v6011_v32 = vcombine.low %v303_v21, %v311_v22 }
 0x11a   :  { %v390_v26 = vld [vmem:[#allocation3 + $0x7e0] sm:$0xff]  ;;  %v5901_v19 = vcombine.low %v192_v2, %v200_v3  ;;  %v272_v2 = vld [vmem:[#allocation3 + $0x430] sm:$0xff] }
 0x11b   :  { %v6089_v41 = vcombine.low %v382_v25, %v390_v26 }
 0x11c   :  { %2281 = vmatpush1.bf16.msra.mxu0 %v5945_v28  ;;  %2314 = vmatpush1.bf16.msra.mxu1 %v5883_v29  ;;  %v6012_v28 = vcombine.high %v303_v21, %v311_v22  ;;  %v319_v29 = vld [vmem:[#allocation3 + $0x5a8] sm:$0xff]  ;;  %v224_v22 = vld [vmem:[#allocation3 + $0x2b0] sm:$0xff] }
 0x11d   :  { %2282 = vmatprep.subr.bf16.mxu0 %v5962_v34  ;;  %2315 = vmatprep.subr.bf16.mxu1 %v5900_v36  ;;  %v343_v34 = vld [vmem:[#allocation3 + $0x668] sm:$0xff]  ;;  %v6090_v36 = vcombine.high %v382_v25, %v390_v26  ;;  %v6027_v42 = vcombine.low %v319_v29, %v327_v30  ;;  %v161_v25 = vld [vmem:[#allocation3 + $0xb8] sm:$0xff] }
 0x11e   :  { %v6044_v44 = vcombine.high %v335_v33, %v343_v34  ;;  %v6043_v50 = vcombine.low %v335_v33, %v343_v34  ;;  %v169_v26 = vld [vmem:[#allocation3 + $0xf8] sm:$0xff] }
 0x120   :  { %2283 = vmatpush1.bf16.msra.mxu0 %v5961_v37  ;;  %2316 = vmatpush1.bf16.msra.mxu1 %v5899_v38  ;;  %v6028_v37 = vcombine.high %v319_v29, %v327_v30  ;;  %v144_v38 = vld [vmem:[#allocation3 + $0x30] sm:$0xff] }
 0x121   :  { %2284 = vmatprep.subr.bf16.mxu0 %v5978_v46  ;;  %2317 = vmatprep.subr.bf16.mxu1 %v5916_v47  ;;  %v5854_v46 = vcombine.high %v144_v38, %v152_v40  ;;  %v351_v47 = vld [vmem:[#allocation3 + $0x6a8] sm:$0xff]  ;;  %v5853_v51 = vcombine.low %v144_v38, %v152_v40  ;;  %v240_v38 = vld [vmem:[#allocation3 + $0x330] sm:$0xff] }
 0x124   :  { %2285 = vmatpush1.bf16.msra.mxu0 %v5977_v48  ;;  %2318 = vmatpush1.bf16.msra.mxu1 %v5915_v39  ;;  %v359_v48 = vld [vmem:[#allocation3 + $0x6e8] sm:$0xff]  ;;  %v160_v39 = vld [vmem:[#allocation3 + $0xb0] sm:$0xff] }
 0x125   :  { %2286 = vmatprep.subr.bf16.mxu0 %v5994_v53  ;;  %2319 = vmatprep.subr.bf16.mxu1 %v5932_v54  ;;  %v6060_v52 = vcombine.high %v351_v47, %v359_v48  ;;  %v5870_v53 = vcombine.high %v160_v39, %v168_v49  ;;  %v367_v54 = vld [vmem:[#allocation3 + $0x728] sm:$0xff]  ;;  %v6059_v58 = vcombine.low %v351_v47, %v359_v48 }
 0x126   :  { %v5871_v47 = vcombine.low %v161_v25, %v169_v26 }
 0x128   :  { %2287 = vmatpush1.bf16.msra.mxu0 %v5993_v55  ;;  %2320 = vmatpush1.bf16.msra.mxu1 %v5931_v56  ;;  %v375_v55 = vld [vmem:[#allocation3 + $0x768] sm:$0xff]  ;;  %v176_v56 = vld [vmem:[#allocation3 + $0x130] sm:$0xff] }
 0x129   :  { %2288 = vmatprep.subr.bf16.mxu0 %v6010_v59  ;;  %2321 = vmatprep.subr.bf16.mxu1 %v5948_v60  ;;  %v5869_v59 = vcombine.low %v160_v39, %v168_v49  ;;  %v6076_v60 = vcombine.high %v367_v54, %v375_v55  ;;  %v5886_v61 = vcombine.high %v176_v56, %v184_v57  ;;  %v256_v49 = vld [vmem:[#allocation3 + $0x3b0] sm:$0xff] }
 0x12c   :  { %2289 = vmatpush1.bf16.msra.mxu0 %v6009_v63  ;;  %2322 = vmatpush1.bf16.msra.mxu1 %v5947_v1  ;;  %v391_v1 = vld [vmem:[#allocation3 + $0x7e8] sm:$0xff] }
 0x12d   :  { %2290 = vmatprep.subr.bf16.mxu0 %v6026_v6  ;;  %2323 = vmatprep.subr.bf16.mxu1 %v5964_v7  ;;  %v6092_v11 = vcombine.high %v383_v62, %v391_v1 }
 0x130   :  { %2291 = vmatpush1.bf16.msra.mxu0 %v6025_v8  ;;  %2324 = vmatpush1.bf16.msra.mxu1 %v5963_v0  ;;  %v6075_v8 = vcombine.low %v367_v54, %v375_v55  ;;  %v5885_v0 = vcombine.low %v176_v56, %v184_v57 }
 0x131   :  { %2292 = vmatprep.subr.bf16.mxu0 %v6042_v13  ;;  %2325 = vmatprep.subr.bf16.mxu1 %v5980_v14  ;;  %v208_v13 = vld [vmem:[#allocation3 + $0x230] sm:$0xff] }
 0x134   :  { %2293 = vmatpush1.bf16.msra.mxu0 %v6041_v16  ;;  %2326 = vmatpush1.bf16.msra.mxu1 %v5979_v17  ;;  %v216_v16 = vld [vmem:[#allocation3 + $0x270] sm:$0xff]  ;;  %v145_v17 = vld [vmem:[#allocation3 + $0x38] sm:$0xff] }
 0x135   :  { %2294 = vmatprep.subr.bf16.mxu0 %v6058_v18  ;;  %2327 = vmatprep.subr.bf16.mxu1 %v5996_v15  ;;  %v153_v18 = vld [vmem:[#allocation3 + $0x78] sm:$0xff]  ;;  %v6091_v15 = vcombine.low %v383_v62, %v391_v1  ;;  %v5918_v20 = vcombine.high %v208_v13, %v216_v16 }
 0x136   :  { %v5856_v21 = vcombine.high %v145_v17, %v153_v18 }
 0x138   :  { %2295 = vmatpush1.bf16.msra.mxu0 %v6057_v23  ;;  %2328 = vmatpush1.bf16.msra.mxu1 %v5995_v24  ;;  %v232_v24 = vld [vmem:[#allocation3 + $0x2f0] sm:$0xff] }
 0x139   :  { %2296 = vmatprep.subr.bf16.mxu0 %v6074_v27  ;;  %2329 = vmatprep.subr.bf16.mxu1 %v6012_v28 }
 0x13c   :  { %2297 = vmatpush1.bf16.msra.mxu0 %v6073_v31  ;;  %2330 = vmatpush1.bf16.msra.mxu1 %v6011_v32  ;;  %v5917_v31 = vcombine.low %v208_v13, %v216_v16  ;;  %v5855_v32 = vcombine.low %v145_v17, %v153_v18  ;;  %v225_v16 = vld [vmem:[#allocation3 + $0x2b8] sm:$0xff] }
 0x13d   :  { %2298 = vmatprep.subr.bf16.mxu0 %v6090_v36  ;;  %2331 = vmatprep.subr.bf16.mxu1 %v6028_v37  ;;  %v5934_v36 = vcombine.high %v224_v22, %v232_v24  ;;  %v5872_v37 = vcombine.high %v161_v25, %v169_v26  ;;  %v233_v17 = vld [vmem:[#allocation3 + $0x2f8] sm:$0xff]  ;;  %v304_v25 = vld [vmem:[#allocation3 + $0x530] sm:$0xff] }
 0x13e   :  { %v312_v26 = vld [vmem:[#allocation3 + $0x570] sm:$0xff] }
 0x140   :  { %2299 = vmatpush1.bf16.msra.mxu0 %v6089_v41  ;;  %2332 = vmatpush1.bf16.msra.mxu1 %v6027_v42  ;;  %v248_v41 = vld [vmem:[#allocation3 + $0x370] sm:$0xff]  ;;  %v177_v42 = vld [vmem:[#allocation3 + $0x138] sm:$0xff] }
 0x141   :  { %2333 = vmatprep.subr.bf16.mxu1 %v6044_v44  ;;  %2350 = vmatprep.subr.bf16.mxu0 %v5854_v46  ;;  %v185_v44 = vld [vmem:[#allocation3 + $0x178] sm:$0xff]  ;;  %v5933_v46 = vcombine.low %v224_v22, %v232_v24  ;;  %v5950_v48 = vcombine.high %v240_v38, %v248_v41  ;;  %v5936_v24 = vcombine.high %v225_v16, %v233_v17 }
 0x142   :  { %v5888_v39 = vcombine.high %v177_v42, %v185_v44 }
 0x143   :  { %2301 = vmatmul.mubr.bf16.vlgmr.msra.gmra.mrb[20].mxu0 %v7685_v35 }
 0x144   :  { %2334 = vmatpush1.bf16.msra.mxu1 %v6043_v50  ;;  %2351 = vmatpush1.bf16.msra.mxu0 %v5853_v51  ;;  %v264_v51 = vld [vmem:[#allocation3 + $0x3f0] sm:$0xff] }
 0x145   :  { %2335 = vmatprep.subr.bf16.mxu1 %v6060_v52  ;;  %2352 = vmatprep.subr.bf16.mxu0 %v5870_v53  ;;  %v193_v52 = vld [vmem:[#allocation3 + $0x1b8] sm:$0xff]  ;;  %v5966_v62 = vcombine.high %v256_v49, %v264_v51 }
 0x146   :  { %v7696_v63 = vpop.f32.mrb[0].mxu1  ;;  %v7698_v4 = vpop.f32.mrb[0].mxu0  ;;  %2382 = vmatprep.mubr.bf16.mxu0 %v7671_v45  ;;  %v201_v53 = vld [vmem:[#allocation3 + $0x1f8] sm:$0xff] }
 0x147   :  { %v7701_v5 = vpop.f32.mrb[1].mxu1  ;;  %v7703_v6 = vpop.f32.mrb[1].mxu0  ;;  %v5904_v1 = vcombine.high %v193_v52, %v201_v53 }
 0x148   :  { %2336 = vmatpush1.bf16.msra.mxu1 %v6059_v58  ;;  %2353 = vmatpush1.bf16.msra.mxu0 %v5869_v59  ;;  %v534_v7 = vpop.f32.mrb[2].mxu1  ;;  %v616_v9 = vpop.f32.mrb[2].mxu0  ;;  %v5949_v58 = vcombine.low %v240_v38, %v248_v41  ;;  %v5887_v59 = vcombine.low %v177_v42, %v185_v44  ;;  %v257_v41 = vld [vmem:[#allocation3 + $0x3b8] sm:$0xff] }
 0x149   :  { %v535_v10 = vpop.f32.mrb[3].mxu1  ;;  %2337 = vmatprep.subr.bf16.mxu1 %v6076_v60  ;;  %2354 = vmatprep.subr.bf16.mxu0 %v5886_v61  ;;  %v617_v14 = vpop.f32.mrb[3].mxu0  ;;  %v280_v7 = vld [vmem:[#allocation3 + $0x470] sm:$0xff]  ;;  %v5903_v9 = vcombine.low %v193_v52, %v201_v53  ;;  %v265_v42 = vld [vmem:[#allocation3 + $0x3f8] sm:$0xff] }
 0x14a   :  { %v5982_v10 = vcombine.high %v272_v2, %v280_v7  ;;  %v296_v14 = vld [vmem:[#allocation3 + $0x4f0] sm:$0xff] }
 0x14b   :  { %v336_v52 = vld [vmem:[#allocation3 + $0x630] sm:$0xff] }
 0x14c   :  { %2338 = vmatpush1.bf16.msra.mxu1 %v6075_v8  ;;  %2355 = vmatpush1.bf16.msra.mxu0 %v5885_v0  ;;  %v209_v8 = vld [vmem:[#allocation3 + $0x238] sm:$0xff]  ;;  %v5965_v0 = vcombine.low %v256_v49, %v264_v51  ;;  %v5968_v51 = vcombine.high %v257_v41, %v265_v42  ;;  %v344_v53 = vld [vmem:[#allocation3 + $0x670] sm:$0xff] }
 0x14d   :  { %2339 = vmatprep.subr.bf16.mxu1 %v6092_v11  ;;  %2356 = vmatprep.subr.bf16.mxu0 %v5902_v12  ;;  %v288_v12 = vld [vmem:[#allocation3 + $0x4b0] sm:$0xff] }
 0x14e   :  { %v7705_v23 = vpop.f32.mrb[4].mxu1  ;;  %v7707_v27 = vpop.f32.mrb[4].mxu0  ;;  %v5998_v22 = vcombine.high %v288_v12, %v296_v14 }
 0x14f   :  { %v7709_v28 = vpop.f32.mrb[5].mxu1  ;;  %v7711_v29 = vpop.f32.mrb[5].mxu0 }
 0x150   :  { %2340 = vmatpush1.bf16.msra.mxu1 %v6091_v15  ;;  %2357 = vmatpush1.bf16.msra.mxu0 %v5901_v19  ;;  %v575_v30 = vpop.f32.mrb[6].mxu1  ;;  %v698_v33 = vpop.f32.mrb[6].mxu0  ;;  %v5981_v19 = vcombine.low %v272_v2, %v280_v7  ;;  %v360_v2 = vld [vmem:[#allocation3 + $0x6f0] sm:$0xff]  ;;  %v297_v7 = vld [vmem:[#allocation3 + $0x4f8] sm:$0xff] }
 0x151   :  { %v576_v34 = vpop.f32.mrb[7].mxu1  ;;  %2358 = vmatprep.subr.bf16.mxu0 %v5918_v20  ;;  %2391 = vmatprep.subr.bf16.mxu1 %v5856_v21  ;;  %v699_v40 = vpop.f32.mrb[7].mxu0  ;;  %v241_v30 = vld [vmem:[#allocation3 + $0x338] sm:$0xff]  ;;  %v5935_v33 = vcombine.low %v225_v16, %v233_v17 }
 0x152   :  { %v6014_v34 = vcombine.high %v304_v25, %v312_v26  ;;  %v328_v40 = vld [vmem:[#allocation3 + $0x5f0] sm:$0xff] }
 0x153   :  { %2342 = vmatmul.mubr.bf16.vlgmr.msra.gmra.mrb[28].mxu1 %v7685_v35 }
 0x154   :  { %2359 = vmatpush1.bf16.msra.mxu0 %v5917_v31  ;;  %2392 = vmatpush1.bf16.msra.mxu1 %v5855_v32  ;;  %v249_v31 = vld [vmem:[#allocation3 + $0x378] sm:$0xff]  ;;  %v5997_v32 = vcombine.low %v288_v12, %v296_v14 }
 0x155   :  { %2360 = vmatprep.subr.bf16.mxu0 %v5934_v36  ;;  %2393 = vmatprep.subr.bf16.mxu1 %v5872_v37  ;;  %v5952_v36 = vcombine.high %v241_v30, %v249_v31  ;;  %v320_v37 = vld [vmem:[#allocation3 + $0x5b0] sm:$0xff]  ;;  %v305_v12 = vld [vmem:[#allocation3 + $0x538] sm:$0xff] }
 0x156   :  { %v7714_v50 = vpop.f32.mrb[8].mxu1  ;;  %v7716_v54 = vpop.f32.mrb[8].mxu0  ;;  %2423 = vmatprep.mubr.bf16.mxu1 %v7671_v45  ;;  %v217_v45 = vld [vmem:[#allocation3 + $0x278] sm:$0xff]  ;;  %v6030_v49 = vcombine.high %v320_v37, %v328_v40 }
 0x157   :  { %v7719_v55 = vpop.f32.mrb[9].mxu1  ;;  %v7721_v56 = vpop.f32.mrb[9].mxu0  ;;  %v5920_v11 = vcombine.high %v209_v8, %v217_v45  ;;  %v5919_v20 = vcombine.low %v209_v8, %v217_v45  ;;  %v6045_v8 = vcombine.low %v336_v52, %v344_v53  ;;  %v313_v14 = vld [vmem:[#allocation3 + $0x578] sm:$0xff] }
 0x158   :  { %2361 = vmatpush1.bf16.msra.mxu0 %v5933_v46  ;;  %2394 = vmatpush1.bf16.msra.mxu1 %v5871_v47  ;;  %v657_v57 = vpop.f32.mrb[10].mxu1  ;;  %v780_v60 = vpop.f32.mrb[10].mxu0  ;;  %v6013_v47 = vcombine.low %v304_v25, %v312_v26  ;;  %v6015_v26 = vcombine.low %v305_v12, %v313_v14 }
 0x159   :  { %v658_v61 = vpop.f32.mrb[11].mxu1  ;;  %2362 = vmatprep.subr.bf16.mxu0 %v5950_v48  ;;  %2395 = vmatprep.subr.bf16.mxu1 %v5888_v39  ;;  %v781_v3 = vpop.f32.mrb[11].mxu0  ;;  %v5951_v48 = vcombine.low %v241_v30, %v249_v31  ;;  %v273_v57 = vld [vmem:[#allocation3 + $0x438] sm:$0xff]  ;;  %v5967_v60 = vcombine.low %v257_v41, %v265_v42 }
 0x15a   :  { %v6046_v61 = vcombine.high %v336_v52, %v344_v53  ;;  %v289_v3 = vld [vmem:[#allocation3 + $0x4b8] sm:$0xff] }
 0x15b   :  { %v5999_v17 = vcombine.low %v289_v3, %v297_v7  ;;  %v353_v41 = vld [vmem:[#allocation3 + $0x6b8] sm:$0xff] }
 0x15c   :  { %2363 = vmatpush1.bf16.msra.mxu0 %v5949_v58  ;;  %2396 = vmatpush1.bf16.msra.mxu1 %v5887_v59  ;;  %v281_v58 = vld [vmem:[#allocation3 + $0x478] sm:$0xff]  ;;  %v6029_v59 = vcombine.low %v320_v37, %v328_v40  ;;  %v6801_v40 = vld [vmem:[#allocation6 + $0x4] ss:$8 sps:$4 sm:$0xff]  }
 0x15d   :  { %2364 = vmatprep.subr.bf16.mxu0 %v5966_v62  ;;  %2397 = vmatprep.subr.bf16.mxu1 %v5904_v1  ;;  %v5984_v62 = vcombine.high %v273_v57, %v281_v58  ;;  %v352_v1 = vld [vmem:[#allocation3 + $0x6b0] sm:$0xff]  ;;  %v5983_v45 = vcombine.low %v273_v57, %v281_v58  ;;  %v361_v42 = vld [vmem:[#allocation3 + $0x6f8] sm:$0xff]  ;;  %v6807_v58 = vld [vmem:[#allocation6 + $0x24] ss:$8 sps:$4 sm:$0xff]  }
 0x15e   :  { %v7723_v13 = vpop.f32.mrb[12].mxu1  ;;  %v6061_v16 = vcombine.low %v352_v1, %v360_v2  ;;  %v6063_v52 = vcombine.low %v353_v41, %v361_v42  ;;  %v6802_v53 = vld [vmem:[#allocation6 + $0x10] ss:$8 sps:$4 sm:$0xff]  }
 0x15f   :  { %v7725_v18 = vpop.f32.mrb[13].mxu1 }
 0x160   :  { %2365 = vmatpush1.bf16.msra.mxu0 %v5965_v0  ;;  %2398 = vmatpush1.bf16.msra.mxu1 %v5903_v9  ;;  %v739_v15 = vpop.f32.mrb[14].mxu1  ;;  %v6062_v0 = vcombine.high %v352_v1, %v360_v2  ;;  %v6000_v9 = vcombine.high %v289_v3, %v297_v7  ;;  %v2436_v2 = vlaneseq  ;;  %v6810_v3 = vld [vmem:[#allocation6 + $0x34] ss:$8 sps:$4 sm:$0xff]  }
 0x161   :  { %v740_v21 = vpop.f32.mrb[15].mxu1  ;;  %2366 = vmatprep.subr.bf16.mxu0 %v5982_v10  ;;  %2399 = vmatprep.subr.bf16.mxu1 %v5920_v11  ;;  %v368_v10 = vld [vmem:[#allocation3 + $0x730] sm:$0xff] }
 0x162   :  { %v376_v11 = vld [vmem:[#allocation3 + $0x770] sm:$0xff] }
 0x163   :  { %v6078_v15 = vcombine.high %v368_v10, %v376_v11  ;;  %v392_v21 = vld [vmem:[#allocation3 + $0x7f0] sm:$0xff]  ;;  %v6077_v25 = vcombine.low %v368_v10, %v376_v11 }
 0x164   :  { %2367 = vmatpush1.bf16.msra.mxu0 %v5981_v19  ;;  %2400 = vmatpush1.bf16.msra.mxu1 %v5919_v20  ;;  %v6016_v19 = vcombine.high %v305_v12, %v313_v14  ;;  %v384_v20 = vld [vmem:[#allocation3 + $0x7b0] sm:$0xff]  ;;  %v7740_v12 = vld [vmem:[%s8403_s4] sm:$0xff] }
 0x165   :  { %2368 = vmatprep.subr.bf16.mxu0 %v5998_v22  ;;  %2401 = vmatprep.subr.bf16.mxu1 %v5936_v24  ;;  %v321_v22 = vld [vmem:[#allocation3 + $0x5b8] sm:$0xff]  ;;  %v6094_v30 = vcombine.high %v384_v20, %v392_v21 }
 0x166   :  { %v7727_v38 = vpop.f32.mrb[16].mxu1  ;;  %v329_v24 = vld [vmem:[#allocation3 + $0x5f8] sm:$0xff] }
 0x167   :  { %v7729_v44 = vpop.f32.mrb[17].mxu1  ;;  %v6032_v31 = vcombine.high %v321_v22, %v329_v24  ;;  %v6816_v11 = vld [vmem:[#allocation6 + $0x54] ss:$8 sps:$4 sm:$0xff]  }
 0x168   :  { %2369 = vmatpush1.bf16.msra.mxu0 %v5997_v32  ;;  %2402 = vmatpush1.bf16.msra.mxu1 %v5935_v33  ;;  %v821_v46 = vpop.f32.mrb[18].mxu1  ;;  %v337_v32 = vld [vmem:[#allocation3 + $0x638] sm:$0xff] }
 0x169   :  { %v822_v39 = vpop.f32.mrb[19].mxu1  ;;  %2370 = vmatprep.subr.bf16.mxu0 %v6014_v34  ;;  %2403 = vmatprep.subr.bf16.mxu1 %v5952_v36  ;;  %v345_v33 = vld [vmem:[#allocation3 + $0x678] sm:$0xff]  ;;  %v6093_v34 = vcombine.low %v384_v20, %v392_v21  ;;  %v6031_v36 = vcombine.low %v321_v22, %v329_v24 }
 0x16a   :  { %v6048_v37 = vcombine.high %v337_v32, %v345_v33  ;;  %v6047_v46 = vcombine.low %v337_v32, %v345_v33  ;;  %v6804_v39 = vld [vmem:[#allocation6 + $0x14] ss:$8 sps:$4 sm:$0xff]  }
 0x16c   :  { %2371 = vmatpush1.bf16.msra.mxu0 %v6013_v47  ;;  %2404 = vmatpush1.bf16.msra.mxu1 %v5951_v48  ;;  %v6799_v47 = vld [vmem:[#allocation6] ss:$8 sps:$4 sm:$0xff]   ;;  %v6064_v48 = vcombine.high %v353_v41, %v361_v42  ;;  %v6828_v42 = vld [vmem:[#allocation6 + $0x94] ss:$8 sps:$4 sm:$0xff]  }
 0x16d   :  { %2372 = vmatprep.subr.bf16.mxu0 %v6030_v49  ;;  %2405 = vmatprep.subr.bf16.mxu1 %v5968_v51  ;;  %v369_v49 = vld [vmem:[#allocation3 + $0x738] sm:$0xff] }
 0x16e   :  { %v377_v51 = vld [vmem:[#allocation3 + $0x778] sm:$0xff] }
 0x16f   :  { %v6080_v57 = vcombine.high %v369_v49, %v377_v51 }
 0x170   :  { %2373 = vmatpush1.bf16.msra.mxu0 %v6029_v59  ;;  %2406 = vmatpush1.bf16.msra.mxu1 %v5967_v60  ;;  %v385_v59 = vld [vmem:[#allocation3 + $0x7b8] sm:$0xff] }
 0x171   :  { %2374 = vmatprep.subr.bf16.mxu0 %v6046_v61  ;;  %2407 = vmatprep.subr.bf16.mxu1 %v5984_v62  ;;  %v393_v60 = vld [vmem:[#allocation3 + $0x7f8] sm:$0xff]  ;;  %v6079_v61 = vcombine.low %v369_v49, %v377_v51  ;;  %v6805_v62 = vld [vmem:[#allocation6 + $0x20] ss:$8 sps:$4 sm:$0xff]  }
 0x172   :  { %v6096_v1 = vcombine.high %v385_v59, %v393_v60  ;;  %v6095_v7 = vcombine.low %v385_v59, %v393_v60  ;;  %v6829_v59 = vld [vmem:[#allocation6 + $0xa0] ss:$8 sps:$4 sm:$0xff]  }
 0x174   :  { %2375 = vmatpush1.bf16.msra.mxu0 %v6045_v8  ;;  %2408 = vmatpush1.bf16.msra.mxu1 %v5983_v45  ;;  %v6808_v8 = vld [vmem:[#allocation6 + $0x30] ss:$8 sps:$4 sm:$0xff]   ;;  %v7732_v45 = vshrl.u32 %v2436_v2, 7 }
 0x175   :  { %2376 = vmatprep.subr.bf16.mxu0 %v6062_v0  ;;  %2409 = vmatprep.subr.bf16.mxu1 %v6000_v9  ;;  %v6813_v0 = vld [vmem:[#allocation6 + $0x44] ss:$8 sps:$4 sm:$0xff]   ;;  %v6811_v9 = vld [vmem:[#allocation6 + $0x40] ss:$8 sps:$4 sm:$0xff]  }
 0x176   :  { %v7735_v10 = vsub.s32 0, %v7732_v45  ;;  %v7743_v14 = vsub.s32 1, %v7732_v45  ;;  %v2446_v41 = vsub.s32 2, %v7732_v45  ;;  %vm2653_vm10 = vcmp.lt.s32.totalorder %v7732_v45, 4 }
 0x178   :  { %2377 = vmatpush1.bf16.msra.mxu0 %v6061_v16  ;;  %2410 = vmatpush1.bf16.msra.mxu1 %v5999_v17  ;;  %v6814_v16 = vld [vmem:[#allocation6 + $0x50] ss:$8 sps:$4 sm:$0xff]   ;;  %v2439_v17 = vrot.slane %v7740_v12, %v7735_v10  ;;  %v2443_v20 = vrot.slane %v7740_v12, %v7743_v14 }
 0x179   :  { %2378 = vmatprep.subr.bf16.mxu0 %v6078_v15  ;;  %2411 = vmatprep.subr.bf16.mxu1 %v6016_v19  ;;  %v6819_v15 = vld [vmem:[#allocation6 + $0x64] ss:$8 sps:$4 sm:$0xff]  }
 0x17c   :  { %2379 = vmatpush1.bf16.msra.mxu0 %v6077_v25  ;;  %2412 = vmatpush1.bf16.msra.mxu1 %v6015_v26  ;;  %v6817_v26 = vld [vmem:[#allocation6 + $0x60] ss:$8 sps:$4 sm:$0xff]  }
 0x17d   :  { %2380 = vmatprep.subr.bf16.mxu0 %v6094_v30  ;;  %2413 = vmatprep.subr.bf16.mxu1 %v6032_v31  ;;  %v6822_v31 = vld [vmem:[#allocation6 + $0x74] ss:$8 sps:$4 sm:$0xff]  }
 0x180   :  { %2381 = vmatpush1.bf16.msra.mxu0 %v6093_v34  ;;  %2414 = vmatpush1.bf16.msra.mxu1 %v6031_v36  ;;  %v6820_v36 = vld [vmem:[#allocation6 + $0x70] ss:$8 sps:$4 sm:$0xff]  }
 0x181   :  { %2415 = vmatprep.subr.bf16.mxu1 %v6048_v37  ;;  %3290 = vmatprep.subr.bf16.mxu0 %v6801_v40 }
 0x183   :  { %2383 = vmatmul.mubr.bf16.vlgmr.msra.gmra.mrb[24].mxu0 %v7685_v35 }
 0x184   :  { %2416 = vmatpush1.bf16.msra.mxu1 %v6047_v46  ;;  %3291 = vmatpush1.bf16.msra.mxu0 %v6799_v47  ;;  %v2450_v46 = vsub.s32 3, %v7732_v45  ;;  %v6826_v47 = vld [vmem:[#allocation6 + $0x90] ss:$8 sps:$4 sm:$0xff]  }
 0x185   :  { %2417 = vmatprep.subr.bf16.mxu1 %v6064_v48  ;;  %3292 = vmatprep.subr.bf16.mxu0 %v6804_v39  ;;  %v2447_v48 = vrot.slane %v7740_v12, %v2446_v41  ;;  %v6831_v39 = vld [vmem:[#allocation6 + $0xa4] ss:$8 sps:$4 sm:$0xff]  }
 0x186   :  { %v2451_v51 = vrot.slane %v7740_v12, %v2450_v46 }
 0x188   :  { %2418 = vmatpush1.bf16.msra.mxu1 %v6063_v52  ;;  %3293 = vmatpush1.bf16.msra.mxu0 %v6802_v53 }
 0x189   :  { %2419 = vmatprep.subr.bf16.mxu1 %v6080_v57  ;;  %3294 = vmatprep.subr.bf16.mxu0 %v6807_v58 }
 0x18c   :  { %2420 = vmatpush1.bf16.msra.mxu1 %v6079_v61  ;;  %3295 = vmatpush1.bf16.msra.mxu0 %v6805_v62  ;;  %v6834_v62 = vld [vmem:[#allocation6 + $0xb4] ss:$8 sps:$4 sm:$0xff]  }
 0x18d   :  { %2421 = vmatprep.subr.bf16.mxu1 %v6096_v1  ;;  %3296 = vmatprep.subr.bf16.mxu0 %v6810_v3 }
 0x190   :  { %2422 = vmatpush1.bf16.msra.mxu1 %v6095_v7  ;;  %3297 = vmatpush1.bf16.msra.mxu0 %v6808_v8  ;;  %v6832_v7 = vld [vmem:[#allocation6 + $0xb0] ss:$8 sps:$4 sm:$0xff]  }
 0x191   :  { %3298 = vmatprep.subr.bf16.mxu0 %v6813_v0 }
 0x193   :  { %2424 = vmatmul.mubr.bf16.vlgmr.msra.gmra.mrb[32].mxu1 %v7685_v35 }
 0x194   :  { %3299 = vmatpush1.bf16.msra.mxu0 %v6811_v9 }
 0x195   :  { %3300 = vmatprep.subr.bf16.mxu0 %v6816_v11  ;;  %v6835_v11 = vld [vmem:[#allocation6 + $0xc0] ss:$8 sps:$4 sm:$0xff]  }
 0x196   :  { %v2138_v19 = vpop.f32.mrb[12].mxu0 }
 0x197   :  { %v2139_v21 = vadd.f32 %v2138_v19, %v7696_v63  ;;  %v2140_v22 = vpop.f32.mrb[13].mxu0  ;;  %v6825_v63 = vld [vmem:[#allocation6 + $0x84] ss:$8 sps:$4 sm:$0xff]   ;;  %v6841_v19 = vld [vmem:[#allocation6 + $0xe0] ss:$8 sps:$4 sm:$0xff]  }
 0x198   :  { %v2141_v24 = vadd.f32 %v2140_v22, %v7701_v5  ;;  %v2142_v25 = vpop.f32.mrb[14].mxu0  ;;  %3301 = vmatpush1.bf16.msra.mxu0 %v6814_v16  ;;  %v6823_v5 = vld [vmem:[#allocation6 + $0x80] ss:$8 sps:$4 sm:$0xff]   ;;  %v6840_v16 = vld [vmem:[#allocation6 + $0xd4] ss:$8 sps:$4 sm:$0xff]  }
 0x199   :  { %v2516_v35 = vadd.f32 %v2439_v17, %v2139_v21  ;;  %v2143_v30 = vpop.f32.mrb[15].mxu0  ;;  %3302 = vmatprep.subr.bf16.mxu0 %v6819_v15  ;;  %v6838_v17 = vld [vmem:[#allocation6 + $0xd0] ss:$8 sps:$4 sm:$0xff]   ;;  %v6843_v15 = vld [vmem:[#allocation6 + $0xe4] ss:$8 sps:$4 sm:$0xff]   ;;  %v2458_v25 = vsub.s32 5, %v7732_v45 }
 0x19a   :  { %v2517_v32 = vadd.f32 %v2443_v20, %v2141_v24  ;;  %v6846_v20 = vld [vmem:[#allocation6 + $0xf4] ss:$8 sps:$4 sm:$0xff]   ;;  %v6844_v21 = vld [vmem:[#allocation6 + $0xf0] ss:$8 sps:$4 sm:$0xff]   ;;  %v6849_v22 = vld [vmem:[#allocation6 + $0x104] ss:$8 sps:$4 sm:$0xff]  }
 0x19b   :  { %vm2532_vm2 = vcmp.ge.f32.partialorder %v2516_v35, 0.0  ;;  %v2548_v33 = vmul.f32 0.2, %v2516_v35  ;;  %v2454_v24 = vsub.s32 4, %v7732_v45  ;;  %v2459_v30 = vrot.slane %v7740_v12, %v2458_v25 }
 0x19c   :  { %vm2533_vm3 = vcmp.ge.f32.partialorder %v2517_v32, 0.0  ;;  %v2549_v34 = vmul.f32 0.2, %v2517_v32  ;;  %3303 = vmatpush1.bf16.msra.mxu0 %v6817_v26 }
 0x19d   :  { %v2564_v37 = vsel %vm2532_vm2, %v2516_v35, %v2548_v33  ;;  %3304 = vmatprep.subr.bf16.mxu0 %v6822_v31  ;;  %v2455_v26 = vrot.slane %v7740_v12, %v2454_v24 }
 0x19e   :  { %2580 = vst [vmem:[#allocation2] sm:$0xf] %v2564_v37  ;;  %v2565_v40 = vsel %vm2533_vm3, %v2517_v32, %v2549_v34  ;;  %vm2637_vm3 = vcmp.ge.s32.totalorder %v7732_v45, 4 }
 0x19f   :  { %2581 = vst [vmem:[#allocation2 + $0x8] sm:$0xf] %v2565_v40 }
 0x1a0   :  { %3305 = vmatpush1.bf16.msra.mxu0 %v6820_v36 }
 0x1a1   :  { %3306 = vmatprep.subr.bf16.mxu0 %v6825_v63 }
 0x1a4   :  { %3307 = vmatpush1.bf16.msra.mxu0 %v6823_v5 }
 0x1a5   :  { %3308 = vmatprep.subr.bf16.mxu0 %v6828_v42 }
 0x1a6   :  { %v2179_v49 = vpop.f32.mrb[20].mxu1 }
 0x1a7   :  { %v2180_v52 = vadd.f32 %v2179_v49, %v7705_v23  ;;  %v2181_v53 = vpop.f32.mrb[21].mxu1  ;;  %v6837_v23 = vld [vmem:[#allocation6 + $0xc4] ss:$8 sps:$4 sm:$0xff]  }
 0x1a8   :  { %v2182_v57 = vadd.f32 %v2181_v53, %v7709_v28  ;;  %v2183_v58 = vpop.f32.mrb[22].mxu1  ;;  %3309 = vmatpush1.bf16.msra.mxu0 %v6826_v47 }
 0x1a9   :  { %v2518_v60 = vadd.f32 %v2447_v48, %v2180_v52  ;;  %v2184_v61 = vpop.f32.mrb[23].mxu1  ;;  %3310 = vmatprep.subr.bf16.mxu0 %v6831_v39  ;;  %v2462_v48 = vsub.s32 6, %v7732_v45  ;;  %v2466_v39 = vsub.s32 7, %v7732_v45 }
 0x1aa   :  { %v2519_v1 = vadd.f32 %v2451_v51, %v2182_v57 }
 0x1ab   :  { %vm2534_vm4 = vcmp.ge.f32.partialorder %v2518_v60, 0.0  ;;  %v2550_v2 = vmul.f32 0.2, %v2518_v60  ;;  %v2467_v49 = vrot.slane %v7740_v12, %v2466_v39 }
 0x1ac   :  { %vm2535_vm5 = vcmp.ge.f32.partialorder %v2519_v1, 0.0  ;;  %v2551_v3 = vmul.f32 0.2, %v2519_v1  ;;  %3311 = vmatpush1.bf16.msra.mxu0 %v6829_v59 }
 0x1ad   :  { %v2566_v8 = vsel %vm2534_vm4, %v2518_v60, %v2550_v2  ;;  %3312 = vmatprep.subr.bf16.mxu0 %v6834_v62  ;;  %vm7422_vm4 = vmmov 1  }
 0x1ae   :  { %v2584_v0 = vrot.slane %v2566_v8, 4  ;;  %v2567_v9 = vsel %vm2535_vm5, %v2519_v1, %v2551_v3  ;;  %vm7900_vm5 = vmpackc.low %vm7422_vm4, %vm2637_vm3 }
 0x1af   :  { %v2585_v28 = vrot.slane %v2567_v9, 4 }
 0x1b0   :  { %2588 = vst [vmem:[#allocation2] sm:$0xf0] %v2584_v0  ;;  %3313 = vmatpush1.bf16.msra.mxu0 %v6832_v7 }
 0x1b1   :  { %2589 = vst [vmem:[#allocation2 + $0x8] sm:$0xf0] %v2585_v28  ;;  %3314 = vmatprep.subr.bf16.mxu0 %v6837_v23 }
 0x1b4   :  { %3315 = vmatpush1.bf16.msra.mxu0 %v6835_v11 }
 0x1b5   :  { %3316 = vmatprep.subr.bf16.mxu0 %v6840_v16  ;;  %v6847_v16 = vld [vmem:[#allocation6 + $0x100] ss:$8 sps:$4 sm:$0xff]  }
 0x1b8   :  { %3317 = vmatpush1.bf16.msra.mxu0 %v6838_v17 }
 0x1b9   :  { %3318 = vmatprep.subr.bf16.mxu0 %v6843_v15  ;;  %v6852_v15 = vld [vmem:[#allocation6 + $0x114] ss:$8 sps:$4 sm:$0xff]  }
 0x1bc   :  { %3319 = vmatpush1.bf16.msra.mxu0 %v6841_v19 }
 0x1bd   :  { %3320 = vmatprep.subr.bf16.mxu0 %v6846_v20 }
 0x1c0   :  { %3321 = vmatpush1.bf16.msra.mxu0 %v6844_v21  ;;  %v6850_v21 = vld [vmem:[#allocation6 + $0x110] ss:$8 sps:$4 sm:$0xff]  }
 0x1c1   :  { %3343 = vmatprep.subr.bf16.mxu0 %v6849_v22  ;;  %v6855_v22 = vld [vmem:[#allocation6 + $0x124] ss:$8 sps:$4 sm:$0xff]  }
 0x1d6   :  { %v2220_v35 = vpop.f32.mrb[16].mxu0 }
 0x1d7   :  { %v2221_v31 = vadd.f32 %v2220_v35, %v7698_v4  ;;  %v2222_v32 = vpop.f32.mrb[17].mxu0  ;;  %v2463_v4 = vrot.slane %v7740_v12, %v2462_v48  ;;  %v7782_v12 = vld [vmem:[#allocation2] sm:$0xff]  ;;  %v6858_v35 = vld [vmem:[#allocation6 + $0x134] ss:$8 sps:$4 sm:$0xff]  }
 0x1d8   :  { %v2223_v33 = vadd.f32 %v2222_v32, %v7703_v6  ;;  %v2224_v34 = vpop.f32.mrb[18].mxu0  ;;  %v2645_v23 = vrot.slane %v7782_v12, 4  ;;  %v6859_v32 = vld [vmem:[#allocation6 + $0x140] ss:$8 sps:$4 sm:$0xff]  }
 0x1d9   :  { %v2520_v36 = vadd.f32 %v2455_v26, %v2221_v31  ;;  %v2225_v37 = vpop.f32.mrb[19].mxu0  ;;  %v6853_v26 = vld [vmem:[#allocation6 + $0x120] ss:$8 sps:$4 sm:$0xff]   ;;  %v6861_v31 = vld [vmem:[#allocation6 + $0x144] ss:$8 sps:$4 sm:$0xff]  }
 0x1da   :  { %v2521_v63 = vadd.f32 %v2459_v30, %v2223_v33  ;;  %v6856_v30 = vld [vmem:[#allocation6 + $0x130] ss:$8 sps:$4 sm:$0xff]   ;;  %v6864_v33 = vld [vmem:[#allocation6 + $0x154] ss:$8 sps:$4 sm:$0xff]   ;;  %v6865_v37 = vld [vmem:[#allocation6 + $0x160] ss:$8 sps:$4 sm:$0xff]  }
 0x1db   :  { %vm2536_vm6 = vcmp.ge.f32.partialorder %v2520_v36, 0.0  ;;  %v2552_v40 = vmul.f32 0.2, %v2520_v36  ;;  %v6862_v34 = vld [vmem:[#allocation6 + $0x150] ss:$8 sps:$4 sm:$0xff]  }
 0x1dc   :  { %vm2537_vm7 = vcmp.ge.f32.partialorder %v2521_v63, 0.0  ;;  %v2553_v5 = vmul.f32 0.2, %v2521_v63 }
 0x1dd   :  { %v2568_v42 = vsel %vm2536_vm6, %v2520_v36, %v2552_v40  ;;  %v6867_v36 = vld [vmem:[#allocation6 + $0x164] ss:$8 sps:$4 sm:$0xff]   ;;  %v6870_v40 = vld [vmem:[#allocation6 + $0x174] ss:$8 sps:$4 sm:$0xff]  }
 0x1de   :  { %2590 = vst [vmem:[#allocation2 + $0x10] sm:$0xf] %v2568_v42  ;;  %v2569_v47 = vsel %vm2537_vm7, %v2521_v63, %v2553_v5  ;;  %v7818_v63 = vld [vmem:[%s8403_s4 + $0x8] sm:$0xff]  ;;  %v6868_v42 = vld [vmem:[#allocation6 + $0x170] ss:$8 sps:$4 sm:$0xff]  }
 0x1df   :  { %2591 = vst [vmem:[#allocation2 + $0x18] sm:$0xf] %v2569_v47  ;;  %v2471_v5 = vrot.slane %v7818_v63, %v7735_v10 }
 0x1e6   :  { %v2261_v6 = vpop.f32.mrb[24].mxu1 }
 0x1e7   :  { %v2262_v51 = vadd.f32 %v2261_v6, %v7714_v50  ;;  %v2263_v52 = vpop.f32.mrb[25].mxu1  ;;  %v7784_v50 = vld [vmem:[#allocation2 + $0x8] sm:$0xff] }
 0x1e8   :  { %v2264_v53 = vadd.f32 %v2263_v52, %v7719_v55  ;;  %v2265_v57 = vpop.f32.mrb[26].mxu1  ;;  %v2646_v28 = vrot.slane %v7784_v50, 4  ;;  %v6873_v6 = vld [vmem:[#allocation6 + $0x184] ss:$8 sps:$4 sm:$0xff]  }
 0x1e9   :  { %v2522_v58 = vadd.f32 %v2463_v4, %v2262_v51  ;;  %v2266_v59 = vpop.f32.mrb[27].mxu1  ;;  %v2475_v4 = vrot.slane %v7818_v63, %v7743_v14 }
 0x1ea   :  { %v2523_v60 = vadd.f32 %v2467_v49, %v2264_v53  ;;  %v6871_v59 = vld [vmem:[#allocation6 + $0x180] ss:$8 sps:$4 sm:$0xff]  }
 0x1eb   :  { %vm2538_vm8 = vcmp.ge.f32.partialorder %v2522_v58, 0.0  ;;  %v2554_v61 = vmul.f32 0.2, %v2522_v58 }
 0x1ec   :  { %vm2539_vm9 = vcmp.ge.f32.partialorder %v2523_v60, 0.0  ;;  %v2555_v62 = vmul.f32 0.2, %v2523_v60 }
 0x1ed   :  { %v2570_v1 = vsel %vm2538_vm8, %v2522_v58, %v2554_v61  ;;  %v6876_v61 = vld [vmem:[#allocation6 + $0x194] ss:$8 sps:$4 sm:$0xff]  }
 0x1ee   :  { %v2594_v2 = vrot.slane %v2570_v1, 4  ;;  %v2571_v3 = vsel %vm2539_vm9, %v2523_v60, %v2555_v62 }
 0x1ef   :  { %v2595_v7 = vrot.slane %v2571_v3, 4  ;;  %v6874_v3 = vld [vmem:[#allocation6 + $0x190] ss:$8 sps:$4 sm:$0xff]  }
 0x1f0   :  { %2598 = vst [vmem:[#allocation2 + $0x10] sm:$0xf0] %v2594_v2 }
 0x1f1   :  { %2599 = vst [vmem:[#allocation2 + $0x18] sm:$0xf0] %v2595_v7  ;;  %v6879_v7 = vld [vmem:[#allocation6 + $0x1a4] ss:$8 sps:$4 sm:$0xff]  }
 0x1f7   :  { %v7787_v55 = vld [vmem:[#allocation2 + $0x10] sm:$0xff] }
 0x1f8   :  { %v7789_v8 = vld [vmem:[#allocation2 + $0x18] sm:$0xff]  ;;  %v2647_v0 = vrot.slane %v7787_v55, 4  ;;  %v2628_v17 = vpack.c.bf16 %v7787_v55, %v7782_v12  ;;  %v6945_v55 = vld [vmem:[#allocation8 + $0x4] ss:$8 sps:$4 sm:$0xff]  }
 0x1f9   :  { %v2629_v9 = vpack.c.bf16 %v7789_v8, %v7784_v50  ;;  %v2648_v11 = vrot.slane %v7789_v8, 4  ;;  %3902 = vmatprep.subr.bf16.mxu1 %v6945_v55  ;;  %v6949_v8 = vld [vmem:[#allocation8 + $0x20] ss:$8 sps:$4 sm:$0xff]  }
 0x1fa   :  { %v7805_v19 = vsel %vm2653_vm10, %v2645_v23, %v2647_v0 }
 0x1fb   :  { %3322 = vmatprep.mubr.bf16.mxu0 %v2629_v9  ;;  %v7813_v20 = vsel %vm2653_vm10, %v2646_v28, %v2648_v11  ;;  %v6882_v9 = vld [vmem:[#allocation6 + $0x1b4] ss:$8 sps:$4 sm:$0xff]  }
 0x1fc   :  { %3323 = vmatmul.mubr.bf16.vlgmr.msra.gmra.mrb[28].mxu0 %v2628_v17  ;;  %v6880_v17 = vld [vmem:[#allocation6 + $0x1b0] ss:$8 sps:$4 sm:$0xff]  }
 0x1fd   :  { %3344 = vmatpush1.bf16.msra.mxu0 %v6847_v16  ;;  %v2479_v16 = vrot.slane %v7818_v63, %v2446_v41 }
 0x1fe   :  { %3345 = vmatprep.subr.bf16.mxu0 %v6852_v15 }
 0x201   :  { %3346 = vmatpush1.bf16.msra.mxu0 %v6850_v21  ;;  %v2483_v21 = vrot.slane %v7818_v63, %v2450_v46 }
 0x202   :  { %3347 = vmatprep.subr.bf16.mxu0 %v6855_v22  ;;  %v6885_v22 = vld [vmem:[#allocation6 + $0x1c4] ss:$8 sps:$4 sm:$0xff]  }
 0x205   :  { %3348 = vmatpush1.bf16.msra.mxu0 %v6853_v26 }
 0x206   :  { %3349 = vmatprep.subr.bf16.mxu0 %v6858_v35 }
 0x209   :  { %3350 = vmatpush1.bf16.msra.mxu0 %v6856_v30 }
 0x20a   :  { %3351 = vmatprep.subr.bf16.mxu0 %v6861_v31 }
 0x20d   :  { %3352 = vmatpush1.bf16.msra.mxu0 %v6859_v32 }
 0x20e   :  { %3353 = vmatprep.subr.bf16.mxu0 %v6864_v33 }
 0x211   :  { %3354 = vmatpush1.bf16.msra.mxu0 %v6862_v34  ;;  %v6883_v34 = vld [vmem:[#allocation6 + $0x1c0] ss:$8 sps:$4 sm:$0xff]  }
 0x212   :  { %3355 = vmatprep.subr.bf16.mxu0 %v6867_v36  ;;  %v6888_v36 = vld [vmem:[#allocation6 + $0x1d4] ss:$8 sps:$4 sm:$0xff]  }
 0x215   :  { %3356 = vmatpush1.bf16.msra.mxu0 %v6865_v37 }
 0x216   :  { %v2302_v47 = vpop.f32.mrb[20].mxu0  ;;  %3357 = vmatprep.subr.bf16.mxu0 %v6870_v40 }
 0x217   :  { %v2303_v49 = vadd.f32 %v2302_v47, %v7707_v27  ;;  %v2304_v51 = vpop.f32.mrb[21].mxu0  ;;  %v6891_v47 = vld [vmem:[#allocation6 + $0x1e4] ss:$8 sps:$4 sm:$0xff]  }
 0x218   :  { %v2305_v52 = vadd.f32 %v2304_v51, %v7711_v29  ;;  %v2306_v53 = vpop.f32.mrb[22].mxu0  ;;  %v6877_v29 = vld [vmem:[#allocation6 + $0x1a0] ss:$8 sps:$4 sm:$0xff]   ;;  %v6897_v51 = vld [vmem:[#allocation6 + $0x204] ss:$8 sps:$4 sm:$0xff]  }
 0x219   :  { %v2524_v57 = vadd.f32 %v2471_v5, %v2303_v49  ;;  %v2307_v58 = vpop.f32.mrb[23].mxu0  ;;  %3358 = vmatpush1.bf16.msra.mxu0 %v6868_v42  ;;  %v6886_v5 = vld [vmem:[#allocation6 + $0x1d0] ss:$8 sps:$4 sm:$0xff]  }
 0x21a   :  { %v2525_v60 = vadd.f32 %v2475_v4, %v2305_v52  ;;  %3359 = vmatprep.subr.bf16.mxu0 %v6873_v6  ;;  %v6889_v4 = vld [vmem:[#allocation6 + $0x1e0] ss:$8 sps:$4 sm:$0xff]   ;;  %v6894_v6 = vld [vmem:[#allocation6 + $0x1f4] ss:$8 sps:$4 sm:$0xff]   ;;  %v6892_v49 = vld [vmem:[#allocation6 + $0x1f0] ss:$8 sps:$4 sm:$0xff]  }
 0x21b   :  { %vm2540_vm11 = vcmp.ge.f32.partialorder %v2524_v57, 0.0  ;;  %v2556_v62 = vmul.f32 0.2, %v2524_v57 }
 0x21c   :  { %vm2541_vm12 = vcmp.ge.f32.partialorder %v2525_v60, 0.0  ;;  %v2557_v1 = vmul.f32 0.2, %v2525_v60 }
 0x21d   :  { %v2572_v2 = vsel %vm2540_vm11, %v2524_v57, %v2556_v62  ;;  %3360 = vmatpush1.bf16.msra.mxu0 %v6871_v59 }
 0x21e   :  { %2600 = vst [vmem:[#allocation2 + $0x20] sm:$0xf] %v2572_v2  ;;  %v2573_v27 = vsel %vm2541_vm12, %v2525_v60, %v2557_v1  ;;  %3361 = vmatprep.subr.bf16.mxu0 %v6876_v61  ;;  %v6943_v1 = vld [vmem:[#allocation8] ss:$8 sps:$4 sm:$0xff]   ;;  %v6948_v2 = vld [vmem:[#allocation8 + $0x14] ss:$8 sps:$4 sm:$0xff]  }
 0x21f   :  { %2601 = vst [vmem:[#allocation2 + $0x28] sm:$0xf] %v2573_v27  ;;  %3903 = vmatpush1.bf16.msra.mxu1 %v6943_v1  ;;  %v6954_v27 = vld [vmem:[#allocation8 + $0x34] ss:$8 sps:$4 sm:$0xff]   ;;  %v6967_v1 = vld [vmem:[#allocation8 + $0x80] ss:$8 sps:$4 sm:$0xff]  }
 0x220   :  { %3904 = vmatprep.subr.bf16.mxu1 %v6948_v2 }
 0x221   :  { %3362 = vmatpush1.bf16.msra.mxu0 %v6874_v3  ;;  %v6951_v3 = vld [vmem:[#allocation8 + $0x24] ss:$8 sps:$4 sm:$0xff]  }
 0x222   :  { %3363 = vmatprep.subr.bf16.mxu0 %v6879_v7 }
 0x225   :  { %3364 = vmatpush1.bf16.msra.mxu0 %v6877_v29  ;;  %v2491_v29 = vrot.slane %v7818_v63, %v2458_v25  ;;  %v6960_v25 = vld [vmem:[#allocation8 + $0x54] ss:$8 sps:$4 sm:$0xff]  }
 0x226   :  { %v2343_v15 = vpop.f32.mrb[28].mxu1  ;;  %3365 = vmatprep.subr.bf16.mxu0 %v6882_v9 }
 0x227   :  { %v2344_v26 = vadd.f32 %v2343_v15, %v7723_v13  ;;  %v2345_v35 = vpop.f32.mrb[29].mxu1 }
 0x228   :  { %v2346_v30 = vadd.f32 %v2345_v35, %v7725_v18  ;;  %v2347_v31 = vpop.f32.mrb[30].mxu1 }
 0x229   :  { %v2526_v32 = vadd.f32 %v2479_v16, %v2344_v26  ;;  %v2348_v33 = vpop.f32.mrb[31].mxu1  ;;  %3366 = vmatpush1.bf16.msra.mxu0 %v6880_v17  ;;  %v6952_v17 = vld [vmem:[#allocation8 + $0x30] ss:$8 sps:$4 sm:$0xff]   ;;  %v6955_v31 = vld [vmem:[#allocation8 + $0x40] ss:$8 sps:$4 sm:$0xff]  }
 0x22a   :  { %v2527_v41 = vadd.f32 %v2483_v21, %v2346_v30  ;;  %3367 = vmatprep.subr.bf16.mxu0 %v6885_v22  ;;  %v6957_v22 = vld [vmem:[#allocation8 + $0x44] ss:$8 sps:$4 sm:$0xff]  }
 0x22b   :  { %vm2542_vm13 = vcmp.ge.f32.partialorder %v2526_v32, 0.0  ;;  %v2558_v37 = vmul.f32 0.2, %v2526_v32 }
 0x22c   :  { %vm2543_vm14 = vcmp.ge.f32.partialorder %v2527_v41, 0.0  ;;  %v2559_v40 = vmul.f32 0.2, %v2527_v41 }
 0x22d   :  { %v2574_v46 = vsel %vm2542_vm13, %v2526_v32, %v2558_v37  ;;  %3368 = vmatpush1.bf16.msra.mxu0 %v6883_v34  ;;  %v6963_v34 = vld [vmem:[#allocation8 + $0x64] ss:$8 sps:$4 sm:$0xff]   ;;  %v2495_v37 = vrot.slane %v7818_v63, %v2462_v48 }
 0x22e   :  { %v2604_v42 = vrot.slane %v2574_v46, 4  ;;  %v2575_v13 = vsel %vm2543_vm14, %v2527_v41, %v2559_v40  ;;  %3369 = vmatprep.subr.bf16.mxu0 %v6888_v36  ;;  %v6961_v41 = vld [vmem:[#allocation8 + $0x60] ss:$8 sps:$4 sm:$0xff]   ;;  %v6966_v36 = vld [vmem:[#allocation8 + $0x74] ss:$8 sps:$4 sm:$0xff]   ;;  %v2499_v46 = vrot.slane %v7818_v63, %v2466_v39 }
 0x22f   :  { %v2605_v18 = vrot.slane %v2575_v13, 4  ;;  %v6964_v13 = vld [vmem:[#allocation8 + $0x70] ss:$8 sps:$4 sm:$0xff]   ;;  %v6972_v39 = vld [vmem:[#allocation8 + $0x94] ss:$8 sps:$4 sm:$0xff]  }
 0x230   :  { %2608 = vst [vmem:[#allocation2 + $0x20] sm:$0xf0] %v2604_v42 }
 0x231   :  { %2609 = vst [vmem:[#allocation2 + $0x28] sm:$0xf0] %v2605_v18  ;;  %3370 = vmatpush1.bf16.msra.mxu0 %v6886_v5 }
 0x232   :  { %3371 = vmatprep.subr.bf16.mxu0 %v6891_v47 }
 0x235   :  { %3372 = vmatpush1.bf16.msra.mxu0 %v6889_v4  ;;  %v6969_v4 = vld [vmem:[#allocation8 + $0x84] ss:$8 sps:$4 sm:$0xff]  }
 0x236   :  { %3373 = vmatprep.subr.bf16.mxu0 %v6894_v6 }
 0x237   :  { %v7834_v52 = vld [vmem:[#allocation2 + $0x20] sm:$0xff] }
 0x238   :  { %v7836_v53 = vld [vmem:[#allocation2 + $0x28] sm:$0xff]  ;;  %v2649_v57 = vrot.slane %v7834_v52, 4 }
 0x239   :  { %v2650_v58 = vrot.slane %v7836_v53, 4  ;;  %3374 = vmatpush1.bf16.msra.mxu0 %v6892_v49 }
 0x23a   :  { %3396 = vmatprep.subr.bf16.mxu0 %v6897_v51  ;;  %v7846_v59 = vsel %vm2653_vm10, %v2647_v0, %v2649_v57  ;;  %v6946_v0 = vld [vmem:[#allocation8 + $0x10] ss:$8 sps:$4 sm:$0xff]  }
 0x23b   :  { %v7854_v60 = vsel %vm2653_vm10, %v2648_v11, %v2650_v58  ;;  %v2698_v61 = vpack.c.bf16 %v7846_v59, %v7805_v19  ;;  %3905 = vmatpush1.bf16.msra.mxu1 %v6946_v0  ;;  %v2487_v11 = vrot.slane %v7818_v63, %v2454_v24 }
 0x23c   :  { %v2699_v62 = vpack.c.bf16 %v7854_v60, %v7813_v20  ;;  %3906 = vmatprep.subr.bf16.mxu1 %v6951_v3  ;;  %v6975_v3 = vld [vmem:[#allocation8 + $0xa4] ss:$8 sps:$4 sm:$0xff]  }
 0x23f   :  { %3907 = vmatpush1.bf16.msra.mxu1 %v6949_v8  ;;  %v6973_v8 = vld [vmem:[#allocation8 + $0xa0] ss:$8 sps:$4 sm:$0xff]  }
 0x240   :  { %3908 = vmatprep.subr.bf16.mxu1 %v6954_v27  ;;  %v6978_v27 = vld [vmem:[#allocation8 + $0xb4] ss:$8 sps:$4 sm:$0xff]  }
 0x243   :  { %3909 = vmatpush1.bf16.msra.mxu1 %v6952_v17  ;;  %v6976_v17 = vld [vmem:[#allocation8 + $0xb0] ss:$8 sps:$4 sm:$0xff]  }
 0x244   :  { %3910 = vmatprep.subr.bf16.mxu1 %v6957_v22 }
 0x247   :  { %3911 = vmatpush1.bf16.msra.mxu1 %v6955_v31  ;;  %v6982_v31 = vld [vmem:[#allocation8 + $0xd0] ss:$8 sps:$4 sm:$0xff]  }
 0x248   :  { %3912 = vmatprep.subr.bf16.mxu1 %v6960_v25  ;;  %v6898_v25 = vld [vmem:[#allocation6 + $0x210] ss:$8 sps:$4 sm:$0xff]  }
 0x256   :  { %v2384_v7 = vpop.f32.mrb[24].mxu0 }
 0x257   :  { %v2385_v9 = vadd.f32 %v2384_v7, %v7716_v54  ;;  %v2386_v16 = vpop.f32.mrb[25].mxu0 }
 0x258   :  { %v2387_v15 = vadd.f32 %v2386_v16, %v7721_v56  ;;  %v2388_v21 = vpop.f32.mrb[26].mxu0  ;;  %v6958_v56 = vld [vmem:[#allocation8 + $0x50] ss:$8 sps:$4 sm:$0xff]  }
 0x259   :  { %v2528_v26 = vadd.f32 %v2487_v11, %v2385_v9  ;;  %v2389_v35 = vpop.f32.mrb[27].mxu0  ;;  %3913 = vmatpush1.bf16.msra.mxu1 %v6958_v56 }
 0x25a   :  { %v2529_v30 = vadd.f32 %v2491_v29, %v2387_v15  ;;  %3914 = vmatprep.subr.bf16.mxu1 %v6963_v34  ;;  %v6906_v34 = vld [vmem:[#allocation6 + $0x234] ss:$8 sps:$4 sm:$0xff]  }
 0x25b   :  { %vm2544_vm15 = vcmp.ge.f32.partialorder %v2528_v26, 0.0  ;;  %v2560_v24 = vmul.f32 0.2, %v2528_v26 }
 0x25c   :  { %vm2545_vm0 = vcmp.ge.f32.partialorder %v2529_v30, 0.0  ;;  %v2561_v32 = vmul.f32 0.2, %v2529_v30 }
 0x25d   :  { %v2576_v54 = vsel %vm2544_vm15, %v2528_v26, %v2560_v24  ;;  %3915 = vmatpush1.bf16.msra.mxu1 %v6961_v41  ;;  %v6981_v26 = vld [vmem:[#allocation8 + $0xc4] ss:$8 sps:$4 sm:$0xff]   ;;  %v6895_v24 = vld [vmem:[#allocation6 + $0x200] ss:$8 sps:$4 sm:$0xff]   ;;  %v6904_v41 = vld [vmem:[#allocation6 + $0x230] ss:$8 sps:$4 sm:$0xff]  }
 0x25e   :  { %2610 = vst [vmem:[#allocation2 + $0x30] sm:$0xf] %v2576_v54  ;;  %v2577_v33 = vsel %vm2545_vm0, %v2529_v30, %v2561_v32  ;;  %3916 = vmatprep.subr.bf16.mxu1 %v6966_v36  ;;  %v6979_v30 = vld [vmem:[#allocation8 + $0xc0] ss:$8 sps:$4 sm:$0xff]   ;;  %v6903_v54 = vld [vmem:[#allocation6 + $0x224] ss:$8 sps:$4 sm:$0xff]  }
 0x25f   :  { %2611 = vst [vmem:[#allocation2 + $0x38] sm:$0xf] %v2577_v33  ;;  %v6901_v33 = vld [vmem:[#allocation6 + $0x220] ss:$8 sps:$4 sm:$0xff]   ;;  %v6909_v36 = vld [vmem:[#allocation6 + $0x244] ss:$8 sps:$4 sm:$0xff]  }
 0x261   :  { %3917 = vmatpush1.bf16.msra.mxu1 %v6964_v13  ;;  %v6918_v13 = vld [vmem:[#allocation6 + $0x274] ss:$8 sps:$4 sm:$0xff]  }
 0x262   :  { %3918 = vmatprep.subr.bf16.mxu1 %v6969_v4  ;;  %v6927_v4 = vld [vmem:[#allocation6 + $0x2a4] ss:$8 sps:$4 sm:$0xff]  }
 0x265   :  { %3919 = vmatpush1.bf16.msra.mxu1 %v6967_v1  ;;  %v6931_v1 = vld [vmem:[#allocation6 + $0x2c0] ss:$8 sps:$4 sm:$0xff]  }
 0x266   :  { %v2425_v40 = vpop.f32.mrb[32].mxu1  ;;  %3920 = vmatprep.subr.bf16.mxu1 %v6972_v39  ;;  %v6934_v39 = vld [vmem:[#allocation6 + $0x2d0] ss:$8 sps:$4 sm:$0xff]  }
 0x267   :  { %v2426_v5 = vadd.f32 %v2425_v40, %v7727_v38  ;;  %v2427_v42 = vpop.f32.mrb[33].mxu1  ;;  %v6912_v40 = vld [vmem:[#allocation6 + $0x254] ss:$8 sps:$4 sm:$0xff]  }
 0x268   :  { %v2428_v47 = vadd.f32 %v2427_v42, %v7729_v44  ;;  %v2429_v18 = vpop.f32.mrb[34].mxu1  ;;  %v6970_v44 = vld [vmem:[#allocation8 + $0x90] ss:$8 sps:$4 sm:$0xff]   ;;  %v6913_v42 = vld [vmem:[#allocation6 + $0x260] ss:$8 sps:$4 sm:$0xff]  }
 0x269   :  { %v2530_v6 = vadd.f32 %v2495_v37, %v2426_v5  ;;  %v2430_v49 = vpop.f32.mrb[35].mxu1  ;;  %3921 = vmatpush1.bf16.msra.mxu1 %v6970_v44  ;;  %v6907_v37 = vld [vmem:[#allocation6 + $0x240] ss:$8 sps:$4 sm:$0xff]   ;;  %v6915_v5 = vld [vmem:[#allocation6 + $0x264] ss:$8 sps:$4 sm:$0xff]  }
 0x26a   :  { %v2531_v51 = vadd.f32 %v2499_v46, %v2428_v47  ;;  %3922 = vmatprep.subr.bf16.mxu1 %v6975_v3  ;;  %v6910_v46 = vld [vmem:[#allocation6 + $0x250] ss:$8 sps:$4 sm:$0xff]   ;;  %v6930_v49 = vld [vmem:[#allocation6 + $0x2b4] ss:$8 sps:$4 sm:$0xff]  }
 0x26b   :  { %vm2546_vm1 = vcmp.ge.f32.partialorder %v2530_v6, 0.0  ;;  %v2562_v48 = vmul.f32 0.2, %v2530_v6  ;;  %v6916_v47 = vld [vmem:[#allocation6 + $0x270] ss:$8 sps:$4 sm:$0xff]  }
 0x26c   :  { %vm2547_vm2 = vcmp.ge.f32.partialorder %v2531_v51, 0.0  ;;  %v2563_v55 = vmul.f32 0.2, %v2531_v51  ;;  %v6922_v18 = vld [vmem:[#allocation6 + $0x290] ss:$8 sps:$4 sm:$0xff]  }
 0x26d   :  { %v2578_v38 = vsel %vm2546_vm1, %v2530_v6, %v2562_v48  ;;  %3923 = vmatpush1.bf16.msra.mxu1 %v6973_v8  ;;  %v6925_v6 = vld [vmem:[#allocation6 + $0x2a0] ss:$8 sps:$4 sm:$0xff]   ;;  %v6933_v48 = vld [vmem:[#allocation6 + $0x2c4] ss:$8 sps:$4 sm:$0xff]   ;;  %v6940_v44 = vld [vmem:[#allocation6 + $0x2f0] ss:$8 sps:$4 sm:$0xff]  }
 0x26e   :  { %v2614_v63 = vrot.slane %v2578_v38, 4  ;;  %v2579_v2 = vsel %vm2547_vm2, %v2531_v51, %v2563_v55  ;;  %3924 = vmatprep.subr.bf16.mxu1 %v6978_v27  ;;  %v6928_v51 = vld [vmem:[#allocation6 + $0x2b0] ss:$8 sps:$4 sm:$0xff]   ;;  %v6936_v55 = vld [vmem:[#allocation6 + $0x2d4] ss:$8 sps:$4 sm:$0xff]  }
 0x26f   :  { %v2615_v0 = vrot.slane %v2579_v2, 4  ;;  %v6939_v38 = vld [vmem:[#allocation6 + $0x2e4] ss:$8 sps:$4 sm:$0xff]   ;;  %v6942_v2 = vld [vmem:[#allocation6 + $0x2f4] ss:$8 sps:$4 sm:$0xff]  }
 0x270   :  { %2618 = vst [vmem:[#allocation2 + $0x30] sm:$0xf0] %v2614_v63  ;;  %v6937_v63 = vld [vmem:[#allocation6 + $0x2e0] ss:$8 sps:$4 sm:$0xff]   ;;  %v6987_v8 = vld [vmem:[#allocation8 + $0xe4] ss:$8 sps:$4 sm:$0xff]  }
 0x271   :  { %2619 = vst [vmem:[#allocation2 + $0x38] sm:$0xf0] %v2615_v0  ;;  %3925 = vmatpush1.bf16.msra.mxu1 %v6976_v17  ;;  %v2636_v0 = vadd.s32 24, %v7732_v45  ;;  %v6985_v27 = vld [vmem:[#allocation8 + $0xe0] ss:$8 sps:$4 sm:$0xff]   ;;  %v5610_v3 = vld [vmem:[%s8413_s14 + $0x30] sm:$0xff] }
 0x272   :  { %3926 = vmatprep.subr.bf16.mxu1 %v6981_v26  ;;  %v7252_v45 = vld [vmem:[%s8408_s9 + $0xa8] sm:$0xff]  }
 0x273   :  { %vm2644_vm6 = vcmp.lt.s32.totalorder %v2636_v0, 28 }
 0x274   :  { %vm7929_vm7 = vmpackc.low %vm2644_vm6, %vm7422_vm4 }
 0x275   :  { %3927 = vmatpush1.bf16.msra.mxu1 %v6979_v30 }
 0x277   :  { %v2626_v11 = vld [vmem:[#allocation2 + $0x30] sm:$0xff] }
 0x278   :  { %v2627_v7 = vld [vmem:[#allocation2 + $0x38] sm:$0xff]  ;;  %v2651_v29 = vrot.slane %v2626_v11, 4  ;;  %v2630_v15 = vpack.c.bf16 %v2626_v11, %v7834_v52 }
 0x279   :  { %v2631_v9 = vpack.c.bf16 %v2627_v7, %v7836_v53  ;;  %v2652_v16 = vrot.slane %v2627_v7, 4  ;;  %v6984_v53 = vld [vmem:[#allocation8 + $0xd4] ss:$8 sps:$4 sm:$0xff]   ;;  %v6988_v7 = vld [vmem:[#allocation8 + $0xf0] ss:$8 sps:$4 sm:$0xff]  }
 0x27a   :  { %v7883_v21 = vsel %vm2653_vm10, %v2651_v29, %v2645_v23  ;;  %v7889_v22 = vsel %vm2653_vm10, %v2649_v57, %v2651_v29  ;;  %3928 = vmatprep.subr.bf16.mxu1 %v6984_v53  ;;  %v6990_v11 = vld [vmem:[#allocation8 + $0xf4] ss:$8 sps:$4 sm:$0xff]  }
 0x27b   :  { %3332 = vmatprep.mubr.bf16.mxu0 %v2631_v9  ;;  %v6197_v35 = vpack.c.bf16 %v7805_v19, %v7883_v21  ;;  %v7897_v12 = vsel %vm2653_vm10, %v2652_v16, %v2646_v28  ;;  %v7908_v52 = vsel %vm2653_vm10, %v2650_v58, %v2652_v16  ;;  %v6203_v57 = vpack.c.bf16 %v7883_v21, %v7889_v22  ;;  %v6900_v58 = vld [vmem:[#allocation6 + $0x214] ss:$8 sps:$4 sm:$0xff]   ;;  %v6993_v19 = vld [vmem:[#allocation8 + $0x104] ss:$8 sps:$4 sm:$0xff]  }
 0x27c   :  { %3333 = vmatmul.mubr.bf16.gmra.mrb[32].mxu0 %v2630_v15  ;;  %v6194_v50 = vpack.c.bf16 %v7813_v20, %v7897_v12  ;;  %v6200_v28 = vpack.c.bf16 %v7897_v12, %v7908_v52  ;;  %v2681_v32 = vpack.c.bf16 %v7908_v52, %v7854_v60  ;;  %3929 = vmatpush1.bf16.msra.mxu1 %v6982_v31  ;;  %v6921_v20 = vld [vmem:[#allocation6 + $0x284] ss:$8 sps:$4 sm:$0xff]   ;;  %v6919_v60 = vld [vmem:[#allocation6 + $0x280] ss:$8 sps:$4 sm:$0xff]   ;;  %v5516_v23 = vld [vmem:[%s8411_s12 + $0xb0] sm:$0xff] }
 0x27d   :  { %v2680_v56 = vpack.c.bf16 %v7889_v22, %v7846_v59  ;;  %3930 = vmatprep.subr.bf16.mxu1 %v6987_v8  ;;  %v2798_v59 = vld [vmem:[%s8409_s10] sm:$0x3] }
 0x27e   :  { %6195 = vmatprep.mubr.msk.bf16.mxu0 %vm7900_vm5, %v6194_v50  ;;  %v2807_v29 = vrot.slane %v2798_v59, %v7743_v14 }
 0x280   :  { %3931 = vmatpush1.bf16.msra.mxu1 %v6985_v27  ;;  %v6997_v27 = vld [vmem:[#allocation8 + $0x120] ss:$8 sps:$4 sm:$0xff]  }
 0x281   :  { %3932 = vmatprep.subr.bf16.mxu1 %v6990_v11 }
 0x284   :  { %6198 = vmatmul.mubr.msk.bf16.vlgmr.msra.gmra.mrb[28].mxu0 %vm7900_vm5, %v6197_v35  ;;  %3933 = vmatpush1.bf16.msra.mxu1 %v6988_v7 }
 0x285   :  { %3397 = vmatpush1.bf16.msra.mxu0 %v6895_v24  ;;  %3385 = vmatprep.mubr.bf16.mxu0 %v2681_v32 }
 0x286   :  { %3398 = vmatprep.subr.bf16.mxu0 %v6900_v58  ;;  %3955 = vmatprep.subr.bf16.mxu1 %v6993_v19  ;;  %v7002_v19 = vld [vmem:[#allocation8 + $0x134] ss:$8 sps:$4 sm:$0xff]  }
 0x289   :  { %3399 = vmatpush1.bf16.msra.mxu0 %v6898_v25 }
 0x28a   :  { %3400 = vmatprep.subr.bf16.mxu0 %v6903_v54 }
 0x28c   :  { %3386 = vmatmul.mubr.bf16.gmra.mrb[32].mxu0 %v2680_v56 }
 0x28d   :  { %3401 = vmatpush1.bf16.msra.mxu0 %v6901_v33  ;;  %3428 = vmatprep.mubr.bf16.mxu0 %v2699_v62  ;;  %v6924_v62 = vld [vmem:[#allocation6 + $0x294] ss:$8 sps:$4 sm:$0xff]  }
 0x28e   :  { %3402 = vmatprep.subr.bf16.mxu0 %v6906_v34 }
 0x291   :  { %3403 = vmatpush1.bf16.msra.mxu0 %v6904_v41 }
 0x292   :  { %3404 = vmatprep.subr.bf16.mxu0 %v6909_v36  ;;  %v6991_v36 = vld [vmem:[#allocation8 + $0x100] ss:$8 sps:$4 sm:$0xff]  }
 0x295   :  { %3405 = vmatpush1.bf16.msra.mxu0 %v6907_v37 }
 0x296   :  { %3406 = vmatprep.subr.bf16.mxu0 %v6912_v40 }
 0x299   :  { %3407 = vmatpush1.bf16.msra.mxu0 %v6910_v46  ;;  %v6996_v46 = vld [vmem:[#allocation8 + $0x114] ss:$8 sps:$4 sm:$0xff]  }
 0x29a   :  { %3408 = vmatprep.subr.bf16.mxu0 %v6915_v5 }
 0x29d   :  { %3409 = vmatpush1.bf16.msra.mxu0 %v6913_v42 }
 0x29e   :  { %3410 = vmatprep.subr.bf16.mxu0 %v6918_v13 }
 0x2a1   :  { %3411 = vmatpush1.bf16.msra.mxu0 %v6916_v47 }
 0x2a2   :  { %3412 = vmatprep.subr.bf16.mxu0 %v6921_v20 }
 0x2a5   :  { %3413 = vmatpush1.bf16.msra.mxu0 %v6919_v60 }
 0x2a6   :  { %3414 = vmatprep.subr.bf16.mxu0 %v6924_v62 }
 0x2a9   :  { %3415 = vmatpush1.bf16.msra.mxu0 %v6922_v18 }
 0x2aa   :  { %3416 = vmatprep.subr.bf16.mxu0 %v6927_v4  ;;  %v6994_v4 = vld [vmem:[#allocation8 + $0x110] ss:$8 sps:$4 sm:$0xff]  }
 0x2ad   :  { %3417 = vmatpush1.bf16.msra.mxu0 %v6925_v6 }
 0x2ae   :  { %3418 = vmatprep.subr.bf16.mxu0 %v6930_v49 }
 0x2b1   :  { %3419 = vmatpush1.bf16.msra.mxu0 %v6928_v51 }
 0x2b2   :  { %3420 = vmatprep.subr.bf16.mxu0 %v6933_v48  ;;  %v6999_v48 = vld [vmem:[#allocation8 + $0x124] ss:$8 sps:$4 sm:$0xff]  }
 0x2b5   :  { %3421 = vmatpush1.bf16.msra.mxu0 %v6931_v1 }
 0x2b6   :  { %3422 = vmatprep.subr.bf16.mxu0 %v6936_v55 }
 0x2b9   :  { %3423 = vmatpush1.bf16.msra.mxu0 %v6934_v39 }
 0x2ba   :  { %3424 = vmatprep.subr.bf16.mxu0 %v6939_v38 }
 0x2bd   :  { %3425 = vmatpush1.bf16.msra.mxu0 %v6937_v63 }
 0x2be   :  { %3426 = vmatprep.subr.bf16.mxu0 %v6942_v2 }
 0x2c1   :  { %3427 = vmatpush1.bf16.msra.mxu0 %v6940_v44 }
 0x2c4   :  { %3429 = vmatmul.mubr.bf16.vlgmr.msra.gmra.mrb[28].mxu0 %v2698_v61  ;;  %v2803_v61 = vrot.slane %v2798_v59, %v7735_v10 }
 0x2c5   :  { %6201 = vmatprep.mubr.msk.bf16.mxu0 %vm7929_vm7, %v6200_v28 }
 0x2cc   :  { %6204 = vmatmul.mubr.msk.bf16.gmra.mrb[32].mxu0 %vm7929_vm7, %v6203_v57 }
 0x397   :  { %v3430_v9 = vpop.f32.mrb[28].mxu0 }
 0x398   :  { %v6695_v16 = vadd.f32 %v3430_v9, %v2803_v61  ;;  %v3432_v17 = vpop.f32.mrb[29].mxu0 }
 0x399   :  { %v6696_v15 = vadd.f32 %v3432_v17, %v2807_v29  ;;  %v3434_v21 = vpop.f32.mrb[30].mxu0 }
 0x39a   :  { %vm3449_vm8 = vcmp.ge.f32.partialorder %v6695_v16, 0.0  ;;  %v3457_v22 = vmul.f32 0.2, %v6695_v16  ;;  %v6697_v26 = vadd.f32 %v3434_v21, %v2803_v61  ;;  %v3436_v35 = vpop.f32.mrb[31].mxu0  ;;  %v7000_v21 = vld [vmem:[#allocation8 + $0x130] ss:$8 sps:$4 sm:$0xff]  }
 0x39b   :  { %vm3450_vm9 = vcmp.ge.f32.partialorder %v6696_v15, 0.0  ;;  %v3458_v12 = vmul.f32 0.2, %v6696_v15  ;;  %v6698_v52 = vadd.f32 %v3436_v35, %v2807_v29  ;;  %v7008_v35 = vld [vmem:[#allocation8 + $0x154] ss:$8 sps:$4 sm:$0xff]  }
 0x39c   :  { %v3465_v50 = vsel %vm3449_vm8, %v6695_v16, %v3457_v22  ;;  %vm3451_vm11 = vcmp.ge.f32.partialorder %v6697_v26, 0.0  ;;  %v3459_v28 = vmul.f32 0.2, %v6697_v26  ;;  %v7005_v22 = vld [vmem:[#allocation8 + $0x144] ss:$8 sps:$4 sm:$0xff]  }
 0x39d   :  { %vm3452_vm12 = vcmp.ge.f32.partialorder %v6698_v52, 0.0  ;;  %v3460_v57 = vmul.f32 0.2, %v6698_v52  ;;  %v3466_v30 = vsel %vm3450_vm9, %v6696_v15, %v3458_v12  ;;  %v3491_v24 = vrot.slane %v3465_v50, 4  ;;  %v7006_v12 = vld [vmem:[#allocation8 + $0x150] ss:$8 sps:$4 sm:$0xff]  }
 0x39e   :  { %v3467_v53 = vsel %vm3451_vm11, %v6697_v26, %v3459_v28  ;;  %v3477_v34 = vrot.slane %v3466_v30, 4  ;;  %v7003_v26 = vld [vmem:[#allocation8 + $0x140] ss:$8 sps:$4 sm:$0xff]   ;;  %v7014_v28 = vld [vmem:[#allocation8 + $0x174] ss:$8 sps:$4 sm:$0xff]  }
 0x39f   :  { %v3473_v58 = vpack.c.bf16 %v3467_v53, %v3465_v50  ;;  %v3492_v31 = vrot.slane %v3467_v53, 4  ;;  %v3440_v32 = vpop.f32.mrb[32].mxu0  ;;  %v3468_v25 = vsel %vm3452_vm12, %v6698_v52, %v3460_v57  ;;  %v7011_v52 = vld [vmem:[#allocation8 + $0x164] ss:$8 sps:$4 sm:$0xff]   ;;  %v7009_v50 = vld [vmem:[#allocation8 + $0x160] ss:$8 sps:$4 sm:$0xff]  }
 0x3a0   :  { %v6699_v54 = vadd.f32 %v3440_v32, %v2803_v61  ;;  %v3442_v33 = vpop.f32.mrb[33].mxu0  ;;  %v3474_v56 = vpack.c.bf16 %v3468_v25, %v3466_v30  ;;  %v3478_v41 = vrot.slane %v3468_v25, 4  ;;  %v7012_v57 = vld [vmem:[#allocation8 + $0x170] ss:$8 sps:$4 sm:$0xff]   ;;  %v7017_v30 = vld [vmem:[#allocation8 + $0x184] ss:$8 sps:$4 sm:$0xff]  }
 0x3a1   :  { %v6700_v37 = vadd.f32 %v3442_v33, %v2807_v29  ;;  %v3444_v40 = vpop.f32.mrb[34].mxu0  ;;  %v3497_v5 = vsel %vm2653_vm10, %v3491_v24, %v3492_v31  ;;  %v7015_v53 = vld [vmem:[#allocation8 + $0x180] ss:$8 sps:$4 sm:$0xff]   ;;  %v7026_v25 = vld [vmem:[#allocation8 + $0x1b4] ss:$8 sps:$4 sm:$0xff]  }
 0x3a2   :  { %vm3453_vm13 = vcmp.ge.f32.partialorder %v6699_v54, 0.0  ;;  %v3461_v42 = vmul.f32 0.2, %v6699_v54  ;;  %v6701_v13 = vadd.f32 %v3444_v40, %v2803_v61  ;;  %v3446_v47 = vpop.f32.mrb[35].mxu0  ;;  %v7955_v20 = vsel %vm2653_vm10, %v3477_v34, %v3478_v41  ;;  %3934 = vmatprep.mubr.bf16.mxu1 %v3474_v56  ;;  %v7021_v32 = vld [vmem:[#allocation8 + $0x1a0] ss:$8 sps:$4 sm:$0xff]  }
 0x3a3   :  { %vm3454_vm14 = vcmp.ge.f32.partialorder %v6700_v37, 0.0  ;;  %v3462_v60 = vmul.f32 0.2, %v6700_v37  ;;  %v6702_v62 = vadd.f32 %v3446_v47, %v2807_v29  ;;  %3935 = vmatmul.mubr.bf16.vlgmr.msra.gmra.mrb[36].mxu1 %v3473_v58  ;;  %v7018_v58 = vld [vmem:[#allocation8 + $0x190] ss:$8 sps:$4 sm:$0xff]  }
 0x3a4   :  { %vm3455_vm15 = vcmp.ge.f32.partialorder %v6701_v13, 0.0  ;;  %v3463_v18 = vmul.f32 0.2, %v6701_v13  ;;  %3956 = vmatpush1.bf16.msra.mxu1 %v6991_v36  ;;  %v3469_v6 = vsel %vm3453_vm13, %v6699_v54, %v3461_v42  ;;  %v7024_v54 = vld [vmem:[#allocation8 + $0x1b0] ss:$8 sps:$4 sm:$0xff]  }
 0x3a5   :  { %vm3456_vm0 = vcmp.ge.f32.partialorder %v6702_v62, 0.0  ;;  %v3464_v49 = vmul.f32 0.2, %v6702_v62  ;;  %3957 = vmatprep.subr.bf16.mxu1 %v6996_v46  ;;  %v3470_v51 = vsel %vm3454_vm14, %v6700_v37, %v3462_v60  ;;  %v3493_v1 = vrot.slane %v3469_v6, 4  ;;  %v7029_v33 = vld [vmem:[#allocation8 + $0x1c4] ss:$8 sps:$4 sm:$0xff]  }
 0x3a6   :  { %v3479_v55 = vrot.slane %v3470_v51, 4  ;;  %v3471_v39 = vsel %vm3455_vm15, %v6701_v13, %v3463_v18  ;;  %v7027_v56 = vld [vmem:[#allocation8 + $0x1c0] ss:$8 sps:$4 sm:$0xff]   ;;  %v7035_v36 = vld [vmem:[#allocation8 + $0x1e4] ss:$8 sps:$4 sm:$0xff]  }
 0x3a7   :  { %v3472_v38 = vsel %vm3456_vm0, %v6702_v62, %v3464_v49  ;;  %v3475_v63 = vpack.c.bf16 %v3471_v39, %v3469_v6  ;;  %v3494_v2 = vrot.slane %v3471_v39, 4  ;;  %v3496_v0 = vsel %vm2653_vm10, %v3492_v31, %v3493_v1  ;;  %v7023_v31 = vld [vmem:[#allocation8 + $0x1a4] ss:$8 sps:$4 sm:$0xff]   ;;  %v7033_v37 = vld [vmem:[#allocation8 + $0x1e0] ss:$8 sps:$4 sm:$0xff]  }
 0x3a8   :  { %3958 = vmatpush1.bf16.msra.mxu1 %v6994_v4  ;;  %v3476_v44 = vpack.c.bf16 %v3472_v38, %v3470_v51  ;;  %v3480_v8 = vrot.slane %v3472_v38, 4  ;;  %v3503_v11 = vpack.c.bf16 %v3496_v0, %v3497_v5  ;;  %v7961_v7 = vsel %vm2653_vm10, %v3478_v41, %v3479_v55  ;;  %v7030_v41 = vld [vmem:[#allocation8 + $0x1d0] ss:$8 sps:$4 sm:$0xff]   ;;  %v7038_v40 = vld [vmem:[#allocation8 + $0x1f4] ss:$8 sps:$4 sm:$0xff]  }
 0x3a9   :  { %3959 = vmatprep.subr.bf16.mxu1 %v6999_v48  ;;  %v7965_v59 = vsel %vm2653_vm10, %v3493_v1, %v3494_v2  ;;  %v7969_v61 = vsel %vm2653_vm10, %v3494_v2, %v3491_v24  ;;  %v7020_v24 = vld [vmem:[#allocation8 + $0x194] ss:$8 sps:$4 sm:$0xff]   ;;  %v7036_v46 = vld [vmem:[#allocation8 + $0x1f0] ss:$8 sps:$4 sm:$0xff]   ;;  %v7041_v5 = vld [vmem:[#allocation9 + $0x4] ss:$8 sps:$4 sm:$0xff]  }
 0x3aa   :  { %v7973_v29 = vsel %vm2653_vm10, %v3480_v8, %v3477_v34  ;;  %3944 = vmatprep.mubr.bf16.mxu1 %v3476_v44  ;;  %v6274_v9 = vpack.c.bf16 %v7969_v61, %v7965_v59  ;;  %v7979_v16 = vsel %vm2653_vm10, %v3479_v55, %v3480_v8  ;;  %v7032_v34 = vld [vmem:[#allocation8 + $0x1d4] ss:$8 sps:$4 sm:$0xff]   ;;  %v7039_v42 = vld [vmem:[#allocation9] ss:$8 sps:$4 sm:$0xff]   ;;  %v7042_v47 = vld [vmem:[#allocation9 + $0x10] ss:$8 sps:$4 sm:$0xff]  }
 0x3ab   :  { %v6271_v17 = vpack.c.bf16 %v7955_v20, %v7973_v29  ;;  %3945 = vmatmul.mubr.bf16.gmra.mrb[40].mxu1 %v3475_v63  ;;  %v3490_v15 = vpack.c.bf16 %v7979_v16, %v7961_v7  ;;  %v7044_v13 = vld [vmem:[#allocation9 + $0x14] ss:$8 sps:$4 sm:$0xff]   ;;  %v7047_v20 = vld [vmem:[#allocation9 + $0x24] ss:$8 sps:$4 sm:$0xff]   ;;  %v7045_v60 = vld [vmem:[#allocation9 + $0x20] ss:$8 sps:$4 sm:$0xff]  }
 0x3ac   :  { %3960 = vmatpush1.bf16.msra.mxu1 %v6997_v27  ;;  %3987 = vmatprep.mubr.bf16.mxu1 %v3503_v11  ;;  %v7050_v62 = vld [vmem:[#allocation9 + $0x34] ss:$8 sps:$4 sm:$0xff]   ;;  %v7048_v18 = vld [vmem:[#allocation9 + $0x30] ss:$8 sps:$4 sm:$0xff]   ;;  %v7053_v4 = vld [vmem:[#allocation9 + $0x44] ss:$8 sps:$4 sm:$0xff]  }
 0x3ad   :  { %3961 = vmatprep.subr.bf16.mxu1 %v7002_v19  ;;  %v7051_v6 = vld [vmem:[#allocation9 + $0x40] ss:$8 sps:$4 sm:$0xff]   ;;  %v7056_v49 = vld [vmem:[#allocation9 + $0x54] ss:$8 sps:$4 sm:$0xff]   ;;  %v7054_v51 = vld [vmem:[#allocation9 + $0x50] ss:$8 sps:$4 sm:$0xff]  }
 0x3ae   :  { %v7059_v48 = vld [vmem:[#allocation9 + $0x64] ss:$8 sps:$4 sm:$0xff]   ;;  %v7057_v1 = vld [vmem:[#allocation9 + $0x60] ss:$8 sps:$4 sm:$0xff]   ;;  %v7062_v55 = vld [vmem:[#allocation9 + $0x74] ss:$8 sps:$4 sm:$0xff]  }
 0x3af   :  { %v7060_v39 = vld [vmem:[#allocation9 + $0x70] ss:$8 sps:$4 sm:$0xff]   ;;  %v7065_v38 = vld [vmem:[#allocation9 + $0x84] ss:$8 sps:$4 sm:$0xff]   ;;  %v7063_v63 = vld [vmem:[#allocation9 + $0x80] ss:$8 sps:$4 sm:$0xff]  }
 0x3b0   :  { %3962 = vmatpush1.bf16.msra.mxu1 %v7000_v21  ;;  %v7068_v2 = vld [vmem:[#allocation9 + $0x94] ss:$8 sps:$4 sm:$0xff]   ;;  %v7066_v0 = vld [vmem:[#allocation9 + $0x90] ss:$8 sps:$4 sm:$0xff]   ;;  %v7071_v44 = vld [vmem:[#allocation9 + $0xa4] ss:$8 sps:$4 sm:$0xff]  }
 0x3b1   :  { %3963 = vmatprep.subr.bf16.mxu1 %v7005_v22  ;;  %v7069_v8 = vld [vmem:[#allocation9 + $0xa0] ss:$8 sps:$4 sm:$0xff]   ;;  %v7074_v27 = vld [vmem:[#allocation9 + $0xb4] ss:$8 sps:$4 sm:$0xff]   ;;  %v7072_v11 = vld [vmem:[#allocation9 + $0xb0] ss:$8 sps:$4 sm:$0xff]  }
 0x3b2   :  { %v7077_v7 = vld [vmem:[#allocation9 + $0xc4] ss:$8 sps:$4 sm:$0xff]   ;;  %v7075_v19 = vld [vmem:[#allocation9 + $0xc0] ss:$8 sps:$4 sm:$0xff]   ;;  %v7080_v59 = vld [vmem:[#allocation9 + $0xd4] ss:$8 sps:$4 sm:$0xff]  }
 0x3b3   :  { %v7078_v61 = vld [vmem:[#allocation9 + $0xd0] ss:$8 sps:$4 sm:$0xff]   ;;  %v7083_v29 = vld [vmem:[#allocation9 + $0xe4] ss:$8 sps:$4 sm:$0xff]   ;;  %v7086_v16 = vld [vmem:[#allocation9 + $0xf4] ss:$8 sps:$4 sm:$0xff]  }
 0x3b4   :  { %3964 = vmatpush1.bf16.msra.mxu1 %v7003_v26  ;;  %v7135_v21 = vld [vmem:[#allocation11] ss:$8 sps:$4 sm:$0xff]   ;;  %v7137_v22 = vld [vmem:[#allocation11 + $0x4] ss:$8 sps:$4 sm:$0xff]   ;;  %v7140_v26 = vld [vmem:[#allocation11 + $0x14] ss:$8 sps:$4 sm:$0xff]  }
 0x3b5   :  { %3965 = vmatprep.subr.bf16.mxu1 %v7008_v35  ;;  %5020 = vmatprep.subr.bf16.mxu0 %v7137_v22  ;;  %v7138_v35 = vld [vmem:[#allocation11 + $0x10] ss:$8 sps:$4 sm:$0xff]   ;;  %v7092_v22 = vld [vmem:[#allocation9 + $0x114] ss:$8 sps:$4 sm:$0xff]  }
 0x3b6   :  { %5021 = vmatpush1.bf16.msra.mxu0 %v7135_v21 }
 0x3b7   :  { %5022 = vmatprep.subr.bf16.mxu0 %v7140_v26 }
 0x3b8   :  { %3966 = vmatpush1.bf16.msra.mxu1 %v7006_v12  ;;  %v7143_v12 = vld [vmem:[#allocation11 + $0x24] ss:$8 sps:$4 sm:$0xff]  }
 0x3b9   :  { %3967 = vmatprep.subr.bf16.mxu1 %v7011_v52  ;;  %v7141_v52 = vld [vmem:[#allocation11 + $0x20] ss:$8 sps:$4 sm:$0xff]  }
 0x3ba   :  { %5023 = vmatpush1.bf16.msra.mxu0 %v7138_v35 }
 0x3bb   :  { %5024 = vmatprep.subr.bf16.mxu0 %v7143_v12 }
 0x3bc   :  { %3968 = vmatpush1.bf16.msra.mxu1 %v7009_v50  ;;  %v7146_v50 = vld [vmem:[#allocation11 + $0x34] ss:$8 sps:$4 sm:$0xff]  }
 0x3bd   :  { %3969 = vmatprep.subr.bf16.mxu1 %v7014_v28  ;;  %v7144_v28 = vld [vmem:[#allocation11 + $0x30] ss:$8 sps:$4 sm:$0xff]  }
 0x3be   :  { %5025 = vmatpush1.bf16.msra.mxu0 %v7141_v52 }
 0x3bf   :  { %5026 = vmatprep.subr.bf16.mxu0 %v7146_v50 }
 0x3c0   :  { %3970 = vmatpush1.bf16.msra.mxu1 %v7012_v57  ;;  %v7149_v57 = vld [vmem:[#allocation11 + $0x44] ss:$8 sps:$4 sm:$0xff]  }
 0x3c1   :  { %3971 = vmatprep.subr.bf16.mxu1 %v7017_v30  ;;  %v7147_v30 = vld [vmem:[#allocation11 + $0x40] ss:$8 sps:$4 sm:$0xff]  }
 0x3c2   :  { %5027 = vmatpush1.bf16.msra.mxu0 %v7144_v28 }
 0x3c3   :  { %5028 = vmatprep.subr.bf16.mxu0 %v7149_v57 }
 0x3c4   :  { %3972 = vmatpush1.bf16.msra.mxu1 %v7015_v53  ;;  %v7152_v53 = vld [vmem:[#allocation11 + $0x54] ss:$8 sps:$4 sm:$0xff]  }
 0x3c5   :  { %3973 = vmatprep.subr.bf16.mxu1 %v7020_v24  ;;  %v7150_v24 = vld [vmem:[#allocation11 + $0x50] ss:$8 sps:$4 sm:$0xff]  }
 0x3c6   :  { %5029 = vmatpush1.bf16.msra.mxu0 %v7147_v30 }
 0x3c7   :  { %5030 = vmatprep.subr.bf16.mxu0 %v7152_v53  ;;  %v7090_v53 = vld [vmem:[#allocation9 + $0x110] ss:$8 sps:$4 sm:$0xff]  }
 0x3c8   :  { %3974 = vmatpush1.bf16.msra.mxu1 %v7018_v58  ;;  %v7155_v58 = vld [vmem:[#allocation11 + $0x64] ss:$8 sps:$4 sm:$0xff]  }
 0x3c9   :  { %3975 = vmatprep.subr.bf16.mxu1 %v7023_v31  ;;  %v7153_v31 = vld [vmem:[#allocation11 + $0x60] ss:$8 sps:$4 sm:$0xff]  }
 0x3ca   :  { %5031 = vmatpush1.bf16.msra.mxu0 %v7150_v24 }
 0x3cb   :  { %5032 = vmatprep.subr.bf16.mxu0 %v7155_v58 }
 0x3cc   :  { %3976 = vmatpush1.bf16.msra.mxu1 %v7021_v32  ;;  %v7158_v32 = vld [vmem:[#allocation11 + $0x74] ss:$8 sps:$4 sm:$0xff]  }
 0x3cd   :  { %3977 = vmatprep.subr.bf16.mxu1 %v7026_v25  ;;  %v7156_v25 = vld [vmem:[#allocation11 + $0x70] ss:$8 sps:$4 sm:$0xff]  }
 0x3ce   :  { %5033 = vmatpush1.bf16.msra.mxu0 %v7153_v31 }
 0x3cf   :  { %5034 = vmatprep.subr.bf16.mxu0 %v7158_v32  ;;  %v7095_v32 = vld [vmem:[#allocation9 + $0x124] ss:$8 sps:$4 sm:$0xff]  }
 0x3d0   :  { %3978 = vmatpush1.bf16.msra.mxu1 %v7024_v54  ;;  %v7161_v54 = vld [vmem:[#allocation11 + $0x84] ss:$8 sps:$4 sm:$0xff]  }
 0x3d1   :  { %3979 = vmatprep.subr.bf16.mxu1 %v7029_v33  ;;  %v7159_v33 = vld [vmem:[#allocation11 + $0x80] ss:$8 sps:$4 sm:$0xff]  }
 0x3d2   :  { %5035 = vmatpush1.bf16.msra.mxu0 %v7156_v25 }
 0x3d3   :  { %5036 = vmatprep.subr.bf16.mxu0 %v7161_v54 }
 0x3d4   :  { %3980 = vmatpush1.bf16.msra.mxu1 %v7027_v56  ;;  %v7164_v56 = vld [vmem:[#allocation11 + $0x94] ss:$8 sps:$4 sm:$0xff]  }
 0x3d5   :  { %3981 = vmatprep.subr.bf16.mxu1 %v7032_v34  ;;  %v7162_v34 = vld [vmem:[#allocation11 + $0x90] ss:$8 sps:$4 sm:$0xff]  }
 0x3d6   :  { %5037 = vmatpush1.bf16.msra.mxu0 %v7159_v33 }
 0x3d7   :  { %5038 = vmatprep.subr.bf16.mxu0 %v7164_v56 }
 0x3d8   :  { %3982 = vmatpush1.bf16.msra.mxu1 %v7030_v41  ;;  %v7167_v41 = vld [vmem:[#allocation11 + $0xa4] ss:$8 sps:$4 sm:$0xff]  }
 0x3d9   :  { %3983 = vmatprep.subr.bf16.mxu1 %v7035_v36  ;;  %v6205_v36 = vld [vmem:[%s8409_s10 + $0x2] sm:$0x3] }
 0x3da   :  { %5039 = vmatpush1.bf16.msra.mxu0 %v7162_v34 }
 0x3db   :  { %5040 = vmatprep.subr.bf16.mxu0 %v7167_v41 }
 0x3dc   :  { %3984 = vmatpush1.bf16.msra.mxu1 %v7033_v37  ;;  %v7165_v37 = vld [vmem:[#allocation11 + $0xa0] ss:$8 sps:$4 sm:$0xff]  }
 0x3dd   :  { %3985 = vmatprep.subr.bf16.mxu1 %v7038_v40  ;;  %v7170_v40 = vld [vmem:[#allocation11 + $0xb4] ss:$8 sps:$4 sm:$0xff]  }
 0x3de   :  { %5041 = vmatpush1.bf16.msra.mxu0 %v7165_v37 }
 0x3df   :  { %5042 = vmatprep.subr.bf16.mxu0 %v7170_v40 }
 0x3e0   :  { %3986 = vmatpush1.bf16.msra.mxu1 %v7036_v46  ;;  %v3575_v46 = vrot.slane %v6205_v36, %v7735_v10 }
 0x3e1   :  { %4461 = vmatprep.subr.bf16.mxu1 %v7041_v5  ;;  %v3579_v5 = vrot.slane %v6205_v36, %v7743_v14 }
 0x3e3   :  { %6272 = vmatmul.mubr.msk.bf16.vlgmr.msra.gmra.mrb[36].mxu1 %vm7900_vm5, %v6271_v17  ;;  %v7084_v17 = vld [vmem:[#allocation9 + $0xf0] ss:$8 sps:$4 sm:$0xff]  }
 0x3e4   :  { %6275 = vmatprep.mubr.msk.bf16.mxu1 %vm7929_vm7, %v6274_v9  ;;  %4462 = vmatpush1.bf16.msra.mxu1 %v7039_v42  ;;  %v7081_v9 = vld [vmem:[#allocation9 + $0xe0] ss:$8 sps:$4 sm:$0xff]   ;;  %v7168_v42 = vld [vmem:[#allocation11 + $0xb0] ss:$8 sps:$4 sm:$0xff]  }
 0x3e5   :  { %4463 = vmatprep.subr.bf16.mxu1 %v7044_v13  ;;  %5043 = vmatpush1.bf16.msra.mxu0 %v7168_v42 }
 0x3e8   :  { %4464 = vmatpush1.bf16.msra.mxu1 %v7042_v47  ;;  %v7173_v47 = vld [vmem:[#allocation11 + $0xc4] ss:$8 sps:$4 sm:$0xff]  }
 0x3e9   :  { %4465 = vmatprep.subr.bf16.mxu1 %v7047_v20  ;;  %5044 = vmatprep.subr.bf16.mxu0 %v7173_v47 }
 0x3eb   :  { %3998 = vmatmul.mubr.bf16.gmra.mrb[40].mxu1 %v3490_v15  ;;  %v7089_v15 = vld [vmem:[#allocation9 + $0x104] ss:$8 sps:$4 sm:$0xff]  }
 0x3ec   :  { %4466 = vmatpush1.bf16.msra.mxu1 %v7045_v60 }
 0x3ed   :  { %4467 = vmatprep.subr.bf16.mxu1 %v7050_v62 }
 0x3f0   :  { %4468 = vmatpush1.bf16.msra.mxu1 %v7048_v18 }
 0x3f1   :  { %4469 = vmatprep.subr.bf16.mxu1 %v7053_v4 }
 0x3f4   :  { %4470 = vmatpush1.bf16.msra.mxu1 %v7051_v6 }
 0x3f5   :  { %4471 = vmatprep.subr.bf16.mxu1 %v7056_v49 }
 0x3f8   :  { %4472 = vmatpush1.bf16.msra.mxu1 %v7054_v51  ;;  %v7171_v51 = vld [vmem:[#allocation11 + $0xc0] ss:$8 sps:$4 sm:$0xff]  }
 0x3f9   :  { %4473 = vmatprep.subr.bf16.mxu1 %v7059_v48  ;;  %5045 = vmatpush1.bf16.msra.mxu0 %v7171_v51  ;;  %v7101_v51 = vld [vmem:[#allocation9 + $0x144] ss:$8 sps:$4 sm:$0xff]  }
 0x3fc   :  { %4474 = vmatpush1.bf16.msra.mxu1 %v7057_v1 }
 0x3fd   :  { %4475 = vmatprep.subr.bf16.mxu1 %v7062_v55  ;;  %v7176_v55 = vld [vmem:[#allocation11 + $0xd4] ss:$8 sps:$4 sm:$0xff]  }
 0x3fe   :  { %5046 = vmatprep.subr.bf16.mxu0 %v7176_v55  ;;  %v7102_v55 = vld [vmem:[#allocation9 + $0x150] ss:$8 sps:$4 sm:$0xff]  }
 0x400   :  { %4476 = vmatpush1.bf16.msra.mxu1 %v7060_v39 }
 0x401   :  { %4477 = vmatprep.subr.bf16.mxu1 %v7065_v38 }
 0x404   :  { %4478 = vmatpush1.bf16.msra.mxu1 %v7063_v63 }
 0x405   :  { %4479 = vmatprep.subr.bf16.mxu1 %v7068_v2 }
 0x408   :  { %4480 = vmatpush1.bf16.msra.mxu1 %v7066_v0 }
 0x409   :  { %4481 = vmatprep.subr.bf16.mxu1 %v7071_v44  ;;  %v7174_v44 = vld [vmem:[#allocation11 + $0xd0] ss:$8 sps:$4 sm:$0xff]  }
 0x40a   :  { %5047 = vmatpush1.bf16.msra.mxu0 %v7174_v44  ;;  %v7111_v44 = vld [vmem:[#allocation9 + $0x180] ss:$8 sps:$4 sm:$0xff]  }
 0x40c   :  { %4482 = vmatpush1.bf16.msra.mxu1 %v7069_v8 }
 0x40d   :  { %4483 = vmatprep.subr.bf16.mxu1 %v7074_v27 }
 0x410   :  { %4484 = vmatpush1.bf16.msra.mxu1 %v7072_v11 }
 0x411   :  { %4485 = vmatprep.subr.bf16.mxu1 %v7077_v7 }
 0x414   :  { %4486 = vmatpush1.bf16.msra.mxu1 %v7075_v19 }
 0x415   :  { %4487 = vmatprep.subr.bf16.mxu1 %v7080_v59 }
 0x418   :  { %4488 = vmatpush1.bf16.msra.mxu1 %v7078_v61 }
 0x419   :  { %4489 = vmatprep.subr.bf16.mxu1 %v7083_v29 }
 0x41c   :  { %4490 = vmatpush1.bf16.msra.mxu1 %v7081_v9 }
 0x41d   :  { %4491 = vmatprep.subr.bf16.mxu1 %v7086_v16 }
 0x420   :  { %4492 = vmatpush1.bf16.msra.mxu1 %v7084_v17  ;;  %v7087_v17 = vld [vmem:[#allocation9 + $0x100] ss:$8 sps:$4 sm:$0xff]  }
 0x421   :  { %4514 = vmatprep.subr.bf16.mxu1 %v7089_v15 }
 0x4b6   :  { %v3989_v13 = vpop.f32.mrb[36].mxu1 }
 0x4b7   :  { %v6703_v20 = vadd.f32 %v3989_v13, %v3575_v46  ;;  %v3991_v60 = vpop.f32.mrb[37].mxu1  ;;  %v7098_v13 = vld [vmem:[#allocation9 + $0x134] ss:$8 sps:$4 sm:$0xff]  }
 0x4b8   :  { %v6704_v62 = vadd.f32 %v3991_v60, %v3579_v5  ;;  %v3993_v18 = vpop.f32.mrb[38].mxu1 }
 0x4b9   :  { %vm4008_vm1 = vcmp.ge.f32.partialorder %v6703_v20, 0.0  ;;  %v4016_v4 = vmul.f32 0.2, %v6703_v20  ;;  %v6705_v6 = vadd.f32 %v3993_v18, %v3575_v46  ;;  %v3995_v49 = vpop.f32.mrb[39].mxu1 }
 0x4ba   :  { %vm4009_vm2 = vcmp.ge.f32.partialorder %v6704_v62, 0.0  ;;  %v4017_v48 = vmul.f32 0.2, %v6704_v62  ;;  %v6706_v1 = vadd.f32 %v3995_v49, %v3579_v5  ;;  %v7096_v49 = vld [vmem:[#allocation9 + $0x130] ss:$8 sps:$4 sm:$0xff]  }
 0x4bb   :  { %v8000_v39 = vsel %vm4008_vm1, %v6703_v20, %v4016_v4  ;;  %vm4010_vm3 = vcmp.ge.f32.partialorder %v6705_v6, 0.0  ;;  %v4018_v38 = vmul.f32 0.2, %v6705_v6 }
 0x4bc   :  { %vm4011_vm4 = vcmp.ge.f32.partialorder %v6706_v1, 0.0  ;;  %v4019_v63 = vmul.f32 0.2, %v6706_v1  ;;  %v4025_v2 = vsel %vm4009_vm2, %v6704_v62, %v4017_v48  ;;  %v4050_v8 = vrot.slane %v8000_v39, 4  ;;  %v7099_v48 = vld [vmem:[#allocation9 + $0x140] ss:$8 sps:$4 sm:$0xff]  }
 0x4bd   :  { %v4026_v0 = vsel %vm4010_vm3, %v6705_v6, %v4018_v38  ;;  %v4036_v9 = vrot.slane %v4025_v2, 4  ;;  %v7105_v38 = vld [vmem:[#allocation9 + $0x160] ss:$8 sps:$4 sm:$0xff]  }
 0x4be   :  { %v4032_v27 = vpack.c.bf16 %v4026_v0, %v8000_v39  ;;  %v4051_v11 = vrot.slane %v4026_v0, 4  ;;  %v3999_v7 = vpop.f32.mrb[40].mxu1  ;;  %v4027_v19 = vsel %vm4011_vm4, %v6706_v1, %v4019_v63  ;;  %v7104_v1 = vld [vmem:[#allocation9 + $0x154] ss:$8 sps:$4 sm:$0xff]   ;;  %v7107_v39 = vld [vmem:[#allocation9 + $0x164] ss:$8 sps:$4 sm:$0xff]  }
 0x4bf   :  { %v6707_v59 = vadd.f32 %v3999_v7, %v3575_v46  ;;  %v4001_v61 = vpop.f32.mrb[41].mxu1  ;;  %v4033_v29 = vpack.c.bf16 %v4027_v19, %v4025_v2  ;;  %v4037_v16 = vrot.slane %v4027_v19, 4  ;;  %v7110_v63 = vld [vmem:[#allocation9 + $0x174] ss:$8 sps:$4 sm:$0xff]   ;;  %v7108_v2 = vld [vmem:[#allocation9 + $0x170] ss:$8 sps:$4 sm:$0xff]  }
 0x4c0   :  { %v6708_v15 = vadd.f32 %v4001_v61, %v3579_v5  ;;  %v4003_v21 = vpop.f32.mrb[42].mxu1  ;;  %v4056_v26 = vsel %vm2653_vm10, %v4050_v8, %v4051_v11  ;;  %v7113_v0 = vld [vmem:[#allocation9 + $0x184] ss:$8 sps:$4 sm:$0xff]   ;;  %v7117_v7 = vld [vmem:[#allocation9 + $0x1a0] ss:$8 sps:$4 sm:$0xff]  }
 0x4c1   :  { %vm4012_vm6 = vcmp.ge.f32.partialorder %v6707_v59, 0.0  ;;  %v4020_v35 = vmul.f32 0.2, %v6707_v59  ;;  %v6709_v12 = vadd.f32 %v4003_v21, %v3575_v46  ;;  %v4005_v52 = vpop.f32.mrb[43].mxu1  ;;  %v8008_v50 = vsel %vm2653_vm10, %v4036_v9, %v4037_v16  ;;  %4493 = vmatprep.mubr.bf16.mxu1 %v4033_v29  ;;  %v7093_v46 = vld [vmem:[#allocation9 + $0x120] ss:$8 sps:$4 sm:$0xff]  }
 0x4c2   :  { %vm4013_vm8 = vcmp.ge.f32.partialorder %v6708_v15, 0.0  ;;  %v4021_v28 = vmul.f32 0.2, %v6708_v15  ;;  %v6710_v57 = vadd.f32 %v4005_v52, %v3579_v5  ;;  %4494 = vmatmul.mubr.bf16.vlgmr.msra.gmra.mrb[44].mxu1 %v4032_v27  ;;  %v7114_v27 = vld [vmem:[#allocation9 + $0x190] ss:$8 sps:$4 sm:$0xff]  }
 0x4c3   :  { %vm4014_vm9 = vcmp.ge.f32.partialorder %v6709_v12, 0.0  ;;  %v4022_v30 = vmul.f32 0.2, %v6709_v12  ;;  %4515 = vmatpush1.bf16.msra.mxu1 %v7087_v17  ;;  %v4028_v24 = vsel %vm4012_vm6, %v6707_v59, %v4020_v35  ;;  %v7122_v19 = vld [vmem:[#allocation9 + $0x1b4] ss:$8 sps:$4 sm:$0xff]  }
 0x4c4   :  { %vm4015_vm11 = vcmp.ge.f32.partialorder %v6710_v57, 0.0  ;;  %v4023_v58 = vmul.f32 0.2, %v6710_v57  ;;  %4516 = vmatprep.subr.bf16.mxu1 %v7092_v22  ;;  %v4029_v31 = vsel %vm4013_vm8, %v6708_v15, %v4021_v28  ;;  %v4052_v25 = vrot.slane %v4028_v24, 4  ;;  %v7120_v59 = vld [vmem:[#allocation9 + $0x1b0] ss:$8 sps:$4 sm:$0xff]  }
 0x4c5   :  { %v4038_v54 = vrot.slane %v4029_v31, 4  ;;  %v4030_v33 = vsel %vm4014_vm9, %v6709_v12, %v4022_v30  ;;  %v7125_v61 = vld [vmem:[#allocation9 + $0x1c4] ss:$8 sps:$4 sm:$0xff]   ;;  %v7123_v29 = vld [vmem:[#allocation9 + $0x1c0] ss:$8 sps:$4 sm:$0xff]  }
 0x4c6   :  { %v4031_v56 = vsel %vm4015_vm11, %v6710_v57, %v4023_v58  ;;  %v4034_v34 = vpack.c.bf16 %v4030_v33, %v4028_v24  ;;  %v4053_v41 = vrot.slane %v4030_v33, 4  ;;  %v4055_v36 = vsel %vm2653_vm10, %v4051_v11, %v4052_v25  ;;  %v7119_v11 = vld [vmem:[#allocation9 + $0x1a4] ss:$8 sps:$4 sm:$0xff]   ;;  %v7129_v15 = vld [vmem:[#allocation9 + $0x1e0] ss:$8 sps:$4 sm:$0xff]   ;;  %v7235_v24 = vld [vmem:[%s8408_s9 + $0x50] sm:$0xff]  }
 0x4c7   :  { %4517 = vmatpush1.bf16.msra.mxu1 %v7090_v53  ;;  %v4035_v37 = vpack.c.bf16 %v4031_v56, %v4029_v31  ;;  %v4039_v40 = vrot.slane %v4031_v56, 4  ;;  %v4062_v5 = vpack.c.bf16 %v4055_v36, %v4056_v26  ;;  %v8014_v42 = vsel %vm2653_vm10, %v4037_v16, %v4038_v54  ;;  %v7126_v16 = vld [vmem:[#allocation9 + $0x1d0] ss:$8 sps:$4 sm:$0xff]   ;;  %v7131_v17 = vld [vmem:[#allocation9 + $0x1e4] ss:$8 sps:$4 sm:$0xff]  }
 0x4c8   :  { %4518 = vmatprep.subr.bf16.mxu1 %v7095_v32  ;;  %v8018_v47 = vsel %vm2653_vm10, %v4052_v25, %v4053_v41  ;;  %v8022_v20 = vsel %vm2653_vm10, %v4053_v41, %v4050_v8  ;;  %v7116_v8 = vld [vmem:[#allocation9 + $0x194] ss:$8 sps:$4 sm:$0xff]   ;;  %v7132_v22 = vld [vmem:[#allocation9 + $0x1f0] ss:$8 sps:$4 sm:$0xff]   ;;  %v7179_v26 = vld [vmem:[#allocation11 + $0xe4] ss:$8 sps:$4 sm:$0xff]  }
 0x4c9   :  { %v4043_v60 = vsel %vm2653_vm10, %v4039_v40, %v4036_v9  ;;  %4503 = vmatprep.mubr.bf16.mxu1 %v4035_v37  ;;  %v6345_v62 = vpack.c.bf16 %v8022_v20, %v8018_v47  ;;  %v4040_v18 = vsel %vm2653_vm10, %v4038_v54, %v4039_v40  ;;  %v7128_v9 = vld [vmem:[#allocation9 + $0x1d4] ss:$8 sps:$4 sm:$0xff]   ;;  %v7177_v35 = vld [vmem:[#allocation11 + $0xe0] ss:$8 sps:$4 sm:$0xff]   ;;  %5048 = vmatprep.subr.bf16.mxu0 %v7179_v26  ;;  %v7180_v52 = vld [vmem:[#allocation11 + $0xf0] ss:$8 sps:$4 sm:$0xff]  }
 0x4ca   :  { %v6342_v4 = vpack.c.bf16 %v8008_v50, %v4043_v60  ;;  %4504 = vmatmul.mubr.bf16.gmra.mrb[48].mxu1 %v4034_v34  ;;  %v4049_v6 = vpack.c.bf16 %v4040_v18, %v8014_v42  ;;  %v7134_v21 = vld [vmem:[#allocation9 + $0x1f4] ss:$8 sps:$4 sm:$0xff]   ;;  %5049 = vmatpush1.bf16.msra.mxu0 %v7177_v35  ;;  %v7185_v50 = vld [vmem:[#allocation11 + $0x104] ss:$8 sps:$4 sm:$0xff]  }
 0x4cb   :  { %4519 = vmatpush1.bf16.msra.mxu1 %v7093_v46  ;;  %4546 = vmatprep.mubr.bf16.mxu1 %v4062_v5  ;;  %v7182_v12 = vld [vmem:[#allocation11 + $0xf4] ss:$8 sps:$4 sm:$0xff]   ;;  %v7231_v28 = vld [vmem:[%s8408_s9 + $0x40] sm:$0xff]   ;;  %v7233_v30 = vld [vmem:[%s8408_s9 + $0x48] sm:$0xff]  }
 0x4cc   :  { %4520 = vmatprep.subr.bf16.mxu1 %v7098_v13  ;;  %5050 = vmatprep.subr.bf16.mxu0 %v7182_v12  ;;  %v7232_v57 = vld [vmem:[%s8408_s9] sm:$0xff]   ;;  %v7234_v53 = vld [vmem:[%s8408_s9 + $0x8] sm:$0xff]   ;;  %v7236_v58 = vld [vmem:[%s8408_s9 + $0x10] sm:$0xff]  }
 0x4cd   :  { %v7237_v31 = vld [vmem:[%s8408_s9 + $0x58] sm:$0xff]   ;;  %v7239_v25 = vld [vmem:[%s8408_s9 + $0x60] sm:$0xff]   ;;  %v7241_v56 = vld [vmem:[%s8408_s9 + $0x68] sm:$0xff]  }
 0x4ce   :  { %5051 = vmatpush1.bf16.msra.mxu0 %v7180_v52  ;;  %v7238_v32 = vld [vmem:[%s8408_s9 + $0x18] sm:$0xff]   ;;  %v6276_v54 = vld [vmem:[%s8409_s10 + $0x4] sm:$0x3] }
 0x4cf   :  { %4521 = vmatpush1.bf16.msra.mxu1 %v7096_v49  ;;  %5073 = vmatprep.subr.bf16.mxu0 %v7185_v50  ;;  %v7240_v33 = vld [vmem:[%s8408_s9 + $0x20] sm:$0xff]   ;;  %v4134_v34 = vrot.slane %v6276_v54, %v7735_v10  ;;  %v4138_v41 = vrot.slane %v6276_v54, %v7743_v14 }
 0x4d0   :  { %4522 = vmatprep.subr.bf16.mxu1 %v7101_v51  ;;  %v7191_v12 = vld [vmem:[#allocation11 + $0x124] ss:$8 sps:$4 sm:$0xff]  }
 0x4d3   :  { %4523 = vmatpush1.bf16.msra.mxu1 %v7099_v48 }
 0x4d4   :  { %4524 = vmatprep.subr.bf16.mxu1 %v7104_v1 }
 0x4d7   :  { %4525 = vmatpush1.bf16.msra.mxu1 %v7102_v55 }
 0x4d8   :  { %4526 = vmatprep.subr.bf16.mxu1 %v7107_v39 }
 0x4db   :  { %4527 = vmatpush1.bf16.msra.mxu1 %v7105_v38 }
 0x4dc   :  { %4528 = vmatprep.subr.bf16.mxu1 %v7110_v63 }
 0x4df   :  { %4529 = vmatpush1.bf16.msra.mxu1 %v7108_v2 }
 0x4e0   :  { %4530 = vmatprep.subr.bf16.mxu1 %v7113_v0 }
 0x4e3   :  { %4531 = vmatpush1.bf16.msra.mxu1 %v7111_v44 }
 0x4e4   :  { %4532 = vmatprep.subr.bf16.mxu1 %v7116_v8  ;;  %v7183_v8 = vld [vmem:[#allocation11 + $0x100] ss:$8 sps:$4 sm:$0xff]  }
 0x4e7   :  { %4533 = vmatpush1.bf16.msra.mxu1 %v7114_v27 }
 0x4e8   :  { %4534 = vmatprep.subr.bf16.mxu1 %v7119_v11 }
 0x4eb   :  { %4535 = vmatpush1.bf16.msra.mxu1 %v7117_v7  ;;  %v7188_v7 = vld [vmem:[#allocation11 + $0x114] ss:$8 sps:$4 sm:$0xff]  }
 0x4ec   :  { %4536 = vmatprep.subr.bf16.mxu1 %v7122_v19 }
 0x4ef   :  { %4537 = vmatpush1.bf16.msra.mxu1 %v7120_v59 }
 0x4f0   :  { %4538 = vmatprep.subr.bf16.mxu1 %v7125_v61 }
 0x4f3   :  { %4539 = vmatpush1.bf16.msra.mxu1 %v7123_v29 }
 0x4f4   :  { %4540 = vmatprep.subr.bf16.mxu1 %v7128_v9 }
 0x4f7   :  { %4541 = vmatpush1.bf16.msra.mxu1 %v7126_v16 }
 0x4f8   :  { %4542 = vmatprep.subr.bf16.mxu1 %v7131_v17 }
 0x4fb   :  { %4543 = vmatpush1.bf16.msra.mxu1 %v7129_v15 }
 0x4fc   :  { %4544 = vmatprep.subr.bf16.mxu1 %v7134_v21  ;;  %v7186_v21 = vld [vmem:[#allocation11 + $0x110] ss:$8 sps:$4 sm:$0xff]  }
 0x4ff   :  { %4545 = vmatpush1.bf16.msra.mxu1 %v7132_v22 }
 0x500   :  { %6454 = vmatprep.subr.bf16.mxu1 %v7231_v28 }
 0x502   :  { %6343 = vmatmul.mubr.msk.bf16.vlgmr.msra.gmra.mrb[44].mxu1 %vm7900_vm5, %v6342_v4 }
 0x503   :  { %6346 = vmatprep.mubr.msk.bf16.mxu1 %vm7929_vm7, %v6345_v62  ;;  %6455 = vmatpush3.bf16.msra.mxu1 %v7232_v57 }
 0x504   :  { %6456 = vmatprep.subr.bf16.mxu1 %v7233_v30 }
 0x507   :  { %6457 = vmatpush3.bf16.msra.mxu1 %v7234_v53 }
 0x508   :  { %6458 = vmatprep.subr.bf16.mxu1 %v7235_v24 }
 0x50a   :  { %4557 = vmatmul.mubr.bf16.gmra.mrb[48].mxu1 %v4049_v6 }
 0x50b   :  { %6459 = vmatpush3.bf16.msra.mxu1 %v7236_v58 }
 0x50c   :  { %6460 = vmatprep.subr.bf16.mxu1 %v7237_v31 }
 0x50f   :  { %6461 = vmatpush3.bf16.msra.mxu1 %v7238_v32  ;;  %v7189_v32 = vld [vmem:[#allocation11 + $0x120] ss:$8 sps:$4 sm:$0xff]  }
 0x510   :  { %6462 = vmatprep.subr.bf16.mxu1 %v7239_v25 }
 0x513   :  { %6463 = vmatpush3.bf16.msra.mxu1 %v7240_v33  ;;  %v7194_v33 = vld [vmem:[#allocation11 + $0x134] ss:$8 sps:$4 sm:$0xff]  }
 0x514   :  { %6464 = vmatprep.subr.bf16.mxu1 %v7241_v56 }
 0x5d5   :  { %v4548_v36 = vpop.f32.mrb[44].mxu1 }
 0x5d6   :  { %v6711_v37 = vadd.f32 %v4548_v36, %v4134_v34  ;;  %v4550_v40 = vpop.f32.mrb[45].mxu1 }
 0x5d7   :  { %v6712_v46 = vadd.f32 %v4550_v40, %v4138_v41  ;;  %v4552_v5 = vpop.f32.mrb[46].mxu1 }
 0x5d8   :  { %vm4567_vm12 = vcmp.ge.f32.partialorder %v6711_v37, 0.0  ;;  %v4575_v42 = vmul.f32 0.2, %v6711_v37  ;;  %v6713_v13 = vadd.f32 %v4552_v5, %v4134_v34  ;;  %v4554_v47 = vpop.f32.mrb[47].mxu1  ;;  %v7192_v5 = vld [vmem:[#allocation11 + $0x130] ss:$8 sps:$4 sm:$0xff]  }
 0x5d9   :  { %vm4568_vm13 = vcmp.ge.f32.partialorder %v6712_v46, 0.0  ;;  %v4576_v20 = vmul.f32 0.2, %v6712_v46  ;;  %v6714_v60 = vadd.f32 %v4554_v47, %v4138_v41  ;;  %v7200_v47 = vld [vmem:[#allocation11 + $0x154] ss:$8 sps:$4 sm:$0xff]  }
 0x5da   :  { %v4583_v62 = vsel %vm4567_vm12, %v6711_v37, %v4575_v42  ;;  %vm4569_vm14 = vcmp.ge.f32.partialorder %v6713_v13, 0.0  ;;  %v4577_v18 = vmul.f32 0.2, %v6713_v13  ;;  %v7197_v42 = vld [vmem:[#allocation11 + $0x144] ss:$8 sps:$4 sm:$0xff]  }
 0x5db   :  { %vm4570_vm15 = vcmp.ge.f32.partialorder %v6714_v60, 0.0  ;;  %v4578_v4 = vmul.f32 0.2, %v6714_v60  ;;  %v4584_v6 = vsel %vm4568_vm13, %v6712_v46, %v4576_v20  ;;  %v4609_v51 = vrot.slane %v4583_v62, 4  ;;  %v7198_v20 = vld [vmem:[#allocation11 + $0x150] ss:$8 sps:$4 sm:$0xff]  }
 0x5dc   :  { %v4585_v49 = vsel %vm4569_vm14, %v6713_v13, %v4577_v18  ;;  %v4595_v0 = vrot.slane %v4584_v6, 4  ;;  %v7195_v13 = vld [vmem:[#allocation11 + $0x140] ss:$8 sps:$4 sm:$0xff]   ;;  %v7206_v18 = vld [vmem:[#allocation11 + $0x174] ss:$8 sps:$4 sm:$0xff]  }
 0x5dd   :  { %v4591_v48 = vpack.c.bf16 %v4585_v49, %v4583_v62  ;;  %v4610_v1 = vrot.slane %v4585_v49, 4  ;;  %v4558_v55 = vpop.f32.mrb[48].mxu1  ;;  %v4586_v39 = vsel %vm4570_vm15, %v6714_v60, %v4578_v4  ;;  %v7203_v60 = vld [vmem:[#allocation11 + $0x164] ss:$8 sps:$4 sm:$0xff]   ;;  %v7201_v62 = vld [vmem:[#allocation11 + $0x160] ss:$8 sps:$4 sm:$0xff]  }
 0x5de   :  { %v6715_v38 = vadd.f32 %v4558_v55, %v4134_v34  ;;  %v4560_v63 = vpop.f32.mrb[49].mxu1  ;;  %v4592_v2 = vpack.c.bf16 %v4586_v39, %v4584_v6  ;;  %v4596_v44 = vrot.slane %v4586_v39, 4  ;;  %v7204_v4 = vld [vmem:[#allocation11 + $0x170] ss:$8 sps:$4 sm:$0xff]   ;;  %v7209_v6 = vld [vmem:[#allocation11 + $0x184] ss:$8 sps:$4 sm:$0xff]  }
 0x5df   :  { %v6716_v27 = vadd.f32 %v4560_v63, %v4138_v41  ;;  %v4562_v11 = vpop.f32.mrb[50].mxu1  ;;  %v4615_v19 = vsel %vm2653_vm10, %v4609_v51, %v4610_v1  ;;  %v7207_v49 = vld [vmem:[#allocation11 + $0x180] ss:$8 sps:$4 sm:$0xff]   ;;  %v7218_v39 = vld [vmem:[#allocation11 + $0x1b4] ss:$8 sps:$4 sm:$0xff]  }
 0x5e0   :  { %vm4571_vm0 = vcmp.ge.f32.partialorder %v6715_v38, 0.0  ;;  %v4579_v59 = vmul.f32 0.2, %v6715_v38  ;;  %v6717_v61 = vadd.f32 %v4562_v11, %v4134_v34  ;;  %v4564_v29 = vpop.f32.mrb[51].mxu1  ;;  %v8078_v9 = vsel %vm2653_vm10, %v4595_v0, %v4596_v44  ;;  %5052 = vmatprep.mubr.bf16.mxu0 %v4592_v2  ;;  %v7213_v55 = vld [vmem:[#allocation11 + $0x1a0] ss:$8 sps:$4 sm:$0xff]  }
 0x5e1   :  { %vm4572_vm1 = vcmp.ge.f32.partialorder %v6716_v27, 0.0  ;;  %v4580_v16 = vmul.f32 0.2, %v6716_v27  ;;  %v6718_v17 = vadd.f32 %v4564_v29, %v4138_v41  ;;  %5053 = vmatmul.mubr.bf16.vlgmr.msra.gmra.mrb[36].mxu0 %v4591_v48  ;;  %v7210_v48 = vld [vmem:[#allocation11 + $0x190] ss:$8 sps:$4 sm:$0xff]   ;;  %v5494_v29 = vld [vmem:[%s8411_s12] sm:$0xff] }
 0x5e2   :  { %vm4573_vm2 = vcmp.ge.f32.partialorder %v6717_v61, 0.0  ;;  %v4581_v15 = vmul.f32 0.2, %v6717_v61  ;;  %5074 = vmatpush1.bf16.msra.mxu0 %v7183_v8  ;;  %v4587_v22 = vsel %vm4571_vm0, %v6715_v38, %v4579_v59  ;;  %v7216_v38 = vld [vmem:[#allocation11 + $0x1b0] ss:$8 sps:$4 sm:$0xff]  }
 0x5e3   :  { %vm4574_vm3 = vcmp.ge.f32.partialorder %v6718_v17, 0.0  ;;  %v4582_v26 = vmul.f32 0.2, %v6718_v17  ;;  %5075 = vmatprep.subr.bf16.mxu0 %v7188_v7  ;;  %v4588_v35 = vsel %vm4572_vm1, %v6716_v27, %v4580_v16  ;;  %v4611_v52 = vrot.slane %v4587_v22, 4  ;;  %v7221_v63 = vld [vmem:[#allocation11 + $0x1c4] ss:$8 sps:$4 sm:$0xff]  }
 0x5e4   :  { %v4597_v50 = vrot.slane %v4588_v35, 4  ;;  %v4589_v28 = vsel %vm4573_vm2, %v6717_v61, %v4581_v15  ;;  %v7219_v2 = vld [vmem:[#allocation11 + $0x1c0] ss:$8 sps:$4 sm:$0xff]   ;;  %v7227_v8 = vld [vmem:[#allocation11 + $0x1e4] ss:$8 sps:$4 sm:$0xff]   ;;  %v5513_v15 = vld [vmem:[%s8411_s12 + $0x98] sm:$0xff] }
 0x5e5   :  { %v4590_v57 = vsel %vm4574_vm3, %v6718_v17, %v4582_v26  ;;  %v4593_v30 = vpack.c.bf16 %v4589_v28, %v4587_v22  ;;  %v4612_v53 = vrot.slane %v4589_v28, 4  ;;  %v4614_v24 = vsel %vm2653_vm10, %v4610_v1, %v4611_v52  ;;  %v7215_v1 = vld [vmem:[#allocation11 + $0x1a4] ss:$8 sps:$4 sm:$0xff]   ;;  %v7225_v27 = vld [vmem:[#allocation11 + $0x1e0] ss:$8 sps:$4 sm:$0xff]   ;;  %v5512_v17 = vld [vmem:[%s8411_s12 + $0x90] sm:$0xff] }
 0x5e6   :  { %5076 = vmatpush1.bf16.msra.mxu0 %v7186_v21  ;;  %v4594_v58 = vpack.c.bf16 %v4590_v57, %v4588_v35  ;;  %v4598_v31 = vrot.slane %v4590_v57, 4  ;;  %v4621_v25 = vpack.c.bf16 %v4614_v24, %v4615_v19  ;;  %v8084_v54 = vsel %vm2653_vm10, %v4596_v44, %v4597_v50  ;;  %v7222_v44 = vld [vmem:[#allocation11 + $0x1d0] ss:$8 sps:$4 sm:$0xff]   ;;  %v7230_v11 = vld [vmem:[#allocation11 + $0x1f4] ss:$8 sps:$4 sm:$0xff]   ;;  %v5510_v7 = vld [vmem:[%s8411_s12 + $0x80] sm:$0xff] }
 0x5e7   :  { %5077 = vmatprep.subr.bf16.mxu0 %v7191_v12  ;;  %v8088_v56 = vsel %vm2653_vm10, %v4611_v52, %v4612_v53  ;;  %v8092_v34 = vsel %vm2653_vm10, %v4612_v53, %v4609_v51  ;;  %v7212_v51 = vld [vmem:[#allocation11 + $0x194] ss:$8 sps:$4 sm:$0xff]   ;;  %v5511_v19 = vld [vmem:[%s8411_s12 + $0x88] sm:$0xff]  ;;  %v7228_v59 = vld [vmem:[#allocation11 + $0x1f0] ss:$8 sps:$4 sm:$0xff]   ;;  %v6631_v22 = vpack.c.bf16 %v5513_v15, %v5512_v17 }
 0x5e8   :  { %v8096_v41 = vsel %vm2653_vm10, %v4598_v31, %v4595_v0  ;;  %5062 = vmatprep.mubr.bf16.mxu0 %v4594_v58  ;;  %v6416_v36 = vpack.c.bf16 %v8092_v34, %v8088_v56  ;;  %v8102_v37 = vsel %vm2653_vm10, %v4597_v50, %v4598_v31  ;;  %v7224_v0 = vld [vmem:[#allocation11 + $0x1d4] ss:$8 sps:$4 sm:$0xff]   ;;  %v6627_v61 = vpack.c.bf16 %v5511_v19, %v5510_v7  ;;  %v5495_v16 = vld [vmem:[%s8411_s12 + $0x8] sm:$0xff]  ;;  %v5514_v12 = vld [vmem:[%s8411_s12 + $0xa0] sm:$0xff] }
 0x5e9   :  { %v6413_v40 = vpack.c.bf16 %v8078_v9, %v8096_v41  ;;  %5063 = vmatmul.mubr.bf16.gmra.mrb[40].mxu0 %v4593_v30  ;;  %v4608_v46 = vpack.c.bf16 %v8102_v37, %v8084_v54  ;;  %v6629_v21 = vpack.c.bf16 %v5495_v16, %v5494_v29  ;;  %v5496_v26 = vld [vmem:[%s8411_s12 + $0x10] sm:$0xff]  ;;  %v5497_v35 = vld [vmem:[%s8411_s12 + $0x18] sm:$0xff]  ;;  %v5515_v52 = vld [vmem:[%s8411_s12 + $0xa8] sm:$0xff] }
 0x5ea   :  { %5078 = vmatpush1.bf16.msra.mxu0 %v7189_v32  ;;  %5105 = vmatprep.mubr.bf16.mxu0 %v4621_v25  ;;  %v6633_v50 = vpack.c.bf16 %v5497_v35, %v5496_v26  ;;  %v6635_v28 = vpack.c.bf16 %v5515_v52, %v5514_v12  ;;  %v5498_v57 = vld [vmem:[%s8411_s12 + $0x20] sm:$0xff]  ;;  %v5499_v9 = vld [vmem:[%s8411_s12 + $0x28] sm:$0xff]  ;;  %v5517_v30 = vld [vmem:[%s8411_s12 + $0xb8] sm:$0xff] }
 0x5eb   :  { %5079 = vmatprep.subr.bf16.mxu0 %v7194_v33  ;;  %v6637_v53 = vpack.c.bf16 %v5499_v9, %v5498_v57  ;;  %v6639_v24 = vpack.c.bf16 %v5517_v30, %v5516_v23  ;;  %v5500_v58 = vld [vmem:[%s8411_s12 + $0x30] sm:$0xff]  ;;  %v5501_v31 = vld [vmem:[%s8411_s12 + $0x38] sm:$0xff]  ;;  %v5518_v32 = vld [vmem:[%s8411_s12 + $0xc0] sm:$0xff] }
 0x5ec   :  { %v5519_v25 = vld [vmem:[%s8411_s12 + $0xc8] sm:$0xff]  ;;  %v6641_v33 = vpack.c.bf16 %v5501_v31, %v5500_v58  ;;  %v5502_v34 = vld [vmem:[%s8411_s12 + $0x40] sm:$0xff]  ;;  %v5521_v54 = vld [vmem:[%s8411_s12 + $0xd8] sm:$0xff] }
 0x5ed   :  { %v6643_v56 = vpack.c.bf16 %v5519_v25, %v5518_v32  ;;  %v5503_v41 = vld [vmem:[%s8411_s12 + $0x48] sm:$0xff] }
 0x5ee   :  { %5080 = vmatpush1.bf16.msra.mxu0 %v7192_v5  ;;  %v5522_v5 = vld [vmem:[%s8411_s12 + $0xe0] sm:$0xff]  ;;  %v7248_v32 = vld [vmem:[%s8408_s9 + $0x88] sm:$0xff]  }
 0x5ef   :  { %5081 = vmatprep.subr.bf16.mxu0 %v7197_v42  ;;  %v5523_v42 = vld [vmem:[%s8411_s12 + $0xe8] sm:$0xff] }
 0x5f2   :  { %5082 = vmatpush1.bf16.msra.mxu0 %v7195_v13 }
 0x5f3   :  { %5083 = vmatprep.subr.bf16.mxu0 %v7200_v47  ;;  %v6651_v47 = vpack.c.bf16 %v5523_v42, %v5522_v5 }
 0x5f6   :  { %5084 = vmatpush1.bf16.msra.mxu0 %v7198_v20  ;;  %v5506_v20 = vld [vmem:[%s8411_s12 + $0x60] sm:$0xff] }
 0x5f7   :  { %5085 = vmatprep.subr.bf16.mxu0 %v7203_v60  ;;  %v5507_v60 = vld [vmem:[%s8411_s12 + $0x68] sm:$0xff] }
 0x5fa   :  { %5086 = vmatpush1.bf16.msra.mxu0 %v7201_v62  ;;  %v5524_v62 = vld [vmem:[%s8411_s12 + $0xf0] sm:$0xff] }
 0x5fb   :  { %5087 = vmatprep.subr.bf16.mxu0 %v7206_v18  ;;  %v5525_v18 = vld [vmem:[%s8411_s12 + $0xf8] sm:$0xff] }
 0x5fe   :  { %5088 = vmatpush1.bf16.msra.mxu0 %v7204_v4  ;;  %v6653_v4 = vpack.c.bf16 %v5507_v60, %v5506_v20 }
 0x5ff   :  { %5089 = vmatprep.subr.bf16.mxu0 %v7209_v6  ;;  %v6655_v6 = vpack.c.bf16 %v5525_v18, %v5524_v62 }
 0x602   :  { %5090 = vmatpush1.bf16.msra.mxu0 %v7207_v49  ;;  %v5508_v49 = vld [vmem:[%s8411_s12 + $0x70] sm:$0xff] }
 0x603   :  { %5091 = vmatprep.subr.bf16.mxu0 %v7212_v51  ;;  %v5509_v51 = vld [vmem:[%s8411_s12 + $0x78] sm:$0xff] }
 0x606   :  { %5092 = vmatpush1.bf16.msra.mxu0 %v7210_v48  ;;  %v6657_v48 = vpack.c.bf16 %v5509_v51, %v5508_v49  ;;  %v7250_v49 = vld [vmem:[%s8408_s9 + $0x98] sm:$0xff]  }
 0x607   :  { %5093 = vmatprep.subr.bf16.mxu0 %v7215_v1  ;;  %v7271_v1 = vld [vmem:[%s8434_s21] sm:$0xff] }
 0x60a   :  { %5094 = vmatpush1.bf16.msra.mxu0 %v7213_v55  ;;  %v7242_v55 = vld [vmem:[%s8408_s9 + $0x28] sm:$0xff]  }
 0x60b   :  { %5095 = vmatprep.subr.bf16.mxu0 %v7218_v39  ;;  %6465 = vmatpush3.bf16.msra.mxu1 %v7242_v55  ;;  %v7243_v39 = vld [vmem:[%s8408_s9 + $0x70] sm:$0xff]  }
 0x60c   :  { %6466 = vmatprep.subr.bf16.mxu1 %v7243_v39 }
 0x60e   :  { %5096 = vmatpush1.bf16.msra.mxu0 %v7216_v38  ;;  %v7244_v38 = vld [vmem:[%s8408_s9 + $0x30] sm:$0xff]  }
 0x60f   :  { %5097 = vmatprep.subr.bf16.mxu0 %v7221_v63  ;;  %6467 = vmatpush3.bf16.msra.mxu1 %v7244_v38  ;;  %v7245_v63 = vld [vmem:[%s8408_s9 + $0x78] sm:$0xff]  }
 0x610   :  { %6468 = vmatprep.subr.bf16.mxu1 %v7245_v63  ;;  %v7254_v38 = vld [vmem:[%s8408_s9 + $0xb8] sm:$0xff]  }
 0x612   :  { %5098 = vmatpush1.bf16.msra.mxu0 %v7219_v2  ;;  %v7246_v2 = vld [vmem:[%s8408_s9 + $0x38] sm:$0xff]  }
 0x613   :  { %5099 = vmatprep.subr.bf16.mxu0 %v7224_v0  ;;  %6469 = vmatpush3.bf16.msra.mxu1 %v7246_v2  ;;  %v7247_v0 = vld [vmem:[%s8408_s9 + $0x80] sm:$0xff]  }
 0x614   :  { %6553 = vmatprep.subr.bf16.mxu1 %v7247_v0  ;;  %v5604_v2 = vld [vmem:[%s8413_s14] sm:$0xff] }
 0x616   :  { %5100 = vmatpush1.bf16.msra.mxu0 %v7222_v44  ;;  %v7423_v44 = vmov 0.0|0.0  }
 0x617   :  { %5101 = vmatprep.subr.bf16.mxu0 %v7227_v8  ;;  %v7425_v8 = vmov 0.0  }
 0x61a   :  { %5102 = vmatpush1.bf16.msra.mxu0 %v7225_v27  ;;  %v6347_v27 = vld [vmem:[%s8409_s10 + $0x6] sm:$0x3] }
 0x61b   :  { %5103 = vmatprep.subr.bf16.mxu0 %v7230_v11  ;;  %v4693_v11 = vrot.slane %v6347_v27, %v7735_v10  ;;  %v4697_v7 = vrot.slane %v6347_v27, %v7743_v14 }
 0x61e   :  { %5104 = vmatpush1.bf16.msra.mxu0 %v7228_v59 }
 0x61f   :  { %6628 = vmatprep.subr.bf16.mxu0 %v6627_v61 }
 0x621   :  { %6414 = vmatmul.mubr.msk.bf16.vlgmr.msra.gmra.mrb[36].mxu0 %vm7900_vm5, %v6413_v40  ;;  %v5504_v40 = vld [vmem:[%s8411_s12 + $0x50] sm:$0xff]  ;;  %vm7424_vm5 = vmmov 0  }
 0x622   :  { %6417 = vmatprep.mubr.msk.bf16.mxu0 %vm7929_vm7, %v6416_v36  ;;  %6630 = vmatpush3.bf16.msra.mxu0 %v6629_v21  ;;  %v5520_v36 = vld [vmem:[%s8411_s12 + $0xd0] sm:$0xff] }
 0x623   :  { %6632 = vmatprep.subr.bf16.mxu0 %v6631_v22  ;;  %v6647_v37 = vpack.c.bf16 %v5521_v54, %v5520_v36 }
 0x626   :  { %6634 = vmatpush3.bf16.msra.mxu0 %v6633_v50 }
 0x627   :  { %6636 = vmatprep.subr.bf16.mxu0 %v6635_v28 }
 0x629   :  { %5116 = vmatmul.mubr.bf16.gmra.mrb[40].mxu0 %v4608_v46  ;;  %v5505_v46 = vld [vmem:[%s8411_s12 + $0x58] sm:$0xff] }
 0x62a   :  { %6638 = vmatpush3.bf16.msra.mxu0 %v6637_v53  ;;  %5597 = vmatprep.mubr.f32.mxu0 %v7663_v43  ;;  %v6645_v43 = vpack.c.bf16 %v5503_v41, %v5502_v34  ;;  %v6649_v13 = vpack.c.bf16 %v5505_v46, %v5504_v40  ;;  %v7249_v40 = vld [vmem:[%s8408_s9 + $0x90] sm:$0xff]  }
 0x62b   :  { %6640 = vmatprep.subr.bf16.mxu0 %v6639_v24 }
 0x62e   :  { %6642 = vmatpush3.bf16.msra.mxu0 %v6641_v33 }
 0x62f   :  { %6644 = vmatprep.subr.bf16.mxu0 %v6643_v56 }
 0x632   :  { %6646 = vmatpush3.bf16.msra.mxu0 %v6645_v43 }
 0x633   :  { %6648 = vmatprep.subr.bf16.mxu0 %v6647_v37 }
 0x636   :  { %6650 = vmatpush3.bf16.msra.mxu0 %v6649_v13 }
 0x637   :  { %6652 = vmatprep.subr.bf16.mxu0 %v6651_v47 }
 0x63a   :  { %6654 = vmatpush3.bf16.msra.mxu0 %v6653_v4 }
 0x63b   :  { %6656 = vmatprep.subr.bf16.mxu0 %v6655_v6 }
 0x63e   :  { %6658 = vmatpush3.bf16.msra.mxu0 %v6657_v48  ;;  %v7251_v48 = vld [vmem:[%s8408_s9 + $0xa0] sm:$0xff]  }
 0x63f   :  { %6683 = vmatprep.subr.bf16.mxu0 %v7423_v44 }
 0x641   :  { %5598 = vmatmul.mubr.f32.vlgmr.msra.gmra.mrb[44].mxu0 %v7271_v1  ;;  %v7253_v1 = vld [vmem:[%s8408_s9 + $0xb0] sm:$0xff]  }
 0x642   :  { %6624 = vmatprep.mubr.msk.f32.mxu0 %vm7424_vm5, %v7425_v8 }
 0x6f4   :  { %v5107_v19 = vpop.f32.mrb[36].mxu0 }
 0x6f5   :  { %v6719_v59 = vadd.f32 %v5107_v19, %v4693_v11  ;;  %v5109_v61 = vpop.f32.mrb[37].mxu0 }
 0x6f6   :  { %v6720_v29 = vadd.f32 %v5109_v61, %v4697_v7  ;;  %v5111_v16 = vpop.f32.mrb[38].mxu0  ;;  %v5609_v61 = vld [vmem:[%s8413_s14 + $0x28] sm:$0xff] }
 0x6f7   :  { %vm5126_vm4 = vcmp.ge.f32.partialorder %v6719_v59, 0.0  ;;  %v5134_v17 = vmul.f32 0.2, %v6719_v59  ;;  %v6721_v15 = vadd.f32 %v5111_v16, %v4693_v11  ;;  %v5113_v21 = vpop.f32.mrb[39].mxu0 }
 0x6f8   :  { %v5135_v22 = vmul.f32 0.2, %v6720_v29  ;;  %v6722_v26 = vadd.f32 %v5113_v21, %v4697_v7  ;;  %vm5127_vm6 = vcmp.ge.f32.partialorder %v6720_v29, 0.0 }
 0x6f9   :  { %v5142_v35 = vsel %vm5126_vm4, %v6719_v59, %v5134_v17  ;;  %vm5128_vm8 = vcmp.ge.f32.partialorder %v6721_v15, 0.0  ;;  %v5136_v12 = vmul.f32 0.2, %v6721_v15  ;;  %v5608_v59 = vld [vmem:[%s8413_s14 + $0x20] sm:$0xff] }
 0x6fa   :  { %vm5129_vm9 = vcmp.ge.f32.partialorder %v6722_v26, 0.0  ;;  %v5137_v52 = vmul.f32 0.2, %v6722_v26  ;;  %v5154_v10 = vrot.slane %v5142_v35, 4  ;;  %v5143_v9 = vsel %vm5127_vm6, %v6720_v29, %v5135_v22  ;;  %v5612_v17 = vld [vmem:[%s8413_s14 + $0x40] sm:$0xff]  ;;  %v5614_v22 = vld [vmem:[%s8413_s14 + $0x50] sm:$0xff] }
 0x6fb   :  { %v5144_v50 = vsel %vm5128_vm8, %v6721_v15, %v5136_v12  ;;  %v6666_v29 = vpack.c.bf16 %v5609_v61, %v5608_v59  ;;  %v5613_v15 = vld [vmem:[%s8413_s14 + $0x48] sm:$0xff]  ;;  %v5616_v12 = vld [vmem:[%s8413_s14 + $0x60] sm:$0xff] }
 0x6fc   :  { %v5150_v14 = vpack.c.bf16 %v5144_v50, %v5142_v35  ;;  %v5155_v28 = vrot.slane %v5144_v50, 4  ;;  %v5117_v57 = vpop.f32.mrb[40].mxu0  ;;  %v5145_v23 = vsel %vm5129_vm9, %v6722_v26, %v5137_v52  ;;  %v6672_v21 = vpack.c.bf16 %v5613_v15, %v5612_v17  ;;  %v5615_v26 = vld [vmem:[%s8413_s14 + $0x58] sm:$0xff]  ;;  %v5617_v52 = vld [vmem:[%s8413_s14 + $0x68] sm:$0xff] }
 0x6fd   :  { %v6723_v30 = vadd.f32 %v5117_v57, %v4693_v11  ;;  %v5119_v53 = vpop.f32.mrb[41].mxu0  ;;  %v5151_v24 = vpack.c.bf16 %v5145_v23, %v5143_v9  ;;  %v6675_v35 = vpack.c.bf16 %v5615_v26, %v5614_v22  ;;  %v6678_v50 = vpack.c.bf16 %v5617_v52, %v5616_v12  ;;  %v6451_v22 = vld [vmem:[%s8414_s15] ss:$0 sm:$0xff]  ;;  %s7426_s15 = smov [#allocation12]  }
 0x6fe   :  { %v6724_v58 = vadd.f32 %v5119_v53, %v4697_v7  ;;  %v5121_v31 = vpop.f32.mrb[42].mxu0  ;;  %v5160_v25 = vsel %vm2653_vm10, %v5154_v10, %v5155_v28  ;;  %v5699_v53 = vld [vmem:[%s8415_s16 + $0x8] sm:$0xff]  ;;  %s5796_s5 = sshll.u32 %s7426_s15, 4  ;;  %s5797_s5 = int_to_ptr.vmem [resolvable:$true] %s5796_s5 }
 0x6ff   :  { %vm5130_vm11 = vcmp.ge.f32.partialorder %v6723_v30, 0.0  ;;  %v5138_v33 = vmul.f32 0.2, %v6723_v30  ;;  %v6725_v56 = vadd.f32 %v5121_v31, %v4693_v11  ;;  %v5123_v34 = vpop.f32.mrb[43].mxu0  ;;  %5399 = vmatprep.mubr.bf16.mxu1 %v5151_v24  ;;  %v5606_v11 = vld [vmem:[%s8413_s14 + $0x10] sm:$0xff]  ;;  %v5701_v31 = vld [vmem:[%s8415_s16 + $0x18] sm:$0xff]  ;;  %p7387_p13 = scmp.lt.s32.totalorder %s5797_s5, %s5797_s5 }
 0x700   :  { %vm5131_vm12 = vcmp.ge.f32.partialorder %v6724_v58, 0.0  ;;  %v5139_v41 = vmul.f32 0.2, %v6724_v58  ;;  %v6726_v36 = vadd.f32 %v5123_v34, %v4697_v7  ;;  %5400 = vmatmul.mubr.bf16.vlgmr.msra.gmra.mrb[52].mxu1 %v5150_v14  ;;  %v5607_v7 = vld [vmem:[%s8413_s14 + $0x18] sm:$0xff]  ;;  %v5618_v14 = vld [vmem:[%s8413_s14 + $0x70] sm:$0xff]  ;;  %s7382_s30 = scalar_lea.vmem %s5797_s5, 64 }
 0x701   :  { %vm5132_vm13 = vcmp.ge.f32.partialorder %v6725_v56, 0.0  ;;  %v5140_v54 = vmul.f32 0.2, %v6725_v56  ;;  %6554 = vmatpush3.bf16.msra.mxu1 %v7247_v0  ;;  %v5146_v43 = vsel %vm5130_vm11, %v6723_v30, %v5138_v33  ;;  %v5605_v0 = vld [vmem:[%s8413_s14 + $0x8] sm:$0xff]  ;;  %v6663_v19 = vpack.c.bf16 %v5607_v7, %v5606_v11  ;;  %v5698_v30 = vld [vmem:[%s8415_s16] sm:$0xff]  ;;  %v5704_v34 = vld [vmem:[%s8415_s16 + $0x30] sm:$0xff]  ;;  %p7383_p12 = scmp.ne.s32.totalorder %s5797_s5, %s7382_s30  ;;  %p7388_p0 = scmp.lt.s32.totalorder %s7382_s30, %s7382_s30 }
 0x702   :  { %vm5133_vm14 = vcmp.ge.f32.partialorder %v6726_v36, 0.0  ;;  %v5141_v37 = vmul.f32 0.2, %v6726_v36  ;;  %6555 = vmatprep.subr.bf16.mxu1 %v7248_v32  ;;  %v5156_v46 = vrot.slane %v5146_v43, 4  ;;  %v5147_v5 = vsel %vm5131_vm12, %v6724_v58, %v5139_v41  ;;  %v5700_v58 = vld [vmem:[%s8415_s16 + $0x10] sm:$0xff]  ;;  %v5703_v33 = vld [vmem:[%s8415_s16 + $0x28] sm:$0xff] }
 0x703   :  { %v5148_v42 = vsel %vm5132_vm13, %v6725_v56, %v5140_v54  ;;  %v6660_v27 = vpack.c.bf16 %v5605_v0, %v5604_v2  ;;  %v6684_v24 = vpack.c.bf16 %v5699_v53, %v5698_v30  ;;  %v5705_v41 = vld [vmem:[%s8415_s16 + $0x38] sm:$0xff]  ;;  %p7389_p1 = por %p7388_p0, %p7387_p13 }
 0x704   :  { %v5149_v13 = vsel %vm5133_vm14, %v6726_v36, %v5141_v37  ;;  %v5152_v47 = vpack.c.bf16 %v5148_v42, %v5146_v43  ;;  %v5157_v20 = vrot.slane %v5148_v42, 4  ;;  %v5159_v60 = vsel %vm2653_vm10, %v5155_v28, %v5156_v46  ;;  %v5619_v28 = vld [vmem:[%s8413_s14 + $0x78] sm:$0xff] }
 0x705   :  { %6556 = vmatpush3.bf16.msra.mxu1 %v7248_v32  ;;  %v5153_v62 = vpack.c.bf16 %v5149_v13, %v5147_v5  ;;  %v5166_v18 = vpack.c.bf16 %v5159_v60, %v5160_v25  ;;  %v6681_v9 = vpack.c.bf16 %v5619_v28, %v5618_v14  ;;  %6685 = vmatpush3.bf16.msra.mxu0 %v6684_v24  ;;  %v5702_v25 = vld [vmem:[%s8415_s16 + $0x20] sm:$0xff]  ;;  %p7390_p2 = pnand %p7389_p1, %p7383_p12 }
 0x706   :  { %6557 = vmatprep.subr.bf16.mxu1 %v7249_v40  ;;  %v5158_v4 = vsel %vm2653_vm10, %v5156_v46, %v5157_v20  ;;  %v5161_v6 = vsel %vm2653_vm10, %v5157_v20, %v5154_v10  ;;  %v6450_v10 = vld [vmem:[%s8412_s13] ss:$0 sm:$0xff]  ;;  %6686 = vmatprep.subr.bf16.mxu0 %v7423_v44  ;;  %v6687_v32 = vpack.c.bf16 %v5701_v31, %v5700_v58  ;;  %vm5489_vm10 = vcmask 261120  }
 0x707   :  { %5407 = vmatprep.mubr.bf16.mxu1 %v5153_v62  ;;  %v6444_v51 = vpack.c.bf16 %v5161_v6, %v5158_v4  ;;  %v6690_v56 = vpack.c.bf16 %v5703_v33, %v5702_v25  ;;  %v6693_v36 = vpack.c.bf16 %v5705_v41, %v5704_v34  ;;  %v6418_v62 = vld [vmem:[%s8410_s11] ss:$0 sm:$0xff] }
 0x708   :  { %5408 = vmatmul.mubr.bf16.gmra.mrb[56].mxu1 %v5152_v47 }
 0x709   :  { %6558 = vmatpush3.bf16.msra.mxu1 %v7249_v40  ;;  %6569 = vmatprep.mubr.bf16.mxu1 %v5166_v18 }
 0x70a   :  { %6559 = vmatprep.subr.bf16.mxu1 %v7250_v49  ;;  %6688 = vmatpush3.bf16.msra.mxu0 %v6687_v32 }
 0x70b   :  { %6689 = vmatprep.subr.bf16.mxu0 %v7423_v44 }
 0x70d   :  { %6560 = vmatpush3.bf16.msra.mxu1 %v7250_v49 }
 0x70e   :  { %6561 = vmatprep.subr.bf16.mxu1 %v7251_v48  ;;  %6691 = vmatpush3.bf16.msra.mxu0 %v6690_v56 }
 0x70f   :  { %6692 = vmatprep.subr.bf16.mxu0 %v7423_v44 }
 0x711   :  { %6562 = vmatpush3.bf16.msra.mxu1 %v7251_v48 }
 0x712   :  { %6563 = vmatprep.subr.bf16.mxu1 %v7252_v45  ;;  %6694 = vmatpush3.bf16.msra.mxu0 %v6693_v36 }
 0x714   :  { %v6524_v55 = vpop.f32.mrb[44].mxu0 }
 0x715   :  { %6564 = vmatpush3.bf16.msra.mxu1 %v7252_v45  ;;  %v6525_v39 = vpop.f32.mrb[45].mxu0 }
 0x716   :  { %6565 = vmatprep.subr.bf16.mxu1 %v7253_v1  ;;  %v6526_v63 = vadd.f32 %v6525_v39, %v6524_v55 }
 0x718   :  { %v5600_v57 = vadd.f32 %v6526_v63, %v6450_v10 }
 0x719   :  { %6566 = vmatpush3.bf16.msra.mxu1 %v7253_v1 }
 0x71a   :  { %6567 = vmatprep.subr.bf16.mxu1 %v7254_v38  ;;  %v5603_v23 = vmax.f32 %v5600_v57, 0.0 }
 0x71d   :  { %6568 = vmatpush3.bf16.msra.mxu1 %v7254_v38 }
 0x71e   :  { %6659 = vmatprep.subr.bf16.mxu1 %v7423_v44 }
 0x720   :  { %6570 = vmatmul.mubr.msk.bf16.vlgmr.msra.gmra.mrb[60].mxu1 %vm7929_vm7, %v6444_v51  ;;  %vm5713_vm7 = vcmask 523264  }
 0x721   :  { %6661 = vmatpush3.bf16.msra.mxu1 %v6660_v27  ;;  %6605 = vmatprep.mubr.msk.f32.mxu1 %vm7424_vm5, %v7425_v8  ;;  %v5611_v8 = vld [vmem:[%s8413_s14 + $0x38] sm:$0xff] }
 0x722   :  { %6662 = vmatprep.subr.bf16.mxu1 %v7423_v44  ;;  %v6669_v16 = vpack.c.bf16 %v5611_v8, %v5610_v3 }
 0x725   :  { %6664 = vmatpush3.bf16.msra.mxu1 %v6663_v19 }
 0x726   :  { %6665 = vmatprep.subr.bf16.mxu1 %v7423_v44 }
 0x729   :  { %6667 = vmatpush3.bf16.msra.mxu1 %v6666_v29 }
 0x72a   :  { %6668 = vmatprep.subr.bf16.mxu1 %v7423_v44 }
 0x72d   :  { %6670 = vmatpush3.bf16.msra.mxu1 %v6669_v16 }
 0x72e   :  { %6671 = vmatprep.subr.bf16.mxu1 %v7423_v44 }
 0x731   :  { %6673 = vmatpush3.bf16.msra.mxu1 %v6672_v21 }
 0x732   :  { %6674 = vmatprep.subr.bf16.mxu1 %v7423_v44 }
 0x735   :  { %6676 = vmatpush3.bf16.msra.mxu1 %v6675_v35 }
 0x736   :  { %6677 = vmatprep.subr.bf16.mxu1 %v7423_v44 }
 0x739   :  { %6679 = vmatpush3.bf16.msra.mxu1 %v6678_v50  ;;  %v6452_v50 = vld [vmem:[%s8416_s17] ss:$0 sm:$0xff] }
 0x73a   :  { %6680 = vmatprep.subr.bf16.mxu1 %v7423_v44 }
 0x73d   :  { %6682 = vmatpush3.bf16.msra.mxu1 %v6681_v9 }
 0x740   :  { %6606 = vmatmul.mubr.f32.vlgmr.msra.gmra.mrb[64].mxu1 %v5603_v23 }
 0x7d3   :  { %v6470_v54 = vpop.f32.mrb[52].mxu1 }
 0x7d4   :  { %v6471_v43 = vpop.f32.mrb[53].mxu1 }
 0x7d5   :  { %v6472_v37 = vadd.f32 %v6471_v43, %v6470_v54  ;;  %v6473_v40 = vpop.f32.mrb[54].mxu1 }
 0x7d6   :  { %v6474_v46 = vpop.f32.mrb[55].mxu1 }
 0x7d7   :  { %v6475_v5 = vadd.f32 %v6474_v46, %v6473_v40  ;;  %v5402_v6 = vadd.f32 %v6472_v37, %v6418_v62 }
 0x7d9   :  { %v5405_v55 = vadd.f32 %v6475_v5, %v6418_v62 }
 0x7db   :  { %v6476_v42 = vpop.f32.mrb[56].mxu1 }
 0x7dc   :  { %v6477_v13 = vpop.f32.mrb[57].mxu1 }
 0x7dd   :  { %v6478_v47 = vadd.f32 %v6477_v13, %v6476_v42  ;;  %v6479_v44 = vpop.f32.mrb[58].mxu1 }
 0x7de   :  { %v6480_v20 = vpop.f32.mrb[59].mxu1 }
 0x7df   :  { %v6481_v60 = vadd.f32 %v6480_v20, %v6479_v44  ;;  %v5410_v18 = vadd.f32 %v6478_v47, %v6418_v62 }
 0x7e1   :  { %v5413_v48 = vadd.f32 %v6481_v60, %v6418_v62 }
 0x7f3   :  { %v6571_v4 = vpop.f32.mrb[60].mxu1 }
 0x7f4   :  { %v5459_v49 = vadd.f32 %v6571_v4, %v5410_v18  ;;  %v5450_v51 = vpop.f32.mrb[61].mxu1 }
 0x7f5   :  { %v5451_v45 = vadd.f32 %v5450_v51, %v5402_v6  ;;  %v6572_v1 = vpop.f32.mrb[62].mxu1 }
 0x7f6   :  { %v6448_v39 = vmul.f32 -1.442695, %v5459_v49  ;;  %v5462_v38 = vadd.f32 %v6572_v1, %v5413_v48  ;;  %v5453_v63 = vpop.f32.mrb[63].mxu1 }
 0x7f7   :  { %v6446_v2 = vmul.f32 -1.442695, %v5451_v45  ;;  %v5454_v0 = vadd.f32 %v5453_v63, %v5405_v55 }
 0x7f8   :  { %7255 = vpow2.f32 %v6448_v39  ;;  %v6449_v27 = vmul.f32 -1.442695, %v5462_v38 }
 0x7f9   :  { %7257 = vpow2.f32 %v6446_v2  ;;  %v6447_v11 = vmul.f32 -1.442695, %v5454_v0 }
 0x7fa   :  { %7259 = vpow2.f32 %v6449_v27 }
 0x7fb   :  { %7261 = vpow2.f32 %v6447_v11 }
 0x802   :  { %v7256_v7 = vpop.eup %7255 }
 0x803   :  { %v7258_v19 = vpop.eup %7257  ;;  %v5479_v59 = vadd.f32 1.0, %v7256_v7 }
 0x804   :  { %v7260_v61 = vpop.eup %7259  ;;  %v5477_v29 = vadd.f32 1.0, %v7258_v19 }
 0x805   :  { %v7262_v3 = vpop.eup %7261  ;;  %7263 = vrcp.f32 %v5479_v59  ;;  %v5480_v8 = vadd.f32 1.0, %v7260_v61 }
 0x806   :  { %7265 = vrcp.f32 %v5477_v29  ;;  %v5478_v16 = vadd.f32 1.0, %v7262_v3 }
 0x807   :  { %7267 = vrcp.f32 %v5480_v8 }
 0x808   :  { %7269 = vrcp.f32 %v5478_v16 }
 0x80f   :  { %v7264_v17 = vpop.eup %7263 }
 0x810   :  { %v7266_v15 = vpop.eup %7265  ;;  %5492 = vst.msk [vmem:[%s8417_s18 + $0x10] sm:$0xff] %vm5489_vm10, %v7264_v17 }
 0x811   :  { %v7268_v21 = vpop.eup %7267  ;;  %5490 = vst.msk [vmem:[%s8417_s18] sm:$0xff] %vm5489_vm10, %v7266_v15 }
 0x812   :  { %v7270_v26 = vpop.eup %7269  ;;  %5493 = vst.msk [vmem:[%s8417_s18 + $0x18] sm:$0xff] %vm5489_vm10, %v7268_v21 }
 0x813   :  { %5491 = vst.msk [vmem:[%s8417_s18 + $0x8] sm:$0xff] %vm5489_vm10, %v7270_v26  ;;  %v5693_v35 = vpop.f32.mrb[64].mxu1 }
 0x814   :  { %v5694_v12 = vadd.f32 %v6451_v22, %v5693_v35  ;;  %v6607_v52 = vpop.f32.mrb[65].mxu1 }
 0x816   :  { %v5697_v10 = vmax.f32 %v5694_v12, 0.0 }
 0x818   :  { %6625 = vmatmul.mubr.msk.f32.vlgmr.msra.gmra.mrb[46].mxu0 %vm5713_vm7, %v5697_v10 }
 0x8eb   :  { %v5783_v14 = vpop.f32.mrb[46].mxu0 }
 0x8ec   :  { %v5784_v28 = vadd.f32 %v6452_v50, %v5783_v14  ;;  %v6626_v57 = vpop.f32.mrb[47].mxu0 }
 0x8ee   :  { %5787 = vst [vmem:[#allocation12] sm:$0xf] %v5784_v28 }
 0x8ef   :  { %7393 = shalt.err (!%p7390_p2)
}
 0x8f0   :  { %s8439_s28 = sld [smem:[#allocation21_spill]] }
 0x8f6   :  { %s7394_s20 = scalar_lea.hbm %s8439_s28, 64 }
 0x8f7   :  { %p7395_p3 = scmp.ne.s32.totalorder %s8439_s28, %s7394_s20  ;;  %p7398_p4 = scmp.lt.u32.totalorder %s7394_s20, %s8439_s28 }
 0x8f9   :  { %p7400_p5 = pnand %p7398_p4, %p7395_p3 }
 0x8fb   :  { %7403 = shalt.err (!%p7400_p5)
}
 0x8fc   :  { %5799 = dma.vmem_to_hbm [thread:$0]  %s5797_s5, 64, %s8439_s28, [#allocation5]  }
 0x8fd   :  { %7410 = dma.done.wait [#allocation5], 64  }
 0x8fe   :  { %7411 = vsyncadd [#allocation5], 4294967232 }
 0x8ff   :  { %5805 = vsyncpa [#allocation4], 1 }
 0x900   :  { %5806 = vsyncpa [#allocation7], 1 }
 0x901   :  { %5807 = vsyncpa [#allocation10], 1 }
 0x902   :  { %5808 = vsyncpa [#allocation5], 1 }

</bundles_post_ra>
